<compile_context>
chip_gen: v7x
topology: tpu7x:2x2x1
jax: 0.10.0
libtpu: 0.0.40
codegen_flags: <defaults>
</compile_context>

<pallas_src>
import functools

import jax
import jax.numpy as jnp
from jax.experimental import pallas as pl
from jax.experimental.pallas import tpu as pltpu

EPS = 1e-3                       # BatchNorm2d eps in the reference module
_VMEM_LIMIT = 32 * 1024 * 1024   # explicit scoped-VMEM limit (v5e default is 16 MiB)


def _cparams():
    return pltpu.CompilerParams(
        dimension_semantics=("parallel",),
        vmem_limit_bytes=_VMEM_LIMIT,
    )


def _shift_rows(x, s):
    """y[r] = x[r - s] with zero fill outside [0, M). `s` is a static int."""
    m, c = x.shape
    if s == 0:
        return x
    if abs(s) >= m:
        return jnp.zeros_like(x)
    if s > 0:
        return jnp.concatenate([jnp.zeros((s, c), x.dtype), x[: m - s]], axis=0)
    return jnp.concatenate([x[-s:], jnp.zeros((-s, c), x.dtype)], axis=0)


# ------------------------------- Pallas kernels -------------------------------

def _nb_kernel(x_ref, w1_ref, w2_ref, w3_ref, w4_ref, p_ref, o_ref, *, W, dil):
    """Fused non_bottleneck_1d block for one image plane.

    x_ref : (M, C) bf16 input slab (M = H*W, row-major), also the residual.
    w*_ref: (3*C, C) bf16 tap-folded weights for conv3x1_1 / conv1x3_1 /
            conv3x1_2 / conv1x3_2.
    p_ref : (6, C) f32 rows = [bias1, bn1_scale, bn1_shift(+bias2),
                               bias3, bn2_scale, bn2_shift(+bias4)].
    o_ref : (M, C) bf16 = relu(block(x) + x).
    """
    x = x_ref[...]
    m, c = x.shape
    jpos = jax.lax.broadcasted_iota(jnp.int32, (m, c), 0) % W

    def conv_h(a, w_ref2, d):
        up = _shift_rows(a, d * W)       # input at h - d (zero padded: exact)
        dn = _shift_rows(a, -d * W)      # input at h + d
        taps = jnp.concatenate([up, a, dn], axis=-1)
        return jnp.dot(taps, w_ref2[...], preferred_element_type=jnp.float32)

    def conv_w(a, w_ref2, d):
        if d < W:
            lf = jnp.where(jpos >= d, _shift_rows(a, d), jnp.zeros_like(a))
            rt = jnp.where(jpos < W - d, _shift_rows(a, -d), jnp.zeros_like(a))
        else:                            # taps fall entirely in the zero padding
            lf = jnp.zeros_like(a)
            rt = jnp.zeros_like(a)
        taps = jnp.concatenate([lf, a, rt], axis=-1)
        return jnp.dot(taps, w_ref2[...], preferred_element_type=jnp.float32)

    b1 = p_ref[0:1, :]
    s1 = p_ref[1:2, :]
    t1 = p_ref[2:3, :]
    b3 = p_ref[3:4, :]
    s2 = p_ref[4:5, :]
    t2 = p_ref[5:6, :]

    a = jnp.maximum(conv_h(x, w1_ref, 1) + b1, 0.0).astype(jnp.bfloat16)
    a = jnp.maximum(conv_w(a, w2_ref, 1) * s1 + t1, 0.0).astype(jnp.bfloat16)
    a = jnp.maximum(conv_h(a, w3_ref, dil) + b3, 0.0).astype(jnp.bfloat16)
    y = conv_w(a, w4_ref, dil) * s2 + t2
    # Dropout2d is identity in inference; residual add + final ReLU fused here.
    o_ref[...] = jnp.maximum(y + x.astype(jnp.float32), 0.0).astype(o_ref.dtype)


def _down_kernel(p00_ref, p01_ref, p10_ref, p11_ref, w_ref, pr_ref, o_ref, *, Wo):
    """Fused DownsamplerBlock (conv branch): stride-2 3x3 conv || 2x2 maxpool,
    channel concat, BN + bias, ReLU.  Inputs are the four 2x2 phase planes
    Ppq[i, j] = x[2i+p, 2j+q], flattened to (Mo = Ho*Wo, Cin) bf16."""
    p00 = p00_ref[...]
    p01 = p01_ref[...]
    p10 = p10_ref[...]
    p11 = p11_ref[...]
    mo, cin = p00.shape
    jpos = jax.lax.broadcasted_iota(jnp.int32, (mo, cin), 0) % Wo
    jmask = jpos >= 1

    def mj(a):
        return jnp.where(jmask, a, jnp.zeros_like(a))

    taps = jnp.concatenate([
        mj(_shift_rows(p11, Wo + 1)),   # (kh=0, kw=0): x[2i-1, 2j-1]
        _shift_rows(p10, Wo),           # (0, 1):       x[2i-1, 2j  ]
        _shift_rows(p11, Wo),           # (0, 2):       x[2i-1, 2j+1]
        mj(_shift_rows(p01, 1)),        # (1, 0):       x[2i,   2j-1]
        p00,                            # (1, 1):       x[2i,   2j  ]
        p01,                            # (1, 2):       x[2i,   2j+1]
        mj(_shift_rows(p11, 1)),        # (2, 0):       x[2i+1, 2j-1]
        p10,                            # (2, 1):       x[2i+1, 2j  ]
        p11,                            # (2, 2):       x[2i+1, 2j+1]
    ], axis=-1)
    conv = jnp.dot(taps, w_ref[...], preferred_element_type=jnp.float32)
    pool = jnp.maximum(jnp.maximum(p00, p01),
                       jnp.maximum(p10, p11)).astype(jnp.float32)
    y = jnp.concatenate([conv, pool], axis=-1)
    o_ref[...] = jnp.maximum(y * pr_ref[0:1, :] + pr_ref[1:2, :],
                             0.0).astype(o_ref.dtype)


def _pool_bn_kernel(p00_ref, p01_ref, p10_ref, p11_ref, pr_ref, o_ref):
    pool = jnp.maximum(jnp.maximum(p00_ref[...], p01_ref[...]),
                       jnp.maximum(p10_ref[...], p11_ref[...])).astype(jnp.float32)
    o_ref[...] = jnp.maximum(pool * pr_ref[0:1, :] + pr_ref[1:2, :],
                             0.0).astype(o_ref.dtype)


# ------------------------------- parameters (deterministic) -------------------------------

def _conv_init(key, cout, cin, kh, kw):
    kw_, kb_ = jax.random.split(key)
    fan_in = cin * kh * kw
    w = jax.random.normal(kw_, (cout, cin, kh, kw), jnp.float32) / jnp.sqrt(float(fan_in))
    b = 0.01 * jax.random.normal(kb_, (cout,), jnp.float32)
    return w, b


def _bn_init(key, c):
    k1, k2, k3, k4 = jax.random.split(key, 4)
    return {
        'gamma': 1.0 + 0.1 * jax.random.normal(k1, (c,), jnp.float32),
        'beta': 0.05 * jax.random.normal(k2, (c,), jnp.float32),
        'mean': 0.05 * jax.random.normal(k3, (c,), jnp.float32),
        'var': 1.0 + 0.1 * jax.random.uniform(k4, (c,), jnp.float32),
    }


def _bn_fold(bn):
    s = bn['gamma'] / jnp.sqrt(bn['var'] + EPS)
    t = bn['beta'] - s * bn['mean']
    return s, t


def init_downsampler(key, cin, cout):
    kc, kb = jax.random.split(key)
    p = {'bn': _bn_init(kb, cout)}
    if cout > cin:
        w, b = _conv_init(kc, cout - cin, cin, 3, 3)
        p['conv_w'], p['conv_b'] = w, b
    return p


def init_non_bottleneck(key, c):
    ks = jax.random.split(key, 6)
    w1, b1 = _conv_init(ks[0], c, c, 3, 1)
    w2, b2 = _conv_init(ks[1], c, c, 1, 3)
    w3, b3 = _conv_init(ks[2], c, c, 3, 1)
    w4, b4 = _conv_init(ks[3], c, c, 1, 3)
    return {'w31_1': w1, 'b31_1': b1, 'w13_1': w2, 'b13_1': b2,
            'bn1': _bn_init(ks[4], c),
            'w31_2': w3, 'b31_2': b3, 'w13_2': w4, 'b13_2': b4,
            'bn2': _bn_init(ks[5], c)}


def init_encoder(key, in_channels, filter_numbers=None, activation='relu'):
    del filter_numbers  # present in the reference __init__ signature, unused in forward
    assert activation == 'relu'
    chans = 32 if in_channels > 16 else 16
    cfgs = [('down', chans, 64, None)]
    cfgs += [('nb', 64, 64, 1)] * 5
    cfgs += [('down', 64, 128, None)]
    for _ in range(2):
        cfgs += [('nb', 128, 128, d) for d in (2, 4, 8, 16)]
    keys = jax.random.split(key, len(cfgs) + 1)
    layers = []
    for k, (kind, cin, cout, dil) in zip(keys[1:], cfgs):
        if kind == 'down':
            layers.append(('down', init_downsampler(k, cin, cout), None))
        else:
            layers.append(('nb', init_non_bottleneck(k, cout), dil))
    return {'initial': init_downsampler(keys[0], in_channels, chans), 'layers': layers}


# ------------------------------- forward passes -------------------------------

def downsampler_fwd(p, x):
    """x: (N, H, W, Cin).  Returns relu(bn(cat([conv(x), maxpool(x)]))) as bf16 NHWC."""
    n, h, w, cin = x.shape
    assert h % 2 == 0 and w % 2 == 0, "DownsamplerBlock requires even spatial dims"
    ho, wo = h // 2, w // 2
    mo = ho * wo
    s, t = _bn_fold(p['bn'])
    xb = x.astype(jnp.bfloat16)
    # 2x2 phase planes: Ppq[n, i, j, c] = x[n, 2i+p, 2j+q, c]  (order P00, P01, P10, P11)
    phases = [xb[:, pp::2, qq::2, :].reshape(n, mo, cin)
              for pp in (0, 1) for qq in (0, 1)]
    plane_spec = pl.BlockSpec((None, mo, cin), lambda i: (i, 0, 0))

    if 'conv_w' not in p:
        # pool-only branch (noutput <= ninput); unused by this Encoder config.
        pr = jnp.stack([s, t], axis=0).astype(jnp.float32)
        out = pl.pallas_call(
            _pool_bn_kernel, grid=(n,),
            in_specs=[plane_spec] * 4 + [pl.BlockSpec((2, cin), lambda i: (0, 0))],
            out_specs=pl.BlockSpec((None, mo, cin), lambda i: (i, 0, 0)),
            out_shape=jax.ShapeDtypeStruct((n, mo, cin), jnp.bfloat16),
            compiler_params=_cparams(),
        )(*phases, pr)
        return out.reshape(n, ho, wo, cin)

    c1 = p['conv_w'].shape[0]
    cout = c1 + cin
    w2d = jnp.transpose(p['conv_w'], (2, 3, 1, 0)).reshape(9 * cin, c1).astype(jnp.bfloat16)
    # conv bias folded into the shift of the conv lanes
    shift = jnp.concatenate([s[:c1] * p['conv_b'] + t[:c1], t[c1:]], axis=0)
    pr = jnp.stack([s, shift], axis=0).astype(jnp.float32)          # (2, Cout)
    out = pl.pallas_call(
        functools.partial(_down_kernel, Wo=wo), grid=(n,),
        in_specs=[plane_spec] * 4
                 + [pl.BlockSpec((9 * cin, c1), lambda i: (0, 0)),
                    pl.BlockSpec((2, cout), lambda i: (0, 0))],
        out_specs=pl.BlockSpec((None, mo, cout), lambda i: (i, 0, 0)),
        out_shape=jax.ShapeDtypeStruct((n, mo, cout), jnp.bfloat16),
        compiler_params=_cparams(),
    )(*phases, w2d, pr)
    return out.reshape(n, ho, wo, cout)


def non_bottleneck_fwd(p, x, dil):
    """x: (N, H, W, C) bf16.  Whole non_bottleneck_1d block fused in one pallas_call."""
    n, h, w, c = x.shape
    m = h * w
    x3 = x.astype(jnp.bfloat16).reshape(n, m, c)
    fold = lambda wt: jnp.transpose(wt, (2, 3, 1, 0)).reshape(3 * c, c).astype(jnp.bfloat16)
    s1, t1 = _bn_fold(p['bn1'])
    s2, t2 = _bn_fold(p['bn2'])
    pvec = jnp.stack([p['b31_1'], s1, s1 * p['b13_1'] + t1,
                      p['b31_2'], s2, s2 * p['b13_2'] + t2],
                     axis=0).astype(jnp.float32)                    # (6, C)
    w_spec = pl.BlockSpec((3 * c, c), lambda i: (0, 0))
    out = pl.pallas_call(
        functools.partial(_nb_kernel, W=w, dil=dil), grid=(n,),
        in_specs=[pl.BlockSpec((None, m, c), lambda i: (i, 0, 0))]
                 + [w_spec] * 4
                 + [pl.BlockSpec((6, c), lambda i: (0, 0))],
        out_specs=pl.BlockSpec((None, m, c), lambda i: (i, 0, 0)),
        out_shape=jax.ShapeDtypeStruct((n, m, c), jnp.bfloat16),
        compiler_params=_cparams(),
    )(x3, fold(p['w31_1']), fold(p['w13_1']), fold(p['w31_2']), fold(p['w13_2']), pvec)
    return out.reshape(n, h, w, c)


def encoder_fwd(params, x_nchw):
    x = jnp.transpose(x_nchw, (0, 2, 3, 1)).astype(jnp.float32)     # NCHW -> NHWC
    out = downsampler_fwd(params['initial'], x)
    p1 = out
    for i in range(6):
        kind, p, dil = params['layers'][i]
        out = downsampler_fwd(p, out) if kind == 'down' else non_bottleneck_fwd(p, out, dil)
    p2 = out
    for i in range(6, len(params['layers'])):
        kind, p, dil = params['layers'][i]
        out = downsampler_fwd(p, out) if kind == 'down' else non_bottleneck_fwd(p, out, dil)
    p3 = out
    to_nchw = lambda a: jnp.transpose(a.astype(jnp.float32), (0, 3, 1, 2))
    return to_nchw(p1), to_nchw(p2), to_nchw(p3)


if __name__ == "__main__":
    key = jax.random.PRNGKey(0)
    kx, kp = jax.random.split(key)
    # small shapes: batch=2, in_channels=4, spatial=16x16  (=> chans=16 inside Encoder)
    x = jax.random.normal(kx, (2, 4, 16, 16), jnp.float32)
    params = init_encoder(kp, in_channels=4, filter_numbers=[16, 64, 128])
    fwd = jax.jit(lambda inp: encoder_fwd(params, inp))
    p1, p2, p3 = fwd(x)
    jax.block_until_ready((p1, p2, p3))
    assert p1.shape == (2, 16, 8, 8), p1.shape
    assert p2.shape == (2, 64, 4, 4), p2.shape
    assert p3.shape == (2, 128, 2, 2), p3.shape
    print("KERNEL_OK")
</pallas_src>

<mosaic_0001>
module attributes {stable_mosaic.version = 11 : i64} {
  func.func @_down_kernel(%arg0: i32, %arg1: memref<1x64x4xbf16, #tpu.memory_space<vmem>>, %arg2: memref<1x64x4xbf16, #tpu.memory_space<vmem>>, %arg3: memref<1x64x4xbf16, #tpu.memory_space<vmem>>, %arg4: memref<1x64x4xbf16, #tpu.memory_space<vmem>>, %arg5: memref<36x12xbf16, #tpu.memory_space<vmem>>, %arg6: memref<2x16xf32, #tpu.memory_space<vmem>>, %arg7: memref<1x64x16xbf16, #tpu.memory_space<vmem>>) attributes {dimension_semantics = [#tpu.dimension_semantics<parallel>], iteration_bounds = array<i64: 2>, scalar_prefetch = 0 : i64, scratch_operands = 0 : i64, tpu.core_type = #tpu.core_type<tc>, window_params = [{transform_indices = @transform_0, window_bounds = array<i64: 1, 64, 4>}, {transform_indices = @transform_1, window_bounds = array<i64: 1, 64, 4>}, {transform_indices = @transform_2, window_bounds = array<i64: 1, 64, 4>}, {transform_indices = @transform_3, window_bounds = array<i64: 1, 64, 4>}, {pipeline_mode = #tpu.pipeline_mode<synchronous>, transform_indices = @transform_4, window_bounds = array<i64: 36, 12>}, {pipeline_mode = #tpu.pipeline_mode<synchronous>, transform_indices = @transform_5, window_bounds = array<i64: 2, 16>}, {transform_indices = @transform_6, window_bounds = array<i64: 1, 64, 16>}]} {
    %c0 = arith.constant 0 : index
    %c0_0 = arith.constant 0 : index
    %c0_1 = arith.constant 0 : index
    %0 = vector.load %arg1[%c0, %c0_0, %c0_1] : memref<1x64x4xbf16, #tpu.memory_space<vmem>>, vector<1x64x4xbf16>
    %1 = vector.shape_cast %0 : vector<1x64x4xbf16> to vector<64x4xbf16>
    %c0_2 = arith.constant 0 : index
    %c0_3 = arith.constant 0 : index
    %c0_4 = arith.constant 0 : index
    %2 = vector.load %arg2[%c0_2, %c0_3, %c0_4] : memref<1x64x4xbf16, #tpu.memory_space<vmem>>, vector<1x64x4xbf16>
    %3 = vector.shape_cast %2 : vector<1x64x4xbf16> to vector<64x4xbf16>
    %c0_5 = arith.constant 0 : index
    %c0_6 = arith.constant 0 : index
    %c0_7 = arith.constant 0 : index
    %4 = vector.load %arg3[%c0_5, %c0_6, %c0_7] : memref<1x64x4xbf16, #tpu.memory_space<vmem>>, vector<1x64x4xbf16>
    %5 = vector.shape_cast %4 : vector<1x64x4xbf16> to vector<64x4xbf16>
    %c0_8 = arith.constant 0 : index
    %c0_9 = arith.constant 0 : index
    %c0_10 = arith.constant 0 : index
    %6 = vector.load %arg4[%c0_8, %c0_9, %c0_10] : memref<1x64x4xbf16, #tpu.memory_space<vmem>>, vector<1x64x4xbf16>
    %7 = vector.shape_cast %6 : vector<1x64x4xbf16> to vector<64x4xbf16>
    %8 = tpu.iota {dimensions = array<i32: 0>} : vector<64x4xi32>
    %c8_i32 = arith.constant 8 : i32
    %c0_i32 = arith.constant 0 : i32
    %9 = arith.cmpi eq, %c8_i32, %c0_i32 : i32
    %c1_i32 = arith.constant 1 : i32
    %10 = arith.select %9, %c1_i32, %c8_i32 : i32
    %11 = vector.broadcast %10 : i32 to vector<64x4xi32>
    %12 = arith.remsi %8, %11 : vector<64x4xi32>
    %c0_i32_11 = arith.constant 0 : i32
    %13 = vector.broadcast %c0_i32_11 : i32 to vector<64x4xi32>
    %14 = arith.cmpi ne, %12, %13 : vector<64x4xi32>
    %c0_i32_12 = arith.constant 0 : i32
    %15 = vector.broadcast %c0_i32_12 : i32 to vector<64x4xi32>
    %16 = arith.cmpi slt, %12, %15 : vector<64x4xi32>
    %c0_i32_13 = arith.constant 0 : i32
    %17 = arith.cmpi slt, %10, %c0_i32_13 : i32
    %18 = vector.broadcast %17 : i1 to vector<64x4xi1>
    %19 = vector.broadcast %18 : vector<64x4xi1> to vector<64x4xi1>
    %20 = arith.xori %16, %19 : vector<64x4xi1>
    %21 = arith.andi %20, %14 : vector<64x4xi1>
    %22 = vector.broadcast %10 : i32 to vector<64x4xi32>
    %23 = arith.addi %12, %22 : vector<64x4xi32>
    %24 = arith.select %21, %23, %12 : vector<64x4xi1>, vector<64x4xi32>
    %c1_i32_14 = arith.constant 1 : i32
    %25 = vector.broadcast %c1_i32_14 : i32 to vector<64x4xi32>
    %26 = arith.cmpi sge, %24, %25 : vector<64x4xi32>
    %cst = arith.constant 0.000000e+00 : bf16
    %27 = vector.broadcast %cst : bf16 to vector<9x4xbf16>
    %28 = vector.extract_strided_slice %7 {offsets = [0, 0], sizes = [55, 4], strides = [1, 1]} : vector<64x4xbf16> to vector<55x4xbf16>
    %29 = tpu.concatenate %27, %28 in 0 : vector<9x4xbf16>, vector<55x4xbf16> -> vector<64x4xbf16>
    %cst_15 = arith.constant 0.000000e+00 : bf16
    %30 = vector.broadcast %cst_15 : bf16 to vector<64x4xbf16>
    %31 = arith.select %26, %29, %30 : vector<64x4xi1>, vector<64x4xbf16>
    %cst_16 = arith.constant 0.000000e+00 : bf16
    %32 = vector.broadcast %cst_16 : bf16 to vector<8x4xbf16>
    %33 = vector.extract_strided_slice %5 {offsets = [0, 0], sizes = [56, 4], strides = [1, 1]} : vector<64x4xbf16> to vector<56x4xbf16>
    %34 = tpu.concatenate %32, %33 in 0 : vector<8x4xbf16>, vector<56x4xbf16> -> vector<64x4xbf16>
    %cst_17 = arith.constant 0.000000e+00 : bf16
    %35 = vector.broadcast %cst_17 : bf16 to vector<8x4xbf16>
    %36 = vector.extract_strided_slice %7 {offsets = [0, 0], sizes = [56, 4], strides = [1, 1]} : vector<64x4xbf16> to vector<56x4xbf16>
    %37 = tpu.concatenate %35, %36 in 0 : vector<8x4xbf16>, vector<56x4xbf16> -> vector<64x4xbf16>
    %cst_18 = arith.constant 0.000000e+00 : bf16
    %38 = vector.broadcast %cst_18 : bf16 to vector<1x4xbf16>
    %39 = vector.extract_strided_slice %3 {offsets = [0, 0], sizes = [63, 4], strides = [1, 1]} : vector<64x4xbf16> to vector<63x4xbf16>
    %40 = tpu.concatenate %38, %39 in 0 : vector<1x4xbf16>, vector<63x4xbf16> -> vector<64x4xbf16>
    %cst_19 = arith.constant 0.000000e+00 : bf16
    %41 = vector.broadcast %cst_19 : bf16 to vector<64x4xbf16>
    %42 = arith.select %26, %40, %41 : vector<64x4xi1>, vector<64x4xbf16>
    %cst_20 = arith.constant 0.000000e+00 : bf16
    %43 = vector.broadcast %cst_20 : bf16 to vector<1x4xbf16>
    %44 = vector.extract_strided_slice %7 {offsets = [0, 0], sizes = [63, 4], strides = [1, 1]} : vector<64x4xbf16> to vector<63x4xbf16>
    %45 = tpu.concatenate %43, %44 in 0 : vector<1x4xbf16>, vector<63x4xbf16> -> vector<64x4xbf16>
    %cst_21 = arith.constant 0.000000e+00 : bf16
    %46 = vector.broadcast %cst_21 : bf16 to vector<64x4xbf16>
    %47 = arith.select %26, %45, %46 : vector<64x4xi1>, vector<64x4xbf16>
    %48 = tpu.concatenate %31, %34, %37, %42, %1, %3, %47, %5, %7 in 1 : vector<64x4xbf16>, vector<64x4xbf16>, vector<64x4xbf16>, vector<64x4xbf16>, vector<64x4xbf16>, vector<64x4xbf16>, vector<64x4xbf16>, vector<64x4xbf16>, vector<64x4xbf16> -> vector<64x36xbf16>
    %c0_22 = arith.constant 0 : index
    %c0_23 = arith.constant 0 : index
    %49 = vector.load %arg5[%c0_22, %c0_23] : memref<36x12xbf16, #tpu.memory_space<vmem>>, vector<36x12xbf16>
    %cst_24 = arith.constant dense<0.000000e+00> : vector<64x12xf32>
    %50 = tpu.matmul %48, %49, %cst_24 {dimension_numbers = #tpu.dot_dimension_numbers<[1], [0], [0], [1], [0, 0, 1, 1], [], []>} : vector<64x36xbf16>, vector<36x12xbf16>, vector<64x12xf32> -> vector<64x12xf32>
    %51 = arith.maximumf %1, %3 : vector<64x4xbf16>
    %52 = arith.maximumf %5, %7 : vector<64x4xbf16>
    %53 = arith.maximumf %51, %52 : vector<64x4xbf16>
    %54 = arith.extf %53 : vector<64x4xbf16> to vector<64x4xf32>
    %55 = tpu.concatenate %50, %54 in 1 : vector<64x12xf32>, vector<64x4xf32> -> vector<64x16xf32>
    %c0_25 = arith.constant 0 : index
    %c0_26 = arith.constant 0 : index
    %56 = vector.load %arg6[%c0_25, %c0_26] : memref<2x16xf32, #tpu.memory_space<vmem>>, vector<1x16xf32>
    %57 = vector.broadcast %56 : vector<1x16xf32> to vector<64x16xf32>
    %58 = arith.mulf %55, %57 : vector<64x16xf32>
    %c1 = arith.constant 1 : index
    %c0_27 = arith.constant 0 : index
    %59 = vector.load %arg6[%c1, %c0_27] : memref<2x16xf32, #tpu.memory_space<vmem>>, vector<1x16xf32>
    %60 = vector.broadcast %59 : vector<1x16xf32> to vector<64x16xf32>
    %61 = arith.addf %58, %60 : vector<64x16xf32>
    %cst_28 = arith.constant 0.000000e+00 : f32
    %62 = vector.broadcast %cst_28 : f32 to vector<64x16xf32>
    %63 = arith.maximumf %61, %62 : vector<64x16xf32>
    %64 = arith.truncf %63 : vector<64x16xf32> to vector<64x16xbf16>
    %c0_29 = arith.constant 0 : index
    %c0_30 = arith.constant 0 : index
    %c0_31 = arith.constant 0 : index
    %65 = vector.load %arg7[%c0_29, %c0_30, %c0_31] : memref<1x64x16xbf16, #tpu.memory_space<vmem>>, vector<1x64x16xbf16>
    %66 = vector.shape_cast %65 : vector<1x64x16xbf16> to vector<64x16xbf16>
    %67 = vector.shape_cast %64 : vector<64x16xbf16> to vector<1x64x16xbf16>
    tpu.vector_store %arg7[%c0_29, %c0_30, %c0_31], %67 {strides = array<i32>} : memref<1x64x16xbf16, #tpu.memory_space<vmem>>, vector<1x64x16xbf16>,
    return
  }
  func.func @transform_0(%arg0: i32) -> (i32, i32, i32) {
    %c0_i32 = arith.constant 0 : i32
    %c0_i32_0 = arith.constant 0 : i32
    %c0_i32_1 = arith.constant 0 : i32
    return %arg0, %c0_i32, %c0_i32_0 : i32, i32, i32
  }
  func.func @transform_1(%arg0: i32) -> (i32, i32, i32) {
    %c0_i32 = arith.constant 0 : i32
    %c0_i32_0 = arith.constant 0 : i32
    %c0_i32_1 = arith.constant 0 : i32
    return %arg0, %c0_i32, %c0_i32_0 : i32, i32, i32
  }
  func.func @transform_2(%arg0: i32) -> (i32, i32, i32) {
    %c0_i32 = arith.constant 0 : i32
    %c0_i32_0 = arith.constant 0 : i32
    %c0_i32_1 = arith.constant 0 : i32
    return %arg0, %c0_i32, %c0_i32_0 : i32, i32, i32
  }
  func.func @transform_3(%arg0: i32) -> (i32, i32, i32) {
    %c0_i32 = arith.constant 0 : i32
    %c0_i32_0 = arith.constant 0 : i32
    %c0_i32_1 = arith.constant 0 : i32
    return %arg0, %c0_i32, %c0_i32_0 : i32, i32, i32
  }
  func.func @transform_4(%arg0: i32) -> (i32, i32) {
    %c0_i32 = arith.constant 0 : i32
    %c0_i32_0 = arith.constant 0 : i32
    %c0_i32_1 = arith.constant 0 : i32
    return %c0_i32, %c0_i32_0 : i32, i32
  }
  func.func @transform_5(%arg0: i32) -> (i32, i32) {
    %c0_i32 = arith.constant 0 : i32
    %c0_i32_0 = arith.constant 0 : i32
    %c0_i32_1 = arith.constant 0 : i32
    return %c0_i32, %c0_i32_0 : i32, i32
  }
  func.func @transform_6(%arg0: i32) -> (i32, i32, i32) {
    %c0_i32 = arith.constant 0 : i32
    %c0_i32_0 = arith.constant 0 : i32
    %c0_i32_1 = arith.constant 0 : i32
    return %arg0, %c0_i32, %c0_i32_0 : i32, i32, i32
  }
}

module attributes {stable_mosaic.version = 11 : i64} {
  func.func @_nb_kernel(%arg0: i32, %arg1: memref<1x16x64xbf16, #tpu.memory_space<vmem>>, %arg2: memref<192x64xbf16, #tpu.memory_space<vmem>>, %arg3: memref<192x64xbf16, #tpu.memory_space<vmem>>, %arg4: memref<192x64xbf16, #tpu.memory_space<vmem>>, %arg5: memref<192x64xbf16, #tpu.memory_space<vmem>>, %arg6: memref<6x64xf32, #tpu.memory_space<vmem>>, %arg7: memref<1x16x64xbf16, #tpu.memory_space<vmem>>) attributes {dimension_semantics = [#tpu.dimension_semantics<parallel>], iteration_bounds = array<i64: 2>, scalar_prefetch = 0 : i64, scratch_operands = 0 : i64, tpu.core_type = #tpu.core_type<tc>, window_params = [{transform_indices = @transform_0, window_bounds = array<i64: 1, 16, 64>}, {pipeline_mode = #tpu.pipeline_mode<synchronous>, transform_indices = @transform_1, window_bounds = array<i64: 192, 64>}, {pipeline_mode = #tpu.pipeline_mode<synchronous>, transform_indices = @transform_2, window_bounds = array<i64: 192, 64>}, {pipeline_mode = #tpu.pipeline_mode<synchronous>, transform_indices = @transform_3, window_bounds = array<i64: 192, 64>}, {pipeline_mode = #tpu.pipeline_mode<synchronous>, transform_indices = @transform_4, window_bounds = array<i64: 192, 64>}, {pipeline_mode = #tpu.pipeline_mode<synchronous>, transform_indices = @transform_5, window_bounds = array<i64: 6, 64>}, {transform_indices = @transform_6, window_bounds = array<i64: 1, 16, 64>}]} {
    %c0 = arith.constant 0 : index
    %c0_0 = arith.constant 0 : index
    %c0_1 = arith.constant 0 : index
    %0 = vector.load %arg1[%c0, %c0_0, %c0_1] : memref<1x16x64xbf16, #tpu.memory_space<vmem>>, vector<1x16x64xbf16>
    %1 = vector.shape_cast %0 : vector<1x16x64xbf16> to vector<16x64xbf16>
    %2 = tpu.iota {dimensions = array<i32: 0>} : vector<16x64xi32>
    %c4_i32 = arith.constant 4 : i32
    %c0_i32 = arith.constant 0 : i32
    %3 = arith.cmpi eq, %c4_i32, %c0_i32 : i32
    %c1_i32 = arith.constant 1 : i32
    %4 = arith.select %3, %c1_i32, %c4_i32 : i32
    %5 = vector.broadcast %4 : i32 to vector<16x64xi32>
    %6 = arith.remsi %2, %5 : vector<16x64xi32>
    %c0_i32_2 = arith.constant 0 : i32
    %7 = vector.broadcast %c0_i32_2 : i32 to vector<16x64xi32>
    %8 = arith.cmpi ne, %6, %7 : vector<16x64xi32>
    %c0_i32_3 = arith.constant 0 : i32
    %9 = vector.broadcast %c0_i32_3 : i32 to vector<16x64xi32>
    %10 = arith.cmpi slt, %6, %9 : vector<16x64xi32>
    %c0_i32_4 = arith.constant 0 : i32
    %11 = arith.cmpi slt, %4, %c0_i32_4 : i32
    %12 = vector.broadcast %11 : i1 to vector<16x64xi1>
    %13 = vector.broadcast %12 : vector<16x64xi1> to vector<16x64xi1>
    %14 = arith.xori %10, %13 : vector<16x64xi1>
    %15 = arith.andi %14, %8 : vector<16x64xi1>
    %16 = vector.broadcast %4 : i32 to vector<16x64xi32>
    %17 = arith.addi %6, %16 : vector<16x64xi32>
    %18 = arith.select %15, %17, %6 : vector<16x64xi1>, vector<16x64xi32>
    %c0_5 = arith.constant 0 : index
    %c0_6 = arith.constant 0 : index
    %19 = vector.load %arg6[%c0_5, %c0_6] : memref<6x64xf32, #tpu.memory_space<vmem>>, vector<1x64xf32>
    %c1 = arith.constant 1 : index
    %c0_7 = arith.constant 0 : index
    %20 = vector.load %arg6[%c1, %c0_7] : memref<6x64xf32, #tpu.memory_space<vmem>>, vector<1x64xf32>
    %c2 = arith.constant 2 : index
    %c0_8 = arith.constant 0 : index
    %21 = vector.load %arg6[%c2, %c0_8] : memref<6x64xf32, #tpu.memory_space<vmem>>, vector<1x64xf32>
    %c3 = arith.constant 3 : index
    %c0_9 = arith.constant 0 : index
    %22 = vector.load %arg6[%c3, %c0_9] : memref<6x64xf32, #tpu.memory_space<vmem>>, vector<1x64xf32>
    %c4 = arith.constant 4 : index
    %c0_10 = arith.constant 0 : index
    %23 = vector.load %arg6[%c4, %c0_10] : memref<6x64xf32, #tpu.memory_space<vmem>>, vector<1x64xf32>
    %c5 = arith.constant 5 : index
    %c0_11 = arith.constant 0 : index
    %24 = vector.load %arg6[%c5, %c0_11] : memref<6x64xf32, #tpu.memory_space<vmem>>, vector<1x64xf32>
    %cst = arith.constant 0.000000e+00 : bf16
    %25 = vector.broadcast %cst : bf16 to vector<4x64xbf16>
    %26 = vector.extract_strided_slice %1 {offsets = [0, 0], sizes = [12, 64], strides = [1, 1]} : vector<16x64xbf16> to vector<12x64xbf16>
    %27 = tpu.concatenate %25, %26 in 0 : vector<4x64xbf16>, vector<12x64xbf16> -> vector<16x64xbf16>
    %28 = vector.extract_strided_slice %1 {offsets = [4, 0], sizes = [12, 64], strides = [1, 1]} : vector<16x64xbf16> to vector<12x64xbf16>
    %cst_12 = arith.constant 0.000000e+00 : bf16
    %29 = vector.broadcast %cst_12 : bf16 to vector<4x64xbf16>
    %30 = tpu.concatenate %28, %29 in 0 : vector<12x64xbf16>, vector<4x64xbf16> -> vector<16x64xbf16>
    %31 = tpu.concatenate %27, %1, %30 in 1 : vector<16x64xbf16>, vector<16x64xbf16>, vector<16x64xbf16> -> vector<16x192xbf16>
    %c0_13 = arith.constant 0 : index
    %c0_14 = arith.constant 0 : index
    %32 = vector.load %arg2[%c0_13, %c0_14] : memref<192x64xbf16, #tpu.memory_space<vmem>>, vector<192x64xbf16>
    %cst_15 = arith.constant dense<0.000000e+00> : vector<16x64xf32>
    %33 = tpu.matmul %31, %32, %cst_15 {dimension_numbers = #tpu.dot_dimension_numbers<[1], [0], [0], [1], [0, 0, 1, 1], [], []>} : vector<16x192xbf16>, vector<192x64xbf16>, vector<16x64xf32> -> vector<16x64xf32>
    %34 = vector.broadcast %19 : vector<1x64xf32> to vector<16x64xf32>
    %35 = arith.addf %33, %34 : vector<16x64xf32>
    %cst_16 = arith.constant 0.000000e+00 : f32
    %36 = vector.broadcast %cst_16 : f32 to vector<16x64xf32>
    %37 = arith.maximumf %35, %36 : vector<16x64xf32>
    %38 = arith.truncf %37 : vector<16x64xf32> to vector<16x64xbf16>
    %c1_i32_17 = arith.constant 1 : i32
    %39 = vector.broadcast %c1_i32_17 : i32 to vector<16x64xi32>
    %40 = arith.cmpi sge, %18, %39 : vector<16x64xi32>
    %cst_18 = arith.constant 0.000000e+00 : bf16
    %41 = vector.broadcast %cst_18 : bf16 to vector<1x64xbf16>
    %42 = vector.extract_strided_slice %38 {offsets = [0, 0], sizes = [15, 64], strides = [1, 1]} : vector<16x64xbf16> to vector<15x64xbf16>
    %43 = tpu.concatenate %41, %42 in 0 : vector<1x64xbf16>, vector<15x64xbf16> -> vector<16x64xbf16>
    %cst_19 = arith.constant 0.000000e+00 : bf16
    %44 = vector.broadcast %cst_19 : bf16 to vector<16x64xbf16>
    %45 = arith.select %40, %43, %44 : vector<16x64xi1>, vector<16x64xbf16>
    %c3_i32 = arith.constant 3 : i32
    %46 = vector.broadcast %c3_i32 : i32 to vector<16x64xi32>
    %47 = arith.cmpi slt, %18, %46 : vector<16x64xi32>
    %48 = vector.extract_strided_slice %38 {offsets = [1, 0], sizes = [15, 64], strides = [1, 1]} : vector<16x64xbf16> to vector<15x64xbf16>
    %cst_20 = arith.constant 0.000000e+00 : bf16
    %49 = vector.broadcast %cst_20 : bf16 to vector<1x64xbf16>
    %50 = tpu.concatenate %48, %49 in 0 : vector<15x64xbf16>, vector<1x64xbf16> -> vector<16x64xbf16>
    %cst_21 = arith.constant 0.000000e+00 : bf16
    %51 = vector.broadcast %cst_21 : bf16 to vector<16x64xbf16>
    %52 = arith.select %47, %50, %51 : vector<16x64xi1>, vector<16x64xbf16>
    %53 = tpu.concatenate %45, %38, %52 in 1 : vector<16x64xbf16>, vector<16x64xbf16>, vector<16x64xbf16> -> vector<16x192xbf16>
    %c0_22 = arith.constant 0 : index
    %c0_23 = arith.constant 0 : index
    %54 = vector.load %arg3[%c0_22, %c0_23] : memref<192x64xbf16, #tpu.memory_space<vmem>>, vector<192x64xbf16>
    %cst_24 = arith.constant dense<0.000000e+00> : vector<16x64xf32>
    %55 = tpu.matmul %53, %54, %cst_24 {dimension_numbers = #tpu.dot_dimension_numbers<[1], [0], [0], [1], [0, 0, 1, 1], [], []>} : vector<16x192xbf16>, vector<192x64xbf16>, vector<16x64xf32> -> vector<16x64xf32>
    %56 = vector.broadcast %20 : vector<1x64xf32> to vector<16x64xf32>
    %57 = arith.mulf %55, %56 : vector<16x64xf32>
    %58 = vector.broadcast %21 : vector<1x64xf32> to vector<16x64xf32>
    %59 = arith.addf %57, %58 : vector<16x64xf32>
    %cst_25 = arith.constant 0.000000e+00 : f32
    %60 = vector.broadcast %cst_25 : f32 to vector<16x64xf32>
    %61 = arith.maximumf %59, %60 : vector<16x64xf32>
    %62 = arith.truncf %61 : vector<16x64xf32> to vector<16x64xbf16>
    %cst_26 = arith.constant 0.000000e+00 : bf16
    %63 = vector.broadcast %cst_26 : bf16 to vector<4x64xbf16>
    %64 = vector.extract_strided_slice %62 {offsets = [0, 0], sizes = [12, 64], strides = [1, 1]} : vector<16x64xbf16> to vector<12x64xbf16>
    %65 = tpu.concatenate %63, %64 in 0 : vector<4x64xbf16>, vector<12x64xbf16> -> vector<16x64xbf16>
    %66 = vector.extract_strided_slice %62 {offsets = [4, 0], sizes = [12, 64], strides = [1, 1]} : vector<16x64xbf16> to vector<12x64xbf16>
    %cst_27 = arith.constant 0.000000e+00 : bf16
    %67 = vector.broadcast %cst_27 : bf16 to vector<4x64xbf16>
    %68 = tpu.concatenate %66, %67 in 0 : vector<12x64xbf16>, vector<4x64xbf16> -> vector<16x64xbf16>
    %69 = tpu.concatenate %65, %62, %68 in 1 : vector<16x64xbf16>, vector<16x64xbf16>, vector<16x64xbf16> -> vector<16x192xbf16>
    %c0_28 = arith.constant 0 : index
    %c0_29 = arith.constant 0 : index
    %70 = vector.load %arg4[%c0_28, %c0_29] : memref<192x64xbf16, #tpu.memory_space<vmem>>, vector<192x64xbf16>
    %cst_30 = arith.constant dense<0.000000e+00> : vector<16x64xf32>
    %71 = tpu.matmul %69, %70, %cst_30 {dimension_numbers = #tpu.dot_dimension_numbers<[1], [0], [0], [1], [0, 0, 1, 1], [], []>} : vector<16x192xbf16>, vector<192x64xbf16>, vector<16x64xf32> -> vector<16x64xf32>
    %72 = vector.broadcast %22 : vector<1x64xf32> to vector<16x64xf32>
    %73 = arith.addf %71, %72 : vector<16x64xf32>
    %cst_31 = arith.constant 0.000000e+00 : f32
    %74 = vector.broadcast %cst_31 : f32 to vector<16x64xf32>
    %75 = arith.maximumf %73, %74 : vector<16x64xf32>
    %76 = arith.truncf %75 : vector<16x64xf32> to vector<16x64xbf16>
    %c1_i32_32 = arith.constant 1 : i32
    %77 = vector.broadcast %c1_i32_32 : i32 to vector<16x64xi32>
    %78 = arith.cmpi sge, %18, %77 : vector<16x64xi32>
    %cst_33 = arith.constant 0.000000e+00 : bf16
    %79 = vector.broadcast %cst_33 : bf16 to vector<1x64xbf16>
    %80 = vector.extract_strided_slice %76 {offsets = [0, 0], sizes = [15, 64], strides = [1, 1]} : vector<16x64xbf16> to vector<15x64xbf16>
    %81 = tpu.concatenate %79, %80 in 0 : vector<1x64xbf16>, vector<15x64xbf16> -> vector<16x64xbf16>
    %cst_34 = arith.constant 0.000000e+00 : bf16
    %82 = vector.broadcast %cst_34 : bf16 to vector<16x64xbf16>
    %83 = arith.select %78, %81, %82 : vector<16x64xi1>, vector<16x64xbf16>
    %c3_i32_35 = arith.constant 3 : i32
    %84 = vector.broadcast %c3_i32_35 : i32 to vector<16x64xi32>
    %85 = arith.cmpi slt, %18, %84 : vector<16x64xi32>
    %86 = vector.extract_strided_slice %76 {offsets = [1, 0], sizes = [15, 64], strides = [1, 1]} : vector<16x64xbf16> to vector<15x64xbf16>
    %cst_36 = arith.constant 0.000000e+00 : bf16
    %87 = vector.broadcast %cst_36 : bf16 to vector<1x64xbf16>
    %88 = tpu.concatenate %86, %87 in 0 : vector<15x64xbf16>, vector<1x64xbf16> -> vector<16x64xbf16>
    %cst_37 = arith.constant 0.000000e+00 : bf16
    %89 = vector.broadcast %cst_37 : bf16 to vector<16x64xbf16>
    %90 = arith.select %85, %88, %89 : vector<16x64xi1>, vector<16x64xbf16>
    %91 = tpu.concatenate %83, %76, %90 in 1 : vector<16x64xbf16>, vector<16x64xbf16>, vector<16x64xbf16> -> vector<16x192xbf16>
    %c0_38 = arith.constant 0 : index
    %c0_39 = arith.constant 0 : index
    %92 = vector.load %arg5[%c0_38, %c0_39] : memref<192x64xbf16, #tpu.memory_space<vmem>>, vector<192x64xbf16>
    %cst_40 = arith.constant dense<0.000000e+00> : vector<16x64xf32>
    %93 = tpu.matmul %91, %92, %cst_40 {dimension_numbers = #tpu.dot_dimension_numbers<[1], [0], [0], [1], [0, 0, 1, 1], [], []>} : vector<16x192xbf16>, vector<192x64xbf16>, vector<16x64xf32> -> vector<16x64xf32>
    %94 = vector.broadcast %23 : vector<1x64xf32> to vector<16x64xf32>
    %95 = arith.mulf %93, %94 : vector<16x64xf32>
    %96 = vector.broadcast %24 : vector<1x64xf32> to vector<16x64xf32>
    %97 = arith.addf %95, %96 : vector<16x64xf32>
    %98 = arith.extf %1 : vector<16x64xbf16> to vector<16x64xf32>
    %99 = arith.addf %97, %98 : vector<16x64xf32>
    %cst_41 = arith.constant 0.000000e+00 : f32
    %100 = vector.broadcast %cst_41 : f32 to vector<16x64xf32>
    %101 = arith.maximumf %99, %100 : vector<16x64xf32>
    %102 = arith.truncf %101 : vector<16x64xf32> to vector<16x64xbf16>
    %c0_42 = arith.constant 0 : index
    %c0_43 = arith.constant 0 : index
    %c0_44 = arith.constant 0 : index
    %103 = vector.load %arg7[%c0_42, %c0_43, %c0_44] : memref<1x16x64xbf16, #tpu.memory_space<vmem>>, vector<1x16x64xbf16>
    %104 = vector.shape_cast %103 : vector<1x16x64xbf16> to vector<16x64xbf16>
    %105 = vector.shape_cast %102 : vector<16x64xbf16> to vector<1x16x64xbf16>
    tpu.vector_store %arg7[%c0_42, %c0_43, %c0_44], %105 {strides = array<i32>} : memref<1x16x64xbf16, #tpu.memory_space<vmem>>, vector<1x16x64xbf16>,
    return
  }
  func.func @transform_0(%arg0: i32) -> (i32, i32, i32) {
    %c0_i32 = arith.constant 0 : i32
    %c0_i32_0 = arith.constant 0 : i32
    %c0_i32_1 = arith.constant 0 : i32
    return %arg0, %c0_i32, %c0_i32_0 : i32, i32, i32
  }
  func.func @transform_1(%arg0: i32) -> (i32, i32) {
    %c0_i32 = arith.constant 0 : i32
    %c0_i32_0 = arith.constant 0 : i32
    %c0_i32_1 = arith.constant 0 : i32
    return %c0_i32, %c0_i32_0 : i32, i32
  }
  func.func @transform_2(%arg0: i32) -> (i32, i32) {
    %c0_i32 = arith.constant 0 : i32
    %c0_i32_0 = arith.constant 0 : i32
    %c0_i32_1 = arith.constant 0 : i32
    return %c0_i32, %c0_i32_0 : i32, i32
  }
  func.func @transform_3(%arg0: i32) -> (i32, i32) {
    %c0_i32 = arith.constant 0 : i32
    %c0_i32_0 = arith.constant 0 : i32
    %c0_i32_1 = arith.constant 0 : i32
    return %c0_i32, %c0_i32_0 : i32, i32
  }
  func.func @transform_4(%arg0: i32) -> (i32, i32) {
    %c0_i32 = arith.constant 0 : i32
    %c0_i32_0 = arith.constant 0 : i32
    %c0_i32_1 = arith.constant 0 : i32
    return %c0_i32, %c0_i32_0 : i32, i32
  }
  func.func @transform_5(%arg0: i32) -> (i32, i32) {
    %c0_i32 = arith.constant 0 : i32
    %c0_i32_0 = arith.constant 0 : i32
    %c0_i32_1 = arith.constant 0 : i32
    return %c0_i32, %c0_i32_0 : i32, i32
  }
  func.func @transform_6(%arg0: i32) -> (i32, i32, i32) {
    %c0_i32 = arith.constant 0 : i32
    %c0_i32_0 = arith.constant 0 : i32
    %c0_i32_1 = arith.constant 0 : i32
    return %arg0, %c0_i32, %c0_i32_0 : i32, i32, i32
  }
}

module attributes {stable_mosaic.version = 11 : i64} {
  func.func @_down_kernel(%arg0: i32, %arg1: memref<1x16x16xbf16, #tpu.memory_space<vmem>>, %arg2: memref<1x16x16xbf16, #tpu.memory_space<vmem>>, %arg3: memref<1x16x16xbf16, #tpu.memory_space<vmem>>, %arg4: memref<1x16x16xbf16, #tpu.memory_space<vmem>>, %arg5: memref<144x48xbf16, #tpu.memory_space<vmem>>, %arg6: memref<2x64xf32, #tpu.memory_space<vmem>>, %arg7: memref<1x16x64xbf16, #tpu.memory_space<vmem>>) attributes {dimension_semantics = [#tpu.dimension_semantics<parallel>], iteration_bounds = array<i64: 2>, scalar_prefetch = 0 : i64, scratch_operands = 0 : i64, tpu.core_type = #tpu.core_type<tc>, window_params = [{transform_indices = @transform_0, window_bounds = array<i64: 1, 16, 16>}, {transform_indices = @transform_1, window_bounds = array<i64: 1, 16, 16>}, {transform_indices = @transform_2, window_bounds = array<i64: 1, 16, 16>}, {transform_indices = @transform_3, window_bounds = array<i64: 1, 16, 16>}, {pipeline_mode = #tpu.pipeline_mode<synchronous>, transform_indices = @transform_4, window_bounds = array<i64: 144, 48>}, {pipeline_mode = #tpu.pipeline_mode<synchronous>, transform_indices = @transform_5, window_bounds = array<i64: 2, 64>}, {transform_indices = @transform_6, window_bounds = array<i64: 1, 16, 64>}]} {
    %c0 = arith.constant 0 : index
    %c0_0 = arith.constant 0 : index
    %c0_1 = arith.constant 0 : index
    %0 = vector.load %arg1[%c0, %c0_0, %c0_1] : memref<1x16x16xbf16, #tpu.memory_space<vmem>>, vector<1x16x16xbf16>
    %1 = vector.shape_cast %0 : vector<1x16x16xbf16> to vector<16x16xbf16>
    %c0_2 = arith.constant 0 : index
    %c0_3 = arith.constant 0 : index
    %c0_4 = arith.constant 0 : index
    %2 = vector.load %arg2[%c0_2, %c0_3, %c0_4] : memref<1x16x16xbf16, #tpu.memory_space<vmem>>, vector<1x16x16xbf16>
    %3 = vector.shape_cast %2 : vector<1x16x16xbf16> to vector<16x16xbf16>
    %c0_5 = arith.constant 0 : index
    %c0_6 = arith.constant 0 : index
    %c0_7 = arith.constant 0 : index
    %4 = vector.load %arg3[%c0_5, %c0_6, %c0_7] : memref<1x16x16xbf16, #tpu.memory_space<vmem>>, vector<1x16x16xbf16>
    %5 = vector.shape_cast %4 : vector<1x16x16xbf16> to vector<16x16xbf16>
    %c0_8 = arith.constant 0 : index
    %c0_9 = arith.constant 0 : index
    %c0_10 = arith.constant 0 : index
    %6 = vector.load %arg4[%c0_8, %c0_9, %c0_10] : memref<1x16x16xbf16, #tpu.memory_space<vmem>>, vector<1x16x16xbf16>
    %7 = vector.shape_cast %6 : vector<1x16x16xbf16> to vector<16x16xbf16>
    %8 = tpu.iota {dimensions = array<i32: 0>} : vector<16x16xi32>
    %c4_i32 = arith.constant 4 : i32
    %c0_i32 = arith.constant 0 : i32
    %9 = arith.cmpi eq, %c4_i32, %c0_i32 : i32
    %c1_i32 = arith.constant 1 : i32
    %10 = arith.select %9, %c1_i32, %c4_i32 : i32
    %11 = vector.broadcast %10 : i32 to vector<16x16xi32>
    %12 = arith.remsi %8, %11 : vector<16x16xi32>
    %c0_i32_11 = arith.constant 0 : i32
    %13 = vector.broadcast %c0_i32_11 : i32 to vector<16x16xi32>
    %14 = arith.cmpi ne, %12, %13 : vector<16x16xi32>
    %c0_i32_12 = arith.constant 0 : i32
    %15 = vector.broadcast %c0_i32_12 : i32 to vector<16x16xi32>
    %16 = arith.cmpi slt, %12, %15 : vector<16x16xi32>
    %c0_i32_13 = arith.constant 0 : i32
    %17 = arith.cmpi slt, %10, %c0_i32_13 : i32
    %18 = vector.broadcast %17 : i1 to vector<16x16xi1>
    %19 = vector.broadcast %18 : vector<16x16xi1> to vector<16x16xi1>
    %20 = arith.xori %16, %19 : vector<16x16xi1>
    %21 = arith.andi %20, %14 : vector<16x16xi1>
    %22 = vector.broadcast %10 : i32 to vector<16x16xi32>
    %23 = arith.addi %12, %22 : vector<16x16xi32>
    %24 = arith.select %21, %23, %12 : vector<16x16xi1>, vector<16x16xi32>
    %c1_i32_14 = arith.constant 1 : i32
    %25 = vector.broadcast %c1_i32_14 : i32 to vector<16x16xi32>
    %26 = arith.cmpi sge, %24, %25 : vector<16x16xi32>
    %cst = arith.constant 0.000000e+00 : bf16
    %27 = vector.broadcast %cst : bf16 to vector<5x16xbf16>
    %28 = vector.extract_strided_slice %7 {offsets = [0, 0], sizes = [11, 16], strides = [1, 1]} : vector<16x16xbf16> to vector<11x16xbf16>
    %29 = tpu.concatenate %27, %28 in 0 : vector<5x16xbf16>, vector<11x16xbf16> -> vector<16x16xbf16>
    %cst_15 = arith.constant 0.000000e+00 : bf16
    %30 = vector.broadcast %cst_15 : bf16 to vector<16x16xbf16>
    %31 = arith.select %26, %29, %30 : vector<16x16xi1>, vector<16x16xbf16>
    %cst_16 = arith.constant 0.000000e+00 : bf16
    %32 = vector.broadcast %cst_16 : bf16 to vector<4x16xbf16>
    %33 = vector.extract_strided_slice %5 {offsets = [0, 0], sizes = [12, 16], strides = [1, 1]} : vector<16x16xbf16> to vector<12x16xbf16>
    %34 = tpu.concatenate %32, %33 in 0 : vector<4x16xbf16>, vector<12x16xbf16> -> vector<16x16xbf16>
    %cst_17 = arith.constant 0.000000e+00 : bf16
    %35 = vector.broadcast %cst_17 : bf16 to vector<4x16xbf16>
    %36 = vector.extract_strided_slice %7 {offsets = [0, 0], sizes = [12, 16], strides = [1, 1]} : vector<16x16xbf16> to vector<12x16xbf16>
    %37 = tpu.concatenate %35, %36 in 0 : vector<4x16xbf16>, vector<12x16xbf16> -> vector<16x16xbf16>
    %cst_18 = arith.constant 0.000000e+00 : bf16
    %38 = vector.broadcast %cst_18 : bf16 to vector<1x16xbf16>
    %39 = vector.extract_strided_slice %3 {offsets = [0, 0], sizes = [15, 16], strides = [1, 1]} : vector<16x16xbf16> to vector<15x16xbf16>
    %40 = tpu.concatenate %38, %39 in 0 : vector<1x16xbf16>, vector<15x16xbf16> -> vector<16x16xbf16>
    %cst_19 = arith.constant 0.000000e+00 : bf16
    %41 = vector.broadcast %cst_19 : bf16 to vector<16x16xbf16>
    %42 = arith.select %26, %40, %41 : vector<16x16xi1>, vector<16x16xbf16>
    %cst_20 = arith.constant 0.000000e+00 : bf16
    %43 = vector.broadcast %cst_20 : bf16 to vector<1x16xbf16>
    %44 = vector.extract_strided_slice %7 {offsets = [0, 0], sizes = [15, 16], strides = [1, 1]} : vector<16x16xbf16> to vector<15x16xbf16>
    %45 = tpu.concatenate %43, %44 in 0 : vector<1x16xbf16>, vector<15x16xbf16> -> vector<16x16xbf16>
    %cst_21 = arith.constant 0.000000e+00 : bf16
    %46 = vector.broadcast %cst_21 : bf16 to vector<16x16xbf16>
    %47 = arith.select %26, %45, %46 : vector<16x16xi1>, vector<16x16xbf16>
    %48 = tpu.concatenate %31, %34, %37, %42, %1, %3, %47, %5, %7 in 1 : vector<16x16xbf16>, vector<16x16xbf16>, vector<16x16xbf16>, vector<16x16xbf16>, vector<16x16xbf16>, vector<16x16xbf16>, vector<16x16xbf16>, vector<16x16xbf16>, vector<16x16xbf16> -> vector<16x144xbf16>
    %c0_22 = arith.constant 0 : index
    %c0_23 = arith.constant 0 : index
    %49 = vector.load %arg5[%c0_22, %c0_23] : memref<144x48xbf16, #tpu.memory_space<vmem>>, vector<144x48xbf16>
    %cst_24 = arith.constant dense<0.000000e+00> : vector<16x48xf32>
    %50 = tpu.matmul %48, %49, %cst_24 {dimension_numbers = #tpu.dot_dimension_numbers<[1], [0], [0], [1], [0, 0, 1, 1], [], []>} : vector<16x144xbf16>, vector<144x48xbf16>, vector<16x48xf32> -> vector<16x48xf32>
    %51 = arith.maximumf %1, %3 : vector<16x16xbf16>
    %52 = arith.maximumf %5, %7 : vector<16x16xbf16>
    %53 = arith.maximumf %51, %52 : vector<16x16xbf16>
    %54 = arith.extf %53 : vector<16x16xbf16> to vector<16x16xf32>
    %55 = tpu.concatenate %50, %54 in 1 : vector<16x48xf32>, vector<16x16xf32> -> vector<16x64xf32>
    %c0_25 = arith.constant 0 : index
    %c0_26 = arith.constant 0 : index
    %56 = vector.load %arg6[%c0_25, %c0_26] : memref<2x64xf32, #tpu.memory_space<vmem>>, vector<1x64xf32>
    %57 = vector.broadcast %56 : vector<1x64xf32> to vector<16x64xf32>
    %58 = arith.mulf %55, %57 : vector<16x64xf32>
    %c1 = arith.constant 1 : index
    %c0_27 = arith.constant 0 : index
    %59 = vector.load %arg6[%c1, %c0_27] : memref<2x64xf32, #tpu.memory_space<vmem>>, vector<1x64xf32>
    %60 = vector.broadcast %59 : vector<1x64xf32> to vector<16x64xf32>
    %61 = arith.addf %58, %60 : vector<16x64xf32>
    %cst_28 = arith.constant 0.000000e+00 : f32
    %62 = vector.broadcast %cst_28 : f32 to vector<16x64xf32>
    %63 = arith.maximumf %61, %62 : vector<16x64xf32>
    %64 = arith.truncf %63 : vector<16x64xf32> to vector<16x64xbf16>
    %c0_29 = arith.constant 0 : index
    %c0_30 = arith.constant 0 : index
    %c0_31 = arith.constant 0 : index
    %65 = vector.load %arg7[%c0_29, %c0_30, %c0_31] : memref<1x16x64xbf16, #tpu.memory_space<vmem>>, vector<1x16x64xbf16>
    %66 = vector.shape_cast %65 : vector<1x16x64xbf16> to vector<16x64xbf16>
    %67 = vector.shape_cast %64 : vector<16x64xbf16> to vector<1x16x64xbf16>
    tpu.vector_store %arg7[%c0_29, %c0_30, %c0_31], %67 {strides = array<i32>} : memref<1x16x64xbf16, #tpu.memory_space<vmem>>, vector<1x16x64xbf16>,
    return
  }
  func.func @transform_0(%arg0: i32) -> (i32, i32, i32) {
    %c0_i32 = arith.constant 0 : i32
    %c0_i32_0 = arith.constant 0 : i32
    %c0_i32_1 = arith.constant 0 : i32
    return %arg0, %c0_i32, %c0_i32_0 : i32, i32, i32
  }
  func.func @transform_1(%arg0: i32) -> (i32, i32, i32) {
    %c0_i32 = arith.constant 0 : i32
    %c0_i32_0 = arith.constant 0 : i32
    %c0_i32_1 = arith.constant 0 : i32
    return %arg0, %c0_i32, %c0_i32_0 : i32, i32, i32
  }
  func.func @transform_2(%arg0: i32) -> (i32, i32, i32) {
    %c0_i32 = arith.constant 0 : i32
    %c0_i32_0 = arith.constant 0 : i32
    %c0_i32_1 = arith.constant 0 : i32
    return %arg0, %c0_i32, %c0_i32_0 : i32, i32, i32
  }
  func.func @transform_3(%arg0: i32) -> (i32, i32, i32) {
    %c0_i32 = arith.constant 0 : i32
    %c0_i32_0 = arith.constant 0 : i32
    %c0_i32_1 = arith.constant 0 : i32
    return %arg0, %c0_i32, %c0_i32_0 : i32, i32, i32
  }
  func.func @transform_4(%arg0: i32) -> (i32, i32) {
    %c0_i32 = arith.constant 0 : i32
    %c0_i32_0 = arith.constant 0 : i32
    %c0_i32_1 = arith.constant 0 : i32
    return %c0_i32, %c0_i32_0 : i32, i32
  }
  func.func @transform_5(%arg0: i32) -> (i32, i32) {
    %c0_i32 = arith.constant 0 : i32
    %c0_i32_0 = arith.constant 0 : i32
    %c0_i32_1 = arith.constant 0 : i32
    return %c0_i32, %c0_i32_0 : i32, i32
  }
  func.func @transform_6(%arg0: i32) -> (i32, i32, i32) {
    %c0_i32 = arith.constant 0 : i32
    %c0_i32_0 = arith.constant 0 : i32
    %c0_i32_1 = arith.constant 0 : i32
    return %arg0, %c0_i32, %c0_i32_0 : i32, i32, i32
  }
}

module attributes {stable_mosaic.version = 11 : i64} {
  func.func @_down_kernel(%arg0: i32, %arg1: memref<1x4x64xbf16, #tpu.memory_space<vmem>>, %arg2: memref<1x4x64xbf16, #tpu.memory_space<vmem>>, %arg3: memref<1x4x64xbf16, #tpu.memory_space<vmem>>, %arg4: memref<1x4x64xbf16, #tpu.memory_space<vmem>>, %arg5: memref<576x64xbf16, #tpu.memory_space<vmem>>, %arg6: memref<2x128xf32, #tpu.memory_space<vmem>>, %arg7: memref<1x4x128xbf16, #tpu.memory_space<vmem>>) attributes {dimension_semantics = [#tpu.dimension_semantics<parallel>], iteration_bounds = array<i64: 2>, scalar_prefetch = 0 : i64, scratch_operands = 0 : i64, tpu.core_type = #tpu.core_type<tc>, window_params = [{transform_indices = @transform_0, window_bounds = array<i64: 1, 4, 64>}, {transform_indices = @transform_1, window_bounds = array<i64: 1, 4, 64>}, {transform_indices = @transform_2, window_bounds = array<i64: 1, 4, 64>}, {transform_indices = @transform_3, window_bounds = array<i64: 1, 4, 64>}, {pipeline_mode = #tpu.pipeline_mode<synchronous>, transform_indices = @transform_4, window_bounds = array<i64: 576, 64>}, {pipeline_mode = #tpu.pipeline_mode<synchronous>, transform_indices = @transform_5, window_bounds = array<i64: 2, 128>}, {transform_indices = @transform_6, window_bounds = array<i64: 1, 4, 128>}]} {
    %c0 = arith.constant 0 : index
    %c0_0 = arith.constant 0 : index
    %c0_1 = arith.constant 0 : index
    %0 = vector.load %arg1[%c0, %c0_0, %c0_1] : memref<1x4x64xbf16, #tpu.memory_space<vmem>>, vector<1x4x64xbf16>
    %1 = vector.shape_cast %0 : vector<1x4x64xbf16> to vector<4x64xbf16>
    %c0_2 = arith.constant 0 : index
    %c0_3 = arith.constant 0 : index
    %c0_4 = arith.constant 0 : index
    %2 = vector.load %arg2[%c0_2, %c0_3, %c0_4] : memref<1x4x64xbf16, #tpu.memory_space<vmem>>, vector<1x4x64xbf16>
    %3 = vector.shape_cast %2 : vector<1x4x64xbf16> to vector<4x64xbf16>
    %c0_5 = arith.constant 0 : index
    %c0_6 = arith.constant 0 : index
    %c0_7 = arith.constant 0 : index
    %4 = vector.load %arg3[%c0_5, %c0_6, %c0_7] : memref<1x4x64xbf16, #tpu.memory_space<vmem>>, vector<1x4x64xbf16>
    %5 = vector.shape_cast %4 : vector<1x4x64xbf16> to vector<4x64xbf16>
    %c0_8 = arith.constant 0 : index
    %c0_9 = arith.constant 0 : index
    %c0_10 = arith.constant 0 : index
    %6 = vector.load %arg4[%c0_8, %c0_9, %c0_10] : memref<1x4x64xbf16, #tpu.memory_space<vmem>>, vector<1x4x64xbf16>
    %7 = vector.shape_cast %6 : vector<1x4x64xbf16> to vector<4x64xbf16>
    %8 = tpu.iota {dimensions = array<i32: 0>} : vector<4x64xi32>
    %c2_i32 = arith.constant 2 : i32
    %c0_i32 = arith.constant 0 : i32
    %9 = arith.cmpi eq, %c2_i32, %c0_i32 : i32
    %c1_i32 = arith.constant 1 : i32
    %10 = arith.select %9, %c1_i32, %c2_i32 : i32
    %11 = vector.broadcast %10 : i32 to vector<4x64xi32>
    %12 = arith.remsi %8, %11 : vector<4x64xi32>
    %c0_i32_11 = arith.constant 0 : i32
    %13 = vector.broadcast %c0_i32_11 : i32 to vector<4x64xi32>
    %14 = arith.cmpi ne, %12, %13 : vector<4x64xi32>
    %c0_i32_12 = arith.constant 0 : i32
    %15 = vector.broadcast %c0_i32_12 : i32 to vector<4x64xi32>
    %16 = arith.cmpi slt, %12, %15 : vector<4x64xi32>
    %c0_i32_13 = arith.constant 0 : i32
    %17 = arith.cmpi slt, %10, %c0_i32_13 : i32
    %18 = vector.broadcast %17 : i1 to vector<4x64xi1>
    %19 = vector.broadcast %18 : vector<4x64xi1> to vector<4x64xi1>
    %20 = arith.xori %16, %19 : vector<4x64xi1>
    %21 = arith.andi %20, %14 : vector<4x64xi1>
    %22 = vector.broadcast %10 : i32 to vector<4x64xi32>
    %23 = arith.addi %12, %22 : vector<4x64xi32>
    %24 = arith.select %21, %23, %12 : vector<4x64xi1>, vector<4x64xi32>
    %c1_i32_14 = arith.constant 1 : i32
    %25 = vector.broadcast %c1_i32_14 : i32 to vector<4x64xi32>
    %26 = arith.cmpi sge, %24, %25 : vector<4x64xi32>
    %cst = arith.constant 0.000000e+00 : bf16
    %27 = vector.broadcast %cst : bf16 to vector<3x64xbf16>
    %28 = vector.extract_strided_slice %7 {offsets = [0, 0], sizes = [1, 64], strides = [1, 1]} : vector<4x64xbf16> to vector<1x64xbf16>
    %29 = tpu.concatenate %27, %28 in 0 : vector<3x64xbf16>, vector<1x64xbf16> -> vector<4x64xbf16>
    %cst_15 = arith.constant 0.000000e+00 : bf16
    %30 = vector.broadcast %cst_15 : bf16 to vector<4x64xbf16>
    %31 = arith.select %26, %29, %30 : vector<4x64xi1>, vector<4x64xbf16>
    %cst_16 = arith.constant 0.000000e+00 : bf16
    %32 = vector.broadcast %cst_16 : bf16 to vector<2x64xbf16>
    %33 = vector.extract_strided_slice %5 {offsets = [0, 0], sizes = [2, 64], strides = [1, 1]} : vector<4x64xbf16> to vector<2x64xbf16>
    %34 = tpu.concatenate %32, %33 in 0 : vector<2x64xbf16>, vector<2x64xbf16> -> vector<4x64xbf16>
    %cst_17 = arith.constant 0.000000e+00 : bf16
    %35 = vector.broadcast %cst_17 : bf16 to vector<2x64xbf16>
    %36 = vector.extract_strided_slice %7 {offsets = [0, 0], sizes = [2, 64], strides = [1, 1]} : vector<4x64xbf16> to vector<2x64xbf16>
    %37 = tpu.concatenate %35, %36 in 0 : vector<2x64xbf16>, vector<2x64xbf16> -> vector<4x64xbf16>
    %cst_18 = arith.constant 0.000000e+00 : bf16
    %38 = vector.broadcast %cst_18 : bf16 to vector<1x64xbf16>
    %39 = vector.extract_strided_slice %3 {offsets = [0, 0], sizes = [3, 64], strides = [1, 1]} : vector<4x64xbf16> to vector<3x64xbf16>
    %40 = tpu.concatenate %38, %39 in 0 : vector<1x64xbf16>, vector<3x64xbf16> -> vector<4x64xbf16>
    %cst_19 = arith.constant 0.000000e+00 : bf16
    %41 = vector.broadcast %cst_19 : bf16 to vector<4x64xbf16>
    %42 = arith.select %26, %40, %41 : vector<4x64xi1>, vector<4x64xbf16>
    %cst_20 = arith.constant 0.000000e+00 : bf16
    %43 = vector.broadcast %cst_20 : bf16 to vector<1x64xbf16>
    %44 = vector.extract_strided_slice %7 {offsets = [0, 0], sizes = [3, 64], strides = [1, 1]} : vector<4x64xbf16> to vector<3x64xbf16>
    %45 = tpu.concatenate %43, %44 in 0 : vector<1x64xbf16>, vector<3x64xbf16> -> vector<4x64xbf16>
    %cst_21 = arith.constant 0.000000e+00 : bf16
    %46 = vector.broadcast %cst_21 : bf16 to vector<4x64xbf16>
    %47 = arith.select %26, %45, %46 : vector<4x64xi1>, vector<4x64xbf16>
    %48 = tpu.concatenate %31, %34, %37, %42, %1, %3, %47, %5, %7 in 1 : vector<4x64xbf16>, vector<4x64xbf16>, vector<4x64xbf16>, vector<4x64xbf16>, vector<4x64xbf16>, vector<4x64xbf16>, vector<4x64xbf16>, vector<4x64xbf16>, vector<4x64xbf16> -> vector<4x576xbf16>
    %c0_22 = arith.constant 0 : index
    %c0_23 = arith.constant 0 : index
    %49 = vector.load %arg5[%c0_22, %c0_23] : memref<576x64xbf16, #tpu.memory_space<vmem>>, vector<576x64xbf16>
    %cst_24 = arith.constant dense<0.000000e+00> : vector<4x64xf32>
    %50 = tpu.matmul %48, %49, %cst_24 {dimension_numbers = #tpu.dot_dimension_numbers<[1], [0], [0], [1], [0, 0, 1, 1], [], []>} : vector<4x576xbf16>, vector<576x64xbf16>, vector<4x64xf32> -> vector<4x64xf32>
    %51 = arith.maximumf %1, %3 : vector<4x64xbf16>
    %52 = arith.maximumf %5, %7 : vector<4x64xbf16>
    %53 = arith.maximumf %51, %52 : vector<4x64xbf16>
    %54 = arith.extf %53 : vector<4x64xbf16> to vector<4x64xf32>
    %55 = tpu.concatenate %50, %54 in 1 : vector<4x64xf32>, vector<4x64xf32> -> vector<4x128xf32>
    %c0_25 = arith.constant 0 : index
    %c0_26 = arith.constant 0 : index
    %56 = vector.load %arg6[%c0_25, %c0_26] : memref<2x128xf32, #tpu.memory_space<vmem>>, vector<1x128xf32>
    %57 = vector.broadcast %56 : vector<1x128xf32> to vector<4x128xf32>
    %58 = arith.mulf %55, %57 : vector<4x128xf32>
    %c1 = arith.constant 1 : index
    %c0_27 = arith.constant 0 : index
    %59 = vector.load %arg6[%c1, %c0_27] : memref<2x128xf32, #tpu.memory_space<vmem>>, vector<1x128xf32>
    %60 = vector.broadcast %59 : vector<1x128xf32> to vector<4x128xf32>
    %61 = arith.addf %58, %60 : vector<4x128xf32>
    %cst_28 = arith.constant 0.000000e+00 : f32
    %62 = vector.broadcast %cst_28 : f32 to vector<4x128xf32>
    %63 = arith.maximumf %61, %62 : vector<4x128xf32>
    %64 = arith.truncf %63 : vector<4x128xf32> to vector<4x128xbf16>
    %c0_29 = arith.constant 0 : index
    %c0_30 = arith.constant 0 : index
    %c0_31 = arith.constant 0 : index
    %65 = vector.load %arg7[%c0_29, %c0_30, %c0_31] : memref<1x4x128xbf16, #tpu.memory_space<vmem>>, vector<1x4x128xbf16>
    %66 = vector.shape_cast %65 : vector<1x4x128xbf16> to vector<4x128xbf16>
    %67 = vector.shape_cast %64 : vector<4x128xbf16> to vector<1x4x128xbf16>
    tpu.vector_store %arg7[%c0_29, %c0_30, %c0_31], %67 {strides = array<i32>} : memref<1x4x128xbf16, #tpu.memory_space<vmem>>, vector<1x4x128xbf16>,
    return
  }
  func.func @transform_0(%arg0: i32) -> (i32, i32, i32) {
    %c0_i32 = arith.constant 0 : i32
    %c0_i32_0 = arith.constant 0 : i32
    %c0_i32_1 = arith.constant 0 : i32
    return %arg0, %c0_i32, %c0_i32_0 : i32, i32, i32
  }
  func.func @transform_1(%arg0: i32) -> (i32, i32, i32) {
    %c0_i32 = arith.constant 0 : i32
    %c0_i32_0 = arith.constant 0 : i32
    %c0_i32_1 = arith.constant 0 : i32
    return %arg0, %c0_i32, %c0_i32_0 : i32, i32, i32
  }
  func.func @transform_2(%arg0: i32) -> (i32, i32, i32) {
    %c0_i32 = arith.constant 0 : i32
    %c0_i32_0 = arith.constant 0 : i32
    %c0_i32_1 = arith.constant 0 : i32
    return %arg0, %c0_i32, %c0_i32_0 : i32, i32, i32
  }
  func.func @transform_3(%arg0: i32) -> (i32, i32, i32) {
    %c0_i32 = arith.constant 0 : i32
    %c0_i32_0 = arith.constant 0 : i32
    %c0_i32_1 = arith.constant 0 : i32
    return %arg0, %c0_i32, %c0_i32_0 : i32, i32, i32
  }
  func.func @transform_4(%arg0: i32) -> (i32, i32) {
    %c0_i32 = arith.constant 0 : i32
    %c0_i32_0 = arith.constant 0 : i32
    %c0_i32_1 = arith.constant 0 : i32
    return %c0_i32, %c0_i32_0 : i32, i32
  }
  func.func @transform_5(%arg0: i32) -> (i32, i32) {
    %c0_i32 = arith.constant 0 : i32
    %c0_i32_0 = arith.constant 0 : i32
    %c0_i32_1 = arith.constant 0 : i32
    return %c0_i32, %c0_i32_0 : i32, i32
  }
  func.func @transform_6(%arg0: i32) -> (i32, i32, i32) {
    %c0_i32 = arith.constant 0 : i32
    %c0_i32_0 = arith.constant 0 : i32
    %c0_i32_1 = arith.constant 0 : i32
    return %arg0, %c0_i32, %c0_i32_0 : i32, i32, i32
  }
}

module attributes {stable_mosaic.version = 11 : i64} {
  func.func @_nb_kernel(%arg0: i32, %arg1: memref<1x4x128xbf16, #tpu.memory_space<vmem>>, %arg2: memref<384x128xbf16, #tpu.memory_space<vmem>>, %arg3: memref<384x128xbf16, #tpu.memory_space<vmem>>, %arg4: memref<384x128xbf16, #tpu.memory_space<vmem>>, %arg5: memref<384x128xbf16, #tpu.memory_space<vmem>>, %arg6: memref<6x128xf32, #tpu.memory_space<vmem>>, %arg7: memref<1x4x128xbf16, #tpu.memory_space<vmem>>) attributes {dimension_semantics = [#tpu.dimension_semantics<parallel>], iteration_bounds = array<i64: 2>, scalar_prefetch = 0 : i64, scratch_operands = 0 : i64, tpu.core_type = #tpu.core_type<tc>, window_params = [{transform_indices = @transform_0, window_bounds = array<i64: 1, 4, 128>}, {pipeline_mode = #tpu.pipeline_mode<synchronous>, transform_indices = @transform_1, window_bounds = array<i64: 384, 128>}, {pipeline_mode = #tpu.pipeline_mode<synchronous>, transform_indices = @transform_2, window_bounds = array<i64: 384, 128>}, {pipeline_mode = #tpu.pipeline_mode<synchronous>, transform_indices = @transform_3, window_bounds = array<i64: 384, 128>}, {pipeline_mode = #tpu.pipeline_mode<synchronous>, transform_indices = @transform_4, window_bounds = array<i64: 384, 128>}, {pipeline_mode = #tpu.pipeline_mode<synchronous>, transform_indices = @transform_5, window_bounds = array<i64: 6, 128>}, {transform_indices = @transform_6, window_bounds = array<i64: 1, 4, 128>}]} {
    %c0 = arith.constant 0 : index
    %c0_0 = arith.constant 0 : index
    %c0_1 = arith.constant 0 : index
    %0 = vector.load %arg1[%c0, %c0_0, %c0_1] : memref<1x4x128xbf16, #tpu.memory_space<vmem>>, vector<1x4x128xbf16>
    %1 = vector.shape_cast %0 : vector<1x4x128xbf16> to vector<4x128xbf16>
    %2 = tpu.iota {dimensions = array<i32: 0>} : vector<4x128xi32>
    %c2_i32 = arith.constant 2 : i32
    %c0_i32 = arith.constant 0 : i32
    %3 = arith.cmpi eq, %c2_i32, %c0_i32 : i32
    %c1_i32 = arith.constant 1 : i32
    %4 = arith.select %3, %c1_i32, %c2_i32 : i32
    %5 = vector.broadcast %4 : i32 to vector<4x128xi32>
    %6 = arith.remsi %2, %5 : vector<4x128xi32>
    %c0_i32_2 = arith.constant 0 : i32
    %7 = vector.broadcast %c0_i32_2 : i32 to vector<4x128xi32>
    %8 = arith.cmpi ne, %6, %7 : vector<4x128xi32>
    %c0_i32_3 = arith.constant 0 : i32
    %9 = vector.broadcast %c0_i32_3 : i32 to vector<4x128xi32>
    %10 = arith.cmpi slt, %6, %9 : vector<4x128xi32>
    %c0_i32_4 = arith.constant 0 : i32
    %11 = arith.cmpi slt, %4, %c0_i32_4 : i32
    %12 = vector.broadcast %11 : i1 to vector<4x128xi1>
    %13 = vector.broadcast %12 : vector<4x128xi1> to vector<4x128xi1>
    %14 = arith.xori %10, %13 : vector<4x128xi1>
    %15 = arith.andi %14, %8 : vector<4x128xi1>
    %16 = vector.broadcast %4 : i32 to vector<4x128xi32>
    %17 = arith.addi %6, %16 : vector<4x128xi32>
    %18 = arith.select %15, %17, %6 : vector<4x128xi1>, vector<4x128xi32>
    %c0_5 = arith.constant 0 : index
    %c0_6 = arith.constant 0 : index
    %19 = vector.load %arg6[%c0_5, %c0_6] : memref<6x128xf32, #tpu.memory_space<vmem>>, vector<1x128xf32>
    %c1 = arith.constant 1 : index
    %c0_7 = arith.constant 0 : index
    %20 = vector.load %arg6[%c1, %c0_7] : memref<6x128xf32, #tpu.memory_space<vmem>>, vector<1x128xf32>
    %c2 = arith.constant 2 : index
    %c0_8 = arith.constant 0 : index
    %21 = vector.load %arg6[%c2, %c0_8] : memref<6x128xf32, #tpu.memory_space<vmem>>, vector<1x128xf32>
    %c3 = arith.constant 3 : index
    %c0_9 = arith.constant 0 : index
    %22 = vector.load %arg6[%c3, %c0_9] : memref<6x128xf32, #tpu.memory_space<vmem>>, vector<1x128xf32>
    %c4 = arith.constant 4 : index
    %c0_10 = arith.constant 0 : index
    %23 = vector.load %arg6[%c4, %c0_10] : memref<6x128xf32, #tpu.memory_space<vmem>>, vector<1x128xf32>
    %c5 = arith.constant 5 : index
    %c0_11 = arith.constant 0 : index
    %24 = vector.load %arg6[%c5, %c0_11] : memref<6x128xf32, #tpu.memory_space<vmem>>, vector<1x128xf32>
    %cst = arith.constant 0.000000e+00 : bf16
    %25 = vector.broadcast %cst : bf16 to vector<2x128xbf16>
    %26 = vector.extract_strided_slice %1 {offsets = [0, 0], sizes = [2, 128], strides = [1, 1]} : vector<4x128xbf16> to vector<2x128xbf16>
    %27 = tpu.concatenate %25, %26 in 0 : vector<2x128xbf16>, vector<2x128xbf16> -> vector<4x128xbf16>
    %28 = vector.extract_strided_slice %1 {offsets = [2, 0], sizes = [2, 128], strides = [1, 1]} : vector<4x128xbf16> to vector<2x128xbf16>
    %cst_12 = arith.constant 0.000000e+00 : bf16
    %29 = vector.broadcast %cst_12 : bf16 to vector<2x128xbf16>
    %30 = tpu.concatenate %28, %29 in 0 : vector<2x128xbf16>, vector<2x128xbf16> -> vector<4x128xbf16>
    %31 = tpu.concatenate %27, %1, %30 in 1 : vector<4x128xbf16>, vector<4x128xbf16>, vector<4x128xbf16> -> vector<4x384xbf16>
    %c0_13 = arith.constant 0 : index
    %c0_14 = arith.constant 0 : index
    %32 = vector.load %arg2[%c0_13, %c0_14] : memref<384x128xbf16, #tpu.memory_space<vmem>>, vector<384x128xbf16>
    %cst_15 = arith.constant dense<0.000000e+00> : vector<4x128xf32>
    %33 = tpu.matmul %31, %32, %cst_15 {dimension_numbers = #tpu.dot_dimension_numbers<[1], [0], [0], [1], [0, 0, 1, 1], [], []>} : vector<4x384xbf16>, vector<384x128xbf16>, vector<4x128xf32> -> vector<4x128xf32>
    %34 = vector.broadcast %19 : vector<1x128xf32> to vector<4x128xf32>
    %35 = arith.addf %33, %34 : vector<4x128xf32>
    %cst_16 = arith.constant 0.000000e+00 : f32
    %36 = vector.broadcast %cst_16 : f32 to vector<4x128xf32>
    %37 = arith.maximumf %35, %36 : vector<4x128xf32>
    %38 = arith.truncf %37 : vector<4x128xf32> to vector<4x128xbf16>
    %c1_i32_17 = arith.constant 1 : i32
    %39 = vector.broadcast %c1_i32_17 : i32 to vector<4x128xi32>
    %40 = arith.cmpi sge, %18, %39 : vector<4x128xi32>
    %cst_18 = arith.constant 0.000000e+00 : bf16
    %41 = vector.broadcast %cst_18 : bf16 to vector<1x128xbf16>
    %42 = vector.extract_strided_slice %38 {offsets = [0, 0], sizes = [3, 128], strides = [1, 1]} : vector<4x128xbf16> to vector<3x128xbf16>
    %43 = tpu.concatenate %41, %42 in 0 : vector<1x128xbf16>, vector<3x128xbf16> -> vector<4x128xbf16>
    %cst_19 = arith.constant 0.000000e+00 : bf16
    %44 = vector.broadcast %cst_19 : bf16 to vector<4x128xbf16>
    %45 = arith.select %40, %43, %44 : vector<4x128xi1>, vector<4x128xbf16>
    %c1_i32_20 = arith.constant 1 : i32
    %46 = vector.broadcast %c1_i32_20 : i32 to vector<4x128xi32>
    %47 = arith.cmpi slt, %18, %46 : vector<4x128xi32>
    %48 = vector.extract_strided_slice %38 {offsets = [1, 0], sizes = [3, 128], strides = [1, 1]} : vector<4x128xbf16> to vector<3x128xbf16>
    %cst_21 = arith.constant 0.000000e+00 : bf16
    %49 = vector.broadcast %cst_21 : bf16 to vector<1x128xbf16>
    %50 = tpu.concatenate %48, %49 in 0 : vector<3x128xbf16>, vector<1x128xbf16> -> vector<4x128xbf16>
    %cst_22 = arith.constant 0.000000e+00 : bf16
    %51 = vector.broadcast %cst_22 : bf16 to vector<4x128xbf16>
    %52 = arith.select %47, %50, %51 : vector<4x128xi1>, vector<4x128xbf16>
    %53 = tpu.concatenate %45, %38, %52 in 1 : vector<4x128xbf16>, vector<4x128xbf16>, vector<4x128xbf16> -> vector<4x384xbf16>
    %c0_23 = arith.constant 0 : index
    %c0_24 = arith.constant 0 : index
    %54 = vector.load %arg3[%c0_23, %c0_24] : memref<384x128xbf16, #tpu.memory_space<vmem>>, vector<384x128xbf16>
    %cst_25 = arith.constant dense<0.000000e+00> : vector<4x128xf32>
    %55 = tpu.matmul %53, %54, %cst_25 {dimension_numbers = #tpu.dot_dimension_numbers<[1], [0], [0], [1], [0, 0, 1, 1], [], []>} : vector<4x384xbf16>, vector<384x128xbf16>, vector<4x128xf32> -> vector<4x128xf32>
    %56 = vector.broadcast %20 : vector<1x128xf32> to vector<4x128xf32>
    %57 = arith.mulf %55, %56 : vector<4x128xf32>
    %58 = vector.broadcast %21 : vector<1x128xf32> to vector<4x128xf32>
    %59 = arith.addf %57, %58 : vector<4x128xf32>
    %cst_26 = arith.constant 0.000000e+00 : f32
    %60 = vector.broadcast %cst_26 : f32 to vector<4x128xf32>
    %61 = arith.maximumf %59, %60 : vector<4x128xf32>
    %62 = arith.truncf %61 : vector<4x128xf32> to vector<4x128xbf16>
    %cst_27 = arith.constant 0.000000e+00 : bf16
    %63 = vector.broadcast %cst_27 : bf16 to vector<4x128xbf16>
    %cst_28 = arith.constant 0.000000e+00 : bf16
    %64 = vector.broadcast %cst_28 : bf16 to vector<4x128xbf16>
    %65 = tpu.concatenate %63, %62, %64 in 1 : vector<4x128xbf16>, vector<4x128xbf16>, vector<4x128xbf16> -> vector<4x384xbf16>
    %c0_29 = arith.constant 0 : index
    %c0_30 = arith.constant 0 : index
    %66 = vector.load %arg4[%c0_29, %c0_30] : memref<384x128xbf16, #tpu.memory_space<vmem>>, vector<384x128xbf16>
    %cst_31 = arith.constant dense<0.000000e+00> : vector<4x128xf32>
    %67 = tpu.matmul %65, %66, %cst_31 {dimension_numbers = #tpu.dot_dimension_numbers<[1], [0], [0], [1], [0, 0, 1, 1], [], []>} : vector<4x384xbf16>, vector<384x128xbf16>, vector<4x128xf32> -> vector<4x128xf32>
    %68 = vector.broadcast %22 : vector<1x128xf32> to vector<4x128xf32>
    %69 = arith.addf %67, %68 : vector<4x128xf32>
    %cst_32 = arith.constant 0.000000e+00 : f32
    %70 = vector.broadcast %cst_32 : f32 to vector<4x128xf32>
    %71 = arith.maximumf %69, %70 : vector<4x128xf32>
    %72 = arith.truncf %71 : vector<4x128xf32> to vector<4x128xbf16>
    %cst_33 = arith.constant 0.000000e+00 : bf16
    %73 = vector.broadcast %cst_33 : bf16 to vector<4x128xbf16>
    %cst_34 = arith.constant 0.000000e+00 : bf16
    %74 = vector.broadcast %cst_34 : bf16 to vector<4x128xbf16>
    %75 = tpu.concatenate %73, %72, %74 in 1 : vector<4x128xbf16>, vector<4x128xbf16>, vector<4x128xbf16> -> vector<4x384xbf16>
    %c0_35 = arith.constant 0 : index
    %c0_36 = arith.constant 0 : index
    %76 = vector.load %arg5[%c0_35, %c0_36] : memref<384x128xbf16, #tpu.memory_space<vmem>>, vector<384x128xbf16>
    %cst_37 = arith.constant dense<0.000000e+00> : vector<4x128xf32>
    %77 = tpu.matmul %75, %76, %cst_37 {dimension_numbers = #tpu.dot_dimension_numbers<[1], [0], [0], [1], [0, 0, 1, 1], [], []>} : vector<4x384xbf16>, vector<384x128xbf16>, vector<4x128xf32> -> vector<4x128xf32>
    %78 = vector.broadcast %23 : vector<1x128xf32> to vector<4x128xf32>
    %79 = arith.mulf %77, %78 : vector<4x128xf32>
    %80 = vector.broadcast %24 : vector<1x128xf32> to vector<4x128xf32>
    %81 = arith.addf %79, %80 : vector<4x128xf32>
    %82 = arith.extf %1 : vector<4x128xbf16> to vector<4x128xf32>
    %83 = arith.addf %81, %82 : vector<4x128xf32>
    %cst_38 = arith.constant 0.000000e+00 : f32
    %84 = vector.broadcast %cst_38 : f32 to vector<4x128xf32>
    %85 = arith.maximumf %83, %84 : vector<4x128xf32>
    %86 = arith.truncf %85 : vector<4x128xf32> to vector<4x128xbf16>
    %c0_39 = arith.constant 0 : index
    %c0_40 = arith.constant 0 : index
    %c0_41 = arith.constant 0 : index
    %87 = vector.load %arg7[%c0_39, %c0_40, %c0_41] : memref<1x4x128xbf16, #tpu.memory_space<vmem>>, vector<1x4x128xbf16>
    %88 = vector.shape_cast %87 : vector<1x4x128xbf16> to vector<4x128xbf16>
    %89 = vector.shape_cast %86 : vector<4x128xbf16> to vector<1x4x128xbf16>
    tpu.vector_store %arg7[%c0_39, %c0_40, %c0_41], %89 {strides = array<i32>} : memref<1x4x128xbf16, #tpu.memory_space<vmem>>, vector<1x4x128xbf16>,
    return
  }
  func.func @transform_0(%arg0: i32) -> (i32, i32, i32) {
    %c0_i32 = arith.constant 0 : i32
    %c0_i32_0 = arith.constant 0 : i32
    %c0_i32_1 = arith.constant 0 : i32
    return %arg0, %c0_i32, %c0_i32_0 : i32, i32, i32
  }
  func.func @transform_1(%arg0: i32) -> (i32, i32) {
    %c0_i32 = arith.constant 0 : i32
    %c0_i32_0 = arith.constant 0 : i32
    %c0_i32_1 = arith.constant 0 : i32
    return %c0_i32, %c0_i32_0 : i32, i32
  }
  func.func @transform_2(%arg0: i32) -> (i32, i32) {
    %c0_i32 = arith.constant 0 : i32
    %c0_i32_0 = arith.constant 0 : i32
    %c0_i32_1 = arith.constant 0 : i32
    return %c0_i32, %c0_i32_0 : i32, i32
  }
  func.func @transform_3(%arg0: i32) -> (i32, i32) {
    %c0_i32 = arith.constant 0 : i32
    %c0_i32_0 = arith.constant 0 : i32
    %c0_i32_1 = arith.constant 0 : i32
    return %c0_i32, %c0_i32_0 : i32, i32
  }
  func.func @transform_4(%arg0: i32) -> (i32, i32) {
    %c0_i32 = arith.constant 0 : i32
    %c0_i32_0 = arith.constant 0 : i32
    %c0_i32_1 = arith.constant 0 : i32
    return %c0_i32, %c0_i32_0 : i32, i32
  }
  func.func @transform_5(%arg0: i32) -> (i32, i32) {
    %c0_i32 = arith.constant 0 : i32
    %c0_i32_0 = arith.constant 0 : i32
    %c0_i32_1 = arith.constant 0 : i32
    return %c0_i32, %c0_i32_0 : i32, i32
  }
  func.func @transform_6(%arg0: i32) -> (i32, i32, i32) {
    %c0_i32 = arith.constant 0 : i32
    %c0_i32_0 = arith.constant 0 : i32
    %c0_i32_1 = arith.constant 0 : i32
    return %arg0, %c0_i32, %c0_i32_0 : i32, i32, i32
  }
}

</mosaic_0001>

<bundles_post_ra>
// kernel: _lambda_.17
= control target key start
LH: loop header
LB: loop body
LE: loop exit
PB: predicated region body
PF: predicated region fallthrough
CT: control target
= control target key end

     0   :  { %s840_s21 = smov 0   ;;  %s955_s0 = inlined_call_operand.vmem [shape: bf16[2,16,16], index: 0, kind: input, shape index: {}]   ;;  %s956_s1 = inlined_call_operand.vmem [shape: bf16[2,16,16], index: 1, kind: input, shape index: {}]   ;;  %s957_s2 = inlined_call_operand.vmem [shape: bf16[2,16,16], index: 2, kind: input, shape index: {}]   ;;  %s958_s3 = inlined_call_operand.vmem [shape: bf16[2,16,16], index: 3, kind: input, shape index: {}]   ;;  %s959_s4 = inlined_call_operand.vmem [shape: bf16[144,48], index: 4, kind: input, shape index: {}]   ;;  %s960_s5 = inlined_call_operand.vmem [shape: f32[2,64], index: 5, kind: input, shape index: {}]   ;;  %s961_s6 = inlined_call_operand.vmem [shape: bf16[2,16,64], index: 6, kind: output, shape index: {}]  }
   0x1 LB: > { %s712_s22 = sadd.s32 4294967295, %s795_s21   ;;  %p716_p0 = scmp.ge.s32.totalorder %s795_s21, 1  ;;  %s795_s21 = sphi %s840_s21, %s16_s21  }
   0x2   : > { %p242_p1 = scmp.lt.s32.totalorder %s795_s21, 3 }
   0x4   : > { %p243_p2 = pnand %p716_p0, %p242_p1 }
   0x5   : > { %p287_p3 = scmp.lt.s32.totalorder (!%p243_p2), %s712_s22, 1  ;;  %v323_v0 = vlaneseq (!%p243_p2)  ;;  %v780_v1 = vld [vmem:[%s959_s4] sm:$0xff] (!%p243_p2)   ;;  %vm385_vm0 = vcmask (!%p243_p2), 1041408   ;;  %v797_v2 = vmov (!%p243_p2), 0   ;;  %vm406_vm1 = vsmask.f32 (!%p243_p2), 256 }
   0x6   : > { %246 = sbr.rel (%p243_p2) target bundleno = 375 (0x177), region = 44  ;;  %535 = vmatprep.subr.bf16.mxu0 (!%p243_p2), %v797_v2  ;;  %v781_v4 = vld [vmem:[%s959_s4 + $0x8] sm:$0xff] (!%p243_p2)   ;;  %v782_v7 = vld [vmem:[%s959_s4 + $0x10] sm:$0xff] (!%p243_p2)   ;;  %vm405_vm2 = vcmask (!%p243_p2), 1040384   ;;  %s798_s18 = smov (!%p243_p2), 64   ;;  %v783_v27 = vld [vmem:[%s959_s4 + $0x18] sm:$0xff] (!%p243_p2)  }
   0x7   : > { %v324_v3 = vshrl.u32 (!%p243_p2), %v323_v0, 7  ;;  %536 = vmatpush1.bf16.msra.mxu0 (!%p243_p2), %v780_v1  ;;  %vm898_vm7 = vmand (!%p243_p2), %vm405_vm2, %vm406_vm1  ;;  %v784_v43 = vld [vmem:[%s959_s4 + $0x20] sm:$0xff] (!%p243_p2)   ;;  %s800_s25 = smov (!%p243_p2), 32   ;;  %vm366_vm9 = vcmask (!%p243_p2), 1042432   ;;  %vm367_vm10 = vsmask.f32 (!%p243_p2), 2304 }
   0x8   : > { %537 = vmatprep.subr.bf16.mxu0 (!%p243_p2), %v797_v2  ;;  %vm438_vm11 = vcmask (!%p243_p2), 130048   ;;  %vm368_vm12 = vmand (!%p243_p2), %vm366_vm9, %vm367_vm10  ;;  %v785_v53 = vld [vmem:[%s959_s4 + $0x28] sm:$0xff] (!%p243_p2)   ;;  %s801_s29 = smov (!%p243_p2), 48   ;;  %s802_s30 = smov (!%p243_p2), 80   ;;  %v786_v59 = vld [vmem:[%s959_s4 + $0x30] sm:$0xff] (!%p243_p2)   ;;  %vm442_vm13 = vcmask (!%p243_p2), 261120  }
   0x9   : > { %v325_v5 = vadd.s32 (!%p243_p2), 8, %v324_v3  ;;  %v330_v6 = vand.u32 (!%p243_p2), 3, %v324_v3  ;;  %s803_s9 = smov (!%p243_p2), 96   ;;  %s804_s10 = smov (!%p243_p2), 112   ;;  %v787_v61 = vld [vmem:[%s959_s4 + $0x38] sm:$0xff] (!%p243_p2)   ;;  %v788_v62 = vld [vmem:[%s959_s4 + $0x40] sm:$0xff] (!%p243_p2)  }
   0xa   : > { %vm445_vm14 = vcmask (!%p243_p2), 392192   ;;  %vm448_vm15 = vcmask (!%p243_p2), 523264   ;;  %vm454_vm1 = vcmask (!%p243_p2), 785408   ;;  %vm457_vm2 = vcmask (!%p243_p2), 916480  }
   0xb   : > { %538 = vmatpush1.bf16.msra.mxu0 (!%p243_p2), %v781_v4  ;;  %v337_v19 = vand.u32 (!%p243_p2), 3, %v325_v5  ;;  %vm350_vm3 = vcmp.ge.s32.totalorder (!%p243_p2), %v330_v6, 1 }
   0xc   : > { %539 = vmatprep.subr.bf16.mxu0 (!%p243_p2), %v797_v2  ;;  %vm370_vm5 = vmpackc.low (!%p243_p2), %vm350_vm3, %vm350_vm3  ;;  %vm618_vm3 = vcmask (!%p243_p2), 519168  }
   0xd   : > { %s969_s22 = smov (!%p287_p3, %s712_s22), 1  ;;  %vm881_vm4 = vcmp.ge.s32.totalorder %v337_v19, 1  ;;  %v372_v32 = vsel %vm370_vm5, 65537, %v797_v2  ;;  %v743_v19 = vld [vmem:[%s960_s5 + $0x1] ss:$0 sm:$0xff] }
   0xe   : > { %s856_s27 = sshll.u32 %s969_s22, 3  ;;  %s799_s22 = smov 16   ;;  %vm371_vm6 = vmpackc.low %vm881_vm4, %vm881_vm4 }
   0xf   : > { %s301_s8 = scalar_lea.vmem %s957_s2, %s856_s27  ;;  %s306_s11 = scalar_lea.vmem %s958_s3, %s856_s27  ;;  %540 = vmatpush1.bf16.msra.mxu0 %v782_v7  ;;  %v373_v36 = vsel %vm371_vm6, 65537, %v797_v2 }
  0x10   : > { %v319_v8 = vld [vmem:[%s301_s8] sm:$0xf]  ;;  %v320_v9 = vld [vmem:[%s301_s8 + $0x4] sm:$0xf]  ;;  %s291_s14 = scalar_lea.vmem %s955_s0, %s856_s27  ;;  %s296_s17 = scalar_lea.vmem %s956_s1, %s856_s27  ;;  %541 = vmatprep.subr.bf16.mxu0 %v797_v2  ;;  %v728_v41 = vcombine.low %v372_v32, %v373_v36 }
  0x11   : > { %v321_v10 = vld [vmem:[%s306_s11] sm:$0xf]  ;;  %v322_v11 = vld [vmem:[%s306_s11 + $0x4] sm:$0xf]  ;;  %v877_v12 = vcombine.low %v319_v8, %v320_v9 }
  0x12   : > { %v315_v13 = vld [vmem:[%s291_s14] sm:$0xf]  ;;  %v316_v14 = vld [vmem:[%s291_s14 + $0x4] sm:$0xf]  ;;  %v727_v15 = vcombine.low %v321_v10, %v322_v11  ;;  %v578_v21 = vmax.bf16 %v321_v10, %v319_v8  ;;  %v579_v29 = vmax.bf16 %v322_v11, %v320_v9  ;;  %vm906_vm8 = vcmp.ne.s16.totalorder %v728_v41, 0 }
  0x13   : > { %v317_v16 = vld [vmem:[%s296_s17] sm:$0xf]  ;;  %v318_v17 = vld [vmem:[%s296_s17 + $0x4] sm:$0xf]  ;;  %v731_v18 = vcombine.low %v315_v13, %v316_v14  ;;  %v384_v20 = vrot.slane %v877_v12, 6  ;;  %542 = vmatpush1.bf16.msra.mxu0 %v783_v27 }
  0x14   : > { %v730_v22 = vcombine.low %v317_v16, %v318_v17  ;;  %v576_v23 = vmax.bf16 %v317_v16, %v315_v13  ;;  %v389_v24 = vrot.slane %v727_v15, 6  ;;  %v358_v26 = vshrl.u32 %v727_v15, 16  ;;  %543 = vmatprep.subr.bf16.mxu0 %v797_v2  ;;  %741 = vmatprep.mubr.msk.bf16.mxu0 %vm438_vm11, %v727_v15  ;;  %v742_v16 = vld [vmem:[%s960_s5] ss:$0 sm:$0xff] }
  0x15   : > { %429 = vrot.lane.b32.xlu1 %v731_v18, %s798_s18  ;;  %v388_v28 = vsel %vm385_vm0, 0, %v384_v20  ;;  %v577_v30 = vmax.bf16 %v318_v17, %v316_v14  ;;  %v361_v34 = vshll.u32 %v727_v15, 16 }
  0x16   : > { %v398_v31 = vshrl.u32 %v730_v22, 16  ;;  %416 = vrot.lane.b32.xlu0 %v388_v28, %s799_s22  ;;  %v401_v33 = vshll.u32 %v730_v22, 16  ;;  %v391_v35 = vsel %vm385_vm0, 0, %v389_v24  ;;  %v410_v39 = vrot.slane %v358_v26, 7  ;;  %s311_s22 = scalar_lea.vmem %s961_s6, %s856_s27 }
  0x17   : > { %v580_v40 = vmax.bf16 %v578_v21, %v576_v23  ;;  %v363_v42 = vrot.slane %v361_v34, 6  ;;  %v581_v44 = vmax.bf16 %v579_v29, %v577_v30  ;;  %v360_v47 = vrot.slane %v358_v26, 5  ;;  %544 = vmatpush1.bf16.msra.mxu0 %v784_v43 }
  0x18   : > { %v400_v37 = vrot.slane %v398_v31, 7  ;;  %v411_v46 = vor.u32 %v410_v39, %v361_v34  ;;  %545 = vmatprep.subr.bf16.mxu0 %v797_v2  ;;  %vm451_vm0 = vcmask 654336  }
  0x19   : > { %v364_v51 = vor.u32 %v363_v42, %v360_v47  ;;  %v582_v55 = vunpack.c.l.bf16 %v580_v40  ;;  %v583_v56 = vunpack.c.l.bf16 %v581_v44 }
  0x1a   : > { %v403_v45 = vor.u32 %v401_v33, %v400_v37  ;;  %419 = vrot.lane.b32.xlu0 %v391_v35, %s800_s25  ;;  %v413_v50 = vsel %vm898_vm7, 0, %v411_v46 }
  0x1b   : > { %v369_v54 = vsel %vm368_vm12, 0, %v364_v51  ;;  %v414_v57 = vsel %vm906_vm8, %v413_v50, 0  ;;  %546 = vmatpush1.bf16.msra.mxu0 %v785_v53  ;;  %v771_v60 = vpack.i.bf16 %v583_v56, %v582_v55 }
  0x1c   : > { %v408_v49 = vsel %vm898_vm7, 0, %v403_v45  ;;  %v378_v58 = vsel %vm906_vm8, %v369_v54, 0  ;;  %547 = vmatprep.subr.bf16.mxu0 %v797_v2 }
  0x1d   : > { %v409_v52 = vsel %vm906_vm8, %v408_v49, 0 }
  0x1e   : > { %422 = vrot.lane.b32.xlu1 %v409_v52, %s801_s29  ;;  %431 = vrot.lane.b32.xlu0 %v730_v22, %s802_s30 }
  0x1f   : > { %548 = vmatpush1.bf16.msra.mxu0 %v786_v59 }
  0x20   : > { %549 = vmatprep.subr.bf16.mxu0 %v797_v2 }
  0x22   : > { %434 = vrot.lane.b32.xlu1 %v414_v57, %s803_s9  ;;  %436 = vrot.lane.b32.xlu0 %v877_v12, %s804_s10 }
  0x23   : > { %550 = vmatpush1.bf16.msra.mxu0 %v787_v61 }
  0x24   : > { %551 = vmatprep.subr.bf16.mxu0 %v797_v2 }
  0x26   : > { %772 = vrot.lane.b32.xlu1 %v771_v60, %s801_s29 }
  0x27   : > { %552 = vmatpush1.bf16.msra.mxu0 %v788_v62 }
  0x87   : > { %v430_v0 = vpop.permute.xlu1 %429 }
  0x88   : > { %v417_v63 = vpop.permute.xlu0 %416 }
  0x89   : > { %v441_v3 = vsel %vm438_vm11, %v378_v58, %v417_v63 }
  0x8c   : > { %v420_v1 = vpop.permute.xlu0 %419 }
  0x8d   : > { %v444_v4 = vsel %vm442_vm13, %v441_v3, %v420_v1 }
  0x90   : > { %v423_v5 = vpop.permute.xlu1 %422  ;;  %v432_v6 = vpop.permute.xlu0 %431 }
  0x91   : > { %v447_v7 = vsel %vm445_vm14, %v444_v4, %v423_v5 }
  0x92   : > { %v450_v8 = vsel %vm448_vm15, %v447_v7, %v430_v0 }
  0x93   : > { %v453_v9 = vsel %vm451_vm0, %v450_v8, %v432_v6 }
  0x94   : > { %v435_v2 = vpop.permute.xlu1 %434  ;;  %v437_v10 = vpop.permute.xlu0 %436 }
  0x95   : > { %v456_v11 = vsel %vm454_vm1, %v453_v9, %v435_v2 }
  0x96   : > { %v459_v12 = vsel %vm457_vm2, %v456_v11, %v437_v10 }
  0x97   : > { %568 = vmatmul.mubr.bf16.vlgmr.msra.gmra.mrb[0].mxu0 %v459_v12 }
  0x98   : > { %v773_v13 = vpop.permute.xlu1 %772 }
  0x99   : > { %v774_v14 = vunpack.i.l.bf16 %v773_v13  ;;  %v775_v15 = vunpack.i.h.bf16 %v773_v13 }
 0x16a   : > { %v569_v17 = vpop.f32.mrb[0].mxu0 }
 0x16b   : > { %v592_v18 = vsel %vm445_vm14, %v569_v17, %v774_v14  ;;  %v571_v20 = vpop.f32.mrb[1].mxu0 }
 0x16c   : > { %v599_v21 = vmul.f32 %v742_v16, %v592_v18  ;;  %v572_v22 = vpop.f32.mrb[2].mxu0 }
 0x16d   : > { %v593_v23 = vsel %vm445_vm14, %v572_v22, %v775_v15  ;;  %v574_v24 = vpop.f32.mrb[3].mxu0 }
 0x16e   : > { %v606_v25 = vadd.f32 %v743_v19, %v599_v21  ;;  %v600_v26 = vmul.f32 %v742_v16, %v593_v23 }
 0x170   : > { %v608_v27 = vmax.f32 %v606_v25, 0.0  ;;  %v607_v28 = vadd.f32 %v743_v19, %v600_v26 }
 0x172   : > { %v753_v29 = vpack.c.bf16 %v608_v27, %v608_v27  ;;  %v609_v30 = vmax.f32 %v607_v28, 0.0 }
 0x174   : > { %619 = vst.msk [vmem:[%s311_s22] sm:$0xf] %vm618_vm3, %v753_v29  ;;  %v754_v31 = vpack.c.bf16 %v609_v30, %v609_v30 }
 0x176   : > { %620 = vst.msk [vmem:[%s311_s22 + $0x4] sm:$0xf] %vm618_vm3, %v754_v31 }
 0x177 PF: > { %s16_s21 = sadd.s32 1, %s795_s21  }
 0x178   : > { %p13_p4 = scmp.ge.s32.totalorder %s16_s21, 4  }
 0x17a   :  { %15 = sbr.rel (!%p13_p4) target bundleno = 1 (0x1), region = 83 }

// kernel: _lambda_.16
= control target key start
LH: loop header
LB: loop body
LE: loop exit
PB: predicated region body
PF: predicated region fallthrough
CT: control target
= control target key end

     0   :  { %s1410_s21 = smov 0   ;;  %s1886_s0 = inlined_call_operand.vmem [shape: bf16[2,64,4], index: 0, kind: input, shape index: {}]   ;;  %s1887_s1 = inlined_call_operand.vmem [shape: bf16[2,64,4], index: 1, kind: input, shape index: {}]   ;;  %s1888_s2 = inlined_call_operand.vmem [shape: bf16[2,64,4], index: 2, kind: input, shape index: {}]   ;;  %s1889_s3 = inlined_call_operand.vmem [shape: bf16[2,64,4], index: 3, kind: input, shape index: {}]   ;;  %s1890_s4 = inlined_call_operand.vmem [shape: bf16[36,12], index: 4, kind: input, shape index: {}]   ;;  %s1891_s5 = inlined_call_operand.vmem [shape: f32[2,16], index: 5, kind: input, shape index: {}]   ;;  %s1892_s6 = inlined_call_operand.vmem [shape: bf16[2,64,16], index: 6, kind: output, shape index: {}]  }
   0x1 LB: > { %s1188_s22 = sadd.s32 4294967295, %s1364_s21   ;;  %p1192_p0 = scmp.ge.s32.totalorder %s1364_s21, 1  ;;  %s1364_s21 = sphi %s1410_s21, %s16_s21  }
   0x2   : > { %p242_p1 = scmp.lt.s32.totalorder %s1364_s21, 3 }
   0x4   : > { %p243_p2 = pnand %p1192_p0, %p242_p1 }
   0x6   : > { %246 = sbr.rel (%p243_p2) target bundleno = 427 (0x1ab), region = 44 }
   0xd   : > { %p287_p3 = scmp.lt.s32.totalorder %s1188_s22, 1  ;;  %v347_v0 = vlaneseq  ;;  %vm575_vm0 = vcmask 1043456   ;;  %vm605_vm1 = vsmask.f32 256  ;;  %vm641_vm2 = vcmask 1040384   ;;  %s1366_s9 = smov 4  }
   0xe   : > { %v1367_v52 = vmov 0   ;;  %s1368_s10 = smov 8   ;;  %vm1579_vm11 = vmand %vm641_vm2, %vm605_vm1  ;;  %s1369_s14 = smov 12  }
   0xf   : > { %s1939_s22 = smov (!%p287_p3, %s1188_s22), 1  ;;  %v348_v1 = vshrl.u32 %v347_v0, 7  ;;  %s1370_s15 = smov 16  }
  0x10   : > { %s1418_s23 = sshll.u32 %s1939_s22, 5  ;;  %s1371_s16 = smov 20  }
  0x11   : > { %v352_v2 = vadd.s32 32, %v348_v1  ;;  %v353_v3 = vadd.s32 40, %v348_v1  ;;  %v1420_v4 = vadd.s32 8, %v348_v1  ;;  %s1426_s26 = scalar_lea.vmem %s1888_s2, %s1418_s23  ;;  %s1432_s29 = scalar_lea.vmem %s1889_s3, %s1418_s23  ;;  %v360_v5 = vand.u32 7, %v348_v1 }
  0x12   : > { %v1434_v6 = vadd.s32 48, %v348_v1  ;;  %v1436_v7 = vadd.s32 56, %v348_v1  ;;  %v1438_v8 = vadd.s32 16, %v348_v1  ;;  %v1441_v9 = vld [vmem:[%s1426_s26 + $0xc] sm:$0xf]  ;;  %s1475_s8 = scalar_lea.vmem %s1887_s1, %s1418_s23  ;;  %v1498_v28 = vadd.s32 24, %v348_v1  ;;  %s1613_s13 = scalar_lea.vmem %s1886_s0, %s1418_s23 }
  0x13   : > { %v1444_v10 = vld [vmem:[%s1426_s26 + $0x10] sm:$0xf]  ;;  %v1447_v11 = vld [vmem:[%s1432_s29 + $0xc] sm:$0xf]  ;;  %v1455_v14 = vld [vmem:[%s1426_s26 + $0x4] sm:$0xf] }
  0x14   : > { %v1450_v12 = vld [vmem:[%s1432_s29 + $0x10] sm:$0xf]  ;;  %v1213_v13 = vcombine.low %v1441_v9, %v1444_v10  ;;  %v1458_v15 = vld [vmem:[%s1426_s26 + $0x8] sm:$0xf]  ;;  %v1461_v16 = vld [vmem:[%s1432_s29 + $0x4] sm:$0xf] }
  0x15   : > { %1902 = vst [vmem:[#allocation2_spill] sm:$0xff] %v1450_v12  ;;  %v1464_v17 = vld [vmem:[%s1432_s29 + $0x8] sm:$0xf]  ;;  %v1212_v18 = vcombine.low %v1455_v14, %v1458_v15  ;;  %v1469_v19 = vld [vmem:[%s1426_s26 + $0x14] sm:$0xf]  ;;  %v1217_v29 = vcombine.low %v1447_v11, %v1450_v12  ;;  %v388_v37 = vand.u32 7, %v352_v2 }
  0x16   : > { %681 = vrot.lane.b32.xlu0 %v1213_v13, %s1366_s9  ;;  %v1478_v20 = vld [vmem:[%s1426_s26 + $0x18] sm:$0xf]  ;;  %v1481_v21 = vld [vmem:[%s1426_s26] sm:$0xf]  ;;  %v1493_v26 = vld [vmem:[%s1432_s29 + $0x14] sm:$0xf]  ;;  %v1216_v35 = vcombine.low %v1461_v16, %v1464_v17 }
  0x17   : > { %v1484_v22 = vld [vmem:[%s1432_s29] sm:$0xf]  ;;  %679 = vrot.lane.b32.xlu1 %v1212_v18, %s1366_s9  ;;  %v1214_v23 = vcombine.low %v1469_v19, %v1478_v20  ;;  %v1211_v24 = vcombine.low %v1481_v21, %v1481_v21  ;;  %1903 = vst [vmem:[#allocation3_spill] sm:$0xff] %v1493_v26  ;;  %v1496_v27 = vld [vmem:[%s1432_s29 + $0x18] sm:$0xf]  ;;  %v395_v38 = vand.u32 7, %v353_v3 }
  0x18   : > { %v1215_v25 = vcombine.low %v1484_v22, %v1484_v22  ;;  %v1503_v30 = vld [vmem:[%s1475_s8 + $0x8] sm:$0xf]  ;;  %v1506_v31 = vld [vmem:[%s1475_s8 + $0xc] sm:$0xf]  ;;  %v1509_v32 = vld [vmem:[%s1475_s8 + $0x10] sm:$0xf]  ;;  %v1218_v34 = vcombine.low %v1493_v26, %v1496_v27 }
  0x19   : > { %1904 = vst [vmem:[#allocation4_spill] sm:$0xff] %v1509_v32  ;;  %v578_v33 = vsel %vm575_vm0, 0, %v1211_v24  ;;  %v1517_v36 = vld [vmem:[%s1475_s8 + $0x14] sm:$0xf]  ;;  %v1521_v39 = vcombine.low %v1503_v30, %v1506_v31  ;;  %v1528_v41 = vld [vmem:[%s1475_s8] sm:$0xf] }
  0x1a   : > { %1905 = vst [vmem:[#allocation5_spill] sm:$0xff] %v1517_v36  ;;  %677 = vrot.lane.b32.xlu0 %v578_v33, %s1366_s9  ;;  %v1525_v40 = vcombine.low %v1509_v32, %v1517_v36  ;;  %v1531_v42 = vld [vmem:[%s1475_s8 + $0x4] sm:$0xf]  ;;  %v367_v43 = vand.u32 7, %v1420_v4  ;;  %v584_v44 = vsel %vm575_vm0, 0, %v1215_v25  ;;  %vm456_vm3 = vcmp.ge.s32.totalorder %v388_v37, 1 }
  0x1b   : > { %683 = vrot.lane.b32.xlu1 %v1214_v23, %s1366_s9  ;;  %vm1535_vm4 = vcmp.ge.s32.totalorder %v360_v5, 1  ;;  %v1541_v46 = vcombine.low %v1528_v41, %v1531_v42  ;;  %vm1543_vm5 = vcmp.ge.s32.totalorder %v395_v38, 1  ;;  %vm525_vm6 = vmpackc.low %vm456_vm3, %vm456_vm3  ;;  %v614_v48 = vshrl.u32 %v1521_v39, 16  ;;  %v1551_v51 = vld [vmem:[%s1475_s8 + $0x18] sm:$0xf]  ;;  %s1372_s19 = smov 24  }
  0x1c   : > { %v622_v49 = vshrl.u32 %v1525_v40, 16  ;;  %v625_v50 = vshll.u32 %v1525_v40, 16  ;;  %vm526_vm7 = vmpackc.low %vm1543_vm5, %vm1543_vm5  ;;  %v533_v53 = vsel %vm525_vm6, 65537, %v1367_v52  ;;  %vm1557_vm8 = vcmp.ge.s32.totalorder %v367_v43, 1  ;;  %v1564_v57 = vld [vmem:[%s1475_s8 + $0x1c] sm:$0xf] }
  0x1d   : > { %v607_v55 = vshrl.u32 %v1541_v46, 16  ;;  %v610_v56 = vshll.u32 %v1541_v46, 16  ;;  %v534_v58 = vsel %vm526_vm7, 65537, %v1367_v52  ;;  %v616_v59 = vrot.slane %v614_v48, 7  ;;  %vm521_vm9 = vmpackc.low %vm1535_vm4, %vm1535_vm4  ;;  %v1628_v54 = vld [vmem:[%s1613_s13 + $0x10] sm:$0xf] }
  0x1e   : > { %686 = vrot.lane.b32.xlu0 %v584_v44, %s1368_s10  ;;  %v624_v60 = vrot.slane %v622_v49, 7  ;;  %v402_v61 = vand.u32 7, %v1434_v6  ;;  %v1209_v62 = vcombine.low %v533_v53, %v534_v58  ;;  %vm522_vm10 = vmpackc.low %vm1557_vm8, %vm1557_vm8  ;;  %v529_v63 = vsel %vm521_vm9, 65537, %v1367_v52  ;;  %1921 = vst [vmem:[#allocation7_spill] sm:$0xff] %v1628_v54  ;;  %s1374_s27 = smov 32  }
  0x1f   : > { %690 = vrot.lane.b32.xlu1 %v1217_v29, %s1368_s10  ;;  %v609_v0 = vrot.slane %v607_v55, 7  ;;  %v409_v1 = vand.u32 7, %v1436_v7  ;;  %v530_v3 = vsel %vm522_vm10, 65537, %v1367_v52  ;;  %v1585_v5 = vcombine.low %v1551_v51, %v1564_v57  ;;  %v1631_v55 = vld [vmem:[%s1613_s13 + $0x14] sm:$0xf] }
  0x20   : > { %v627_v2 = vor.u32 %v625_v50, %v624_v60  ;;  %vm458_vm12 = vcmp.ge.s32.totalorder %v402_v61, 1  ;;  %vm1587_vm13 = vcmp.ne.s16.totalorder %v1209_v62, 0  ;;  %v1207_v13 = vcombine.low %v529_v63, %v530_v3  ;;  %1922 = vst [vmem:[#allocation8_spill] sm:$0xff] %v1631_v55 }
  0x21   : > { %v612_v7 = vor.u32 %v610_v56, %v609_v0  ;;  %vm459_vm14 = vcmp.ge.s32.totalorder %v409_v1, 1  ;;  %vm527_vm15 = vmpackc.low %vm458_vm12, %vm458_vm12  ;;  %v630_v24 = vshrl.u32 %v1585_v5, 16  ;;  %v633_v25 = vshll.u32 %v1585_v5, 16  ;;  %v1634_v56 = vld [vmem:[%s1432_s29 + $0x1c] sm:$0xf] }
  0x22   : > { %688 = vrot.lane.b32.xlu0 %v1216_v35, %s1368_s10  ;;  %v628_v18 = vsel %vm605_vm1, %v616_v59, %v627_v2  ;;  %vm528_vm0 = vmpackc.low %vm459_vm14, %vm459_vm14  ;;  %v535_v23 = vsel %vm527_vm15, 65537, %v1367_v52  ;;  %vm1597_vm2 = vcmp.ne.s16.totalorder %v1207_v13, 0  ;;  %v374_v45 = vand.u32 7, %v1438_v8  ;;  %v1649_v1 = vld [vmem:[%s1613_s13] sm:$0xf] }
  0x23   : > { %692 = vrot.lane.b32.xlu1 %v1218_v34, %s1368_s10  ;;  %v646_v29 = vsel %vm1587_vm13, %v628_v18, 0  ;;  %v643_v35 = vsel %vm1579_vm11, 0, %v612_v7  ;;  %v536_v37 = vsel %vm528_vm0, 65537, %v1367_v52  ;;  %v632_v44 = vrot.slane %v630_v24, 7  ;;  %v1652_v2 = vld [vmem:[%s1613_s13 + $0x4] sm:$0xf]  ;;  %s1864_s10 = scalar_lea.vmem %s1892_s6, %s1418_s23 }
  0x24   : > { %v644_v38 = vsel %vm1597_vm2, %v643_v35, 0  ;;  %v1210_v43 = vcombine.low %v535_v23, %v536_v37  ;;  %v381_v34 = vand.u32 7, %v1498_v28  ;;  %v617_v47 = vshll.u32 %v1521_v39, 16  ;;  %v1658_v13 = vld [vmem:[%s1613_s13 + $0x18] sm:$0xf] }
  0x25   : > { %v635_v8 = vor.u32 %v633_v25, %v632_v44  ;;  %vm454_vm4 = vcmp.ge.s32.totalorder %v374_v45, 1  ;;  %v1623_v49 = vcombine.low %v1484_v22, %v1461_v16  ;;  %v1638_v58 = vcombine.low %v1450_v12, %v1493_v26 }
  0x26   : > { %698 = vrot.lane.b32.xlu0 %v644_v38, %s1369_s14  ;;  %vm1616_vm3 = vcmp.ne.s16.totalorder %v1210_v43, 0  ;;  %vm455_vm5 = vcmp.ge.s32.totalorder %v381_v34, 1  ;;  %vm523_vm6 = vmpackc.low %vm454_vm4, %vm454_vm4  ;;  %v619_v28 = vor.u32 %v617_v47, %v616_v59  ;;  %v1645_v61 = vcombine.low %v1464_v17, %v1447_v11  ;;  %v1686_v34 = vld [vmem:[%s1613_s13 + $0x8] sm:$0xf]  ;;  %v1689_v47 = vld [vmem:[%s1613_s13 + $0xc] sm:$0xf] }
  0x27   : > { %702 = vrot.lane.b32.xlu1 %v646_v29, %s1369_s14  ;;  %1920 = vst [vmem:[#allocation6_spill] sm:$0xff] %v1623_v49  ;;  %v636_v50 = vsel %vm605_vm1, %v624_v60, %v635_v8  ;;  %vm524_vm7 = vmpackc.low %vm455_vm5, %vm455_vm5  ;;  %v531_v53 = vsel %vm523_vm6, 65537, %v1367_v52  ;;  %v1226_v3 = vcombine.low %v1628_v54, %v1631_v55  ;;  %v480_v18 = vshrl.u32 %v1623_v49, 16 }
  0x28   : > { %1923 = vst [vmem:[#allocation9_spill] sm:$0xff] %v1638_v58  ;;  %v647_v59 = vsel %vm1616_vm3, %v636_v50, 0  ;;  %v532_v60 = vsel %vm524_vm7, 65537, %v1367_v52  ;;  %1924 = vst [vmem:[#allocation10_spill] sm:$0xff] %v1645_v61  ;;  %v620_v63 = vsel %vm605_vm1, %v609_v0, %v619_v28  ;;  %v1662_v52 = vcombine.low %v1496_v27, %v1634_v56  ;;  %v1669_v0 = vld [vmem:[%s1613_s13 + $0x1c] sm:$0xf] }
  0x29   : > { %v1208_v62 = vcombine.low %v531_v53, %v532_v60  ;;  %v483_v23 = vshll.u32 %v1623_v49, 16  ;;  %v1206_v24 = vcombine.low %v1496_v27, %v1496_v27  ;;  %v1224_v29 = vcombine.low %v1649_v1, %v1652_v2 }
  0x2a   : > { %v497_v35 = vshrl.u32 %v1638_v58, 16  ;;  %v488_v37 = vshrl.u32 %v1645_v61, 16  ;;  %v500_v38 = vshll.u32 %v1638_v58, 16  ;;  %v482_v43 = vrot.slane %v480_v18, 3 }
  0x2b   : > { %704 = vrot.lane.b32.xlu1 %v647_v59, %s1369_s14  ;;  %vm1664_vm8 = vcmp.ne.s16.totalorder %v1208_v62, 0  ;;  %v485_v44 = vrot.slane %v483_v23, 4  ;;  %v1227_v45 = vcombine.low %v1658_v13, %v1669_v0  ;;  %v491_v8 = vshll.u32 %v1645_v61, 16 }
  0x2c   : > { %v645_v25 = vsel %vm1664_vm8, %v620_v63, 0  ;;  %vm518_vm9 = vcmask 1044480   ;;  %v490_v28 = vrot.slane %v488_v37, 3  ;;  %v502_v50 = vrot.slane %v500_v38, 4 }
  0x2d   : > { %700 = vrot.lane.b32.xlu0 %v645_v25, %s1369_s14  ;;  %v660_v53 = vshrl.u32 %v1662_v52, 16  ;;  %v656_v59 = vrot.slane %v497_v35, 7  ;;  %v493_v60 = vrot.slane %v491_v8, 4  ;;  %vm478_vm10 = vsmask.f32 4352 }
  0x2e   : > { %v499_v62 = vrot.slane %v497_v35, 3  ;;  %v1225_v63 = vcombine.low %v1686_v34, %v1689_v47  ;;  %v506_v25 = vshrl.u32 %v1206_v24, 16  ;;  %vm1696_vm12 = vmand %vm518_vm9, %vm478_vm10  ;;  %v653_v61 = vrot.slane %v488_v37, 7 }
  0x2f   : > { %730 = vrot.lane.b32.xlu1 %v1226_v3, %s1370_s15  ;;  %v486_v3 = vor.u32 %v485_v44, %v482_v43  ;;  %v651_v58 = vrot.slane %v480_v18, 7  ;;  %v662_v26 = vrot.slane %v660_v53, 7  ;;  %v663_v36 = vshll.u32 %v1662_v52, 16 }
  0x30   : > { %v494_v55 = vor.u32 %v493_v60, %v490_v28  ;;  %v503_v32 = vor.u32 %v502_v50, %v499_v62  ;;  %v657_v35 = vor.u32 %v656_v59, %v500_v38  ;;  %v509_v54 = vshll.u32 %v1206_v24, 16 }
  0x31   : > { %726 = vrot.lane.b32.xlu0 %v1224_v29, %s1370_s15  ;;  %v508_v29 = vrot.slane %v506_v25, 3  ;;  %v520_v43 = vsel %vm1696_vm12, 0, %v486_v3  ;;  %v652_v38 = vor.u32 %v651_v58, %v483_v23  ;;  %v654_v60 = vor.u32 %v653_v61, %v491_v8 }
  0x32   : > { %v1704_v44 = vsel %vm478_vm10, %v494_v55, %v503_v32  ;;  %v1707_v12 = vsel %vm478_vm10, %v486_v3, %v494_v55  ;;  %v1711_v18 = vsel %vm1597_vm2, %v520_v43, 0  ;;  %v511_v37 = vrot.slane %v509_v54, 4  ;;  %v1935_v43 = vld [vmem:[#allocation9_spill] sm:$0xff] }
  0x33   : > { %732 = vrot.lane.b32.xlu1 %v1227_v45, %s1370_s15  ;;  %v555_v24 = vsel %vm1587_vm13, %v1704_v44, 0  ;;  %v554_v49 = vsel %vm1664_vm8, %v1707_v12, 0  ;;  %v658_v55 = vsel %vm605_vm1, %v653_v61, %v657_v35  ;;  %v665_v45 = vor.u32 %v663_v36, %v662_v26  ;;  %v1355_v26 = vld [vmem:[%s1890_s4] sm:$0xff]   ;;  %v338_v61 = vld [vmem:[%s1426_s26 + $0x1c] sm:$0xf]  ;;  %s1373_s26 = smov 28  }
  0x34   : > { %v512_v28 = vor.u32 %v511_v37, %v508_v29  ;;  %v674_v50 = vsel %vm1587_vm13, %v658_v55, 0  ;;  %v671_v53 = vsel %vm1579_vm11, 0, %v652_v38  ;;  %1271 = vmatprep.subr.bf16.mxu0 %v1355_v26  ;;  %1285 = vmatprep.subr.bf16.mxu1 %v1355_v26  ;;  %v655_v4 = vsel %vm605_vm1, %v651_v58, %v654_v60  ;;  %v1357_v58 = vld [vmem:[%s1890_s4 + $0x10] ss:$0 sps:$4 sm:$0x33]  }
  0x35   : > { %728 = vrot.lane.b32.xlu0 %v1225_v63, %s1370_s15  ;;  %v666_v36 = vsel %vm605_vm1, %v656_v59, %v665_v45  ;;  %1272 = vmatpush3.bf16.msra.mxu0 %v1355_v26  ;;  %v1230_v33 = vcombine.low %v1444_v10, %v1469_v19  ;;  %vm881_vm1 = vcmask 1041408   ;;  %v961_v23 = vmax.bf16 %v1447_v11, %v1441_v9 }
  0x36   : > { %1288 = vmatpush3.bf16.msra.mxu1 %v1355_v26  ;;  %v960_v8 = vmax.bf16 %v1464_v17, %v1458_v15  ;;  %v1228_v59 = vcombine.low %v1481_v21, %v1455_v14  ;;  %v883_v62 = vsel %vm881_vm1, %v1357_v58, 0  ;;  %v952_v63 = vmax.bf16 %v1503_v30, %v1686_v34 }
  0x37   : > { %738 = vrot.lane.b32.xlu1 %v1525_v40, %s1371_s16  ;;  %v1724_v40 = vsel %vm478_vm10, %v503_v32, %v512_v28  ;;  %v672_v32 = vsel %vm1597_vm2, %v671_v53, 0  ;;  %v953_v3 = vmax.bf16 %v1506_v31, %v1689_v47  ;;  %v1231_v25 = vcombine.low %v1478_v20, %v338_v61 }
  0x38   : > { %v556_v54 = vsel %vm1616_vm3, %v1724_v40, 0  ;;  %v959_v11 = vmax.bf16 %v1461_v16, %v1455_v14  ;;  %v958_v17 = vmax.bf16 %v1484_v22, %v1481_v21  ;;  %v1229_v35 = vcombine.low %v1458_v15, %v1441_v9  ;;  %v1929_v15 = vld [vmem:[#allocation2_spill] sm:$0xff] }
  0x39   : > { %734 = vrot.lane.b32.xlu0 %v1541_v46, %s1371_s16  ;;  %v675_v46 = vsel %vm1616_vm3, %v666_v36, 0  ;;  %v950_v30 = vmax.bf16 %v1528_v41, %v1649_v1  ;;  %v951_v31 = vmax.bf16 %v1531_v42, %v1652_v2  ;;  %v956_v34 = vmax.bf16 %v1551_v51, %v1658_v13  ;;  %v1930_v41 = vld [vmem:[#allocation7_spill] sm:$0xff]  ;;  %v1931_v42 = vld [vmem:[#allocation4_spill] sm:$0xff]  ;;  %v1933_v51 = vld [vmem:[#allocation5_spill] sm:$0xff] }
  0x3a   : > { %v957_v47 = vmax.bf16 %v1564_v57, %v1669_v0  ;;  %v965_v14 = vmax.bf16 %v1634_v56, %v338_v61  ;;  %v968_v16 = vmax.bf16 %v960_v8, %v952_v63  ;;  %v969_v21 = vmax.bf16 %v961_v23, %v953_v3  ;;  %v1932_v2 = vld [vmem:[#allocation8_spill] sm:$0xff]  ;;  %v1934_v56 = vld [vmem:[#allocation3_spill] sm:$0xff]  ;;  %v1937_v36 = vld [vmem:[#allocation10_spill] sm:$0xff] }
  0x3b   : > { %740 = vrot.lane.b32.xlu1 %v1585_v5, %s1371_s16  ;;  %v1356_v5 = vld [vmem:[%s1890_s4 + $0x8] sm:$0xff]   ;;  %v964_v9 = vmax.bf16 %v1496_v27, %v1478_v20  ;;  %v962_v22 = vmax.bf16 %v1929_v15, %v1444_v10  ;;  %v954_v1 = vmax.bf16 %v1931_v42, %v1930_v41  ;;  %v955_v13 = vmax.bf16 %v1933_v51, %v1932_v2  ;;  %v1936_v10 = vld [vmem:[#allocation6_spill] sm:$0xff] }
  0x3c   : > { %1273 = vmatprep.subr.bf16.mxu0 %v1356_v5  ;;  %1286 = vmatprep.subr.bf16.mxu1 %v1356_v5  ;;  %v966_v57 = vmax.bf16 %v958_v17, %v950_v30  ;;  %v967_v0 = vmax.bf16 %v959_v11, %v951_v31  ;;  %v963_v29 = vmax.bf16 %v1934_v56, %v1469_v19  ;;  %v976_v37 = vunpack.c.l.bf16 %v968_v16 }
  0x3d   : > { %736 = vrot.lane.b32.xlu0 %v1521_v39, %s1371_s16  ;;  %v673_v39 = vsel %vm1664_vm8, %v655_v4, 0  ;;  %1274 = vmatpush3.bf16.msra.mxu0 %v1356_v5  ;;  %v977_v20 = vunpack.c.l.bf16 %v969_v21  ;;  %v972_v27 = vmax.bf16 %v964_v9, %v956_v34  ;;  %v973_v38 = vmax.bf16 %v965_v14, %v957_v47 }
  0x3e   : > { %1289 = vmatpush3.bf16.msra.mxu1 %v1356_v5  ;;  %1291 = vmatprep.subr.msk.bf16.mxu0 %vm881_vm1, %v1357_v58  ;;  %v974_v55 = vunpack.c.l.bf16 %v966_v57  ;;  %v975_v45 = vunpack.c.l.bf16 %v967_v0  ;;  %v970_v28 = vmax.bf16 %v962_v22, %v954_v1  ;;  %vm776_vm11 = vcmask 31744  }
  0x3f   : > { %750 = vrot.lane.b32.xlu1 %v674_v50, %s1372_s19  ;;  %1292 = vmatprep.subr.msk.bf16.mxu1 %vm881_vm1, %v1357_v58  ;;  %v971_v50 = vmax.bf16 %v963_v29, %v955_v13  ;;  %v1315_v53 = vpack.i.bf16 %v977_v20, %v976_v37  ;;  %v980_v60 = vunpack.c.l.bf16 %v972_v27  ;;  %v981_v26 = vunpack.c.l.bf16 %v973_v38 }
  0x40   : > { %v1310_v19 = vpack.i.bf16 %v975_v45, %v974_v55  ;;  %vm789_vm14 = vcmask 64512   ;;  %vm798_vm15 = vcmask 97280   ;;  %vm807_vm0 = vcmask 130048  }
  0x41   : > { %746 = vrot.lane.b32.xlu0 %v672_v32, %s1372_s19  ;;  %1276 = vmatpush3.bf16.msra.mxu0 %v883_v62  ;;  %v978_v32 = vunpack.c.l.bf16 %v970_v28  ;;  %v1325_v4 = vpack.i.bf16 %v981_v26, %v980_v60  ;;  %vm816_vm2 = vcmask 162816   ;;  %vm825_vm4 = vcmask 195584  }
  0x42   : > { %1290 = vmatpush3.bf16.msra.mxu1 %v883_v62  ;;  %vm834_vm5 = vcmask 228352   ;;  %vm843_vm13 = vcmask 261120   ;;  %vm872_vm6 = vcmask 293888   ;;  %vm1088_vm3 = vcmask 125952  }
  0x43   : > { %752 = vrot.lane.b32.xlu1 %v675_v46, %s1372_s19  ;;  %v979_v46 = vunpack.c.l.bf16 %v971_v50 }
  0x45   : > { %748 = vrot.lane.b32.xlu0 %v673_v39, %s1372_s19  ;;  %v1320_v5 = vpack.i.bf16 %v979_v46, %v978_v32 }
  0x47   : > { %764 = vrot.lane.b32.xlu1 %v1230_v33, %s1373_s26 }
  0x49   : > { %760 = vrot.lane.b32.xlu0 %v1228_v59, %s1373_s26 }
  0x4b   : > { %766 = vrot.lane.b32.xlu1 %v1231_v25, %s1373_s26 }
  0x4d   : > { %762 = vrot.lane.b32.xlu0 %v1229_v35, %s1373_s26 }
  0x4f   : > { %772 = vrot.lane.b32.xlu1 %v1935_v43, %s1374_s27 }
  0x51   : > { %768 = vrot.lane.b32.xlu0 %v1936_v10, %s1374_s27 }
  0x53   : > { %774 = vrot.lane.b32.xlu1 %v1662_v52, %s1374_s27 }
  0x55   : > { %770 = vrot.lane.b32.xlu0 %v1937_v36, %s1374_s27 }
  0x57   : > { %1316 = vrot.lane.b32.xlu1 %v1315_v53, %s1369_s14 }
  0x59   : > { %1311 = vrot.lane.b32.xlu0 %v1310_v19, %s1369_s14 }
  0x5b   : > { %1326 = vrot.lane.b32.xlu1 %v1325_v4, %s1369_s14 }
  0x5d   : > { %1321 = vrot.lane.b32.xlu0 %v1320_v5, %s1369_s14 }
  0x88   : > { %v682_v39 = vpop.permute.xlu0 %681 }
  0x89   : > { %v680_v52 = vpop.permute.xlu1 %679  ;;  %v785_v41 = vsel %vm776_vm11, %v555_v24, %v682_v39 }
  0x8a   : > { %v782_v37 = vsel %vm776_vm11, %v554_v49, %v680_v52 }
  0x8c   : > { %v678_v33 = vpop.permute.xlu0 %677 }
  0x8d   : > { %v684_v61 = vpop.permute.xlu1 %683  ;;  %v779_v13 = vsel %vm776_vm11, %v1711_v18, %v678_v33 }
  0x8e   : > { %v788_v6 = vsel %vm776_vm11, %v556_v54, %v684_v61 }
  0x90   : > { %v687_v58 = vpop.permute.xlu0 %686 }
  0x91   : > { %v691_v23 = vpop.permute.xlu1 %690  ;;  %v791_v44 = vsel %vm789_vm14, %v779_v13, %v687_v58 }
  0x92   : > { %v795_v42 = vsel %vm789_vm14, %v785_v41, %v691_v23 }
  0x94   : > { %v689_v8 = vpop.permute.xlu0 %688 }
  0x95   : > { %v693_v59 = vpop.permute.xlu1 %692  ;;  %v793_v10 = vsel %vm789_vm14, %v782_v37, %v689_v8 }
  0x96   : > { %v797_v0 = vsel %vm789_vm14, %v788_v6, %v693_v59  ;;  %v1239_v59 = vld [vmem:[%s1891_s5] ss:$0 sm:$0xff] }
  0x98   : > { %v699_v63 = vpop.permute.xlu0 %698 }
  0x99   : > { %v703_v62 = vpop.permute.xlu1 %702  ;;  %v800_v56 = vsel %vm798_vm15, %v791_v44, %v699_v63 }
  0x9a   : > { %v804_v2 = vsel %vm798_vm15, %v795_v42, %v703_v62 }
  0x9d   : > { %v705_v3 = vpop.permute.xlu1 %704 }
  0x9e   : > { %v806_v43 = vsel %vm798_vm15, %v797_v0, %v705_v3 }
  0x9f   : > { %v701_v25 = vpop.permute.xlu0 %700 }
  0xa0   : > { %v802_v7 = vsel %vm798_vm15, %v793_v10, %v701_v25  ;;  %v1240_v25 = vld [vmem:[%s1891_s5 + $0x1] ss:$0 sm:$0xff] }
  0xa1   : > { %v731_v11 = vpop.permute.xlu1 %730 }
  0xa2   : > { %v813_v57 = vsel %vm807_vm0, %v804_v2, %v731_v11 }
  0xa3   : > { %v727_v17 = vpop.permute.xlu0 %726 }
  0xa4   : > { %v809_v48 = vsel %vm807_vm0, %v800_v56, %v727_v17 }
  0xa5   : > { %v733_v35 = vpop.permute.xlu1 %732 }
  0xa6   : > { %v815_v20 = vsel %vm807_vm0, %v806_v43, %v733_v35 }
  0xa7   : > { %v729_v30 = vpop.permute.xlu0 %728 }
  0xa8   : > { %v811_v50 = vsel %vm807_vm0, %v802_v7, %v729_v30 }
  0xa9   : > { %v739_v31 = vpop.permute.xlu1 %738 }
  0xaa   : > { %v822_v24 = vsel %vm816_vm2, %v813_v57, %v739_v31 }
  0xab   : > { %v735_v34 = vpop.permute.xlu0 %734 }
  0xac   : > { %v818_v27 = vsel %vm816_vm2, %v809_v48, %v735_v34 }
  0xad   : > { %v741_v47 = vpop.permute.xlu1 %740 }
  0xae   : > { %v824_v55 = vsel %vm816_vm2, %v815_v20, %v741_v47 }
  0xaf   : > { %v737_v14 = vpop.permute.xlu0 %736 }
  0xb0   : > { %v820_v36 = vsel %vm816_vm2, %v811_v50, %v737_v14 }
  0xb1   : > { %v751_v16 = vpop.permute.xlu1 %750 }
  0xb2   : > { %v831_v18 = vsel %vm825_vm4, %v822_v24, %v751_v16 }
  0xb3   : > { %v747_v21 = vpop.permute.xlu0 %746 }
  0xb4   : > { %v827_v45 = vsel %vm825_vm4, %v818_v27, %v747_v21 }
  0xb5   : > { %v753_v9 = vpop.permute.xlu1 %752 }
  0xb6   : > { %v833_v12 = vsel %vm825_vm4, %v824_v55, %v753_v9 }
  0xb7   : > { %v749_v15 = vpop.permute.xlu0 %748 }
  0xb8   : > { %v829_v32 = vsel %vm825_vm4, %v820_v36, %v749_v15 }
  0xb9   : > { %v765_v22 = vpop.permute.xlu1 %764 }
  0xba   : > { %v840_v40 = vsel %vm834_vm5, %v831_v18, %v765_v22 }
  0xbb   : > { %v761_v1 = vpop.permute.xlu0 %760 }
  0xbc   : > { %v836_v49 = vsel %vm834_vm5, %v827_v45, %v761_v1 }
  0xbd   : > { %v767_v51 = vpop.permute.xlu1 %766 }
  0xbe   : > { %v842_v53 = vsel %vm834_vm5, %v833_v12, %v767_v51 }
  0xbf   : > { %v763_v29 = vpop.permute.xlu0 %762 }
  0xc0   : > { %v838_v46 = vsel %vm834_vm5, %v829_v32, %v763_v29 }
  0xc1   : > { %v773_v54 = vpop.permute.xlu1 %772 }
  0xc2   : > { %v849_v38 = vsel %vm843_vm13, %v840_v40, %v773_v54 }
  0xc3   : > { %1281 = vmatprep.mubr.msk.bf16.mxu1 %vm872_vm6, %v849_v38  ;;  %v769_v28 = vpop.permute.xlu0 %768 }
  0xc4   : > { %v845_v60 = vsel %vm843_vm13, %v836_v49, %v769_v28 }
  0xc5   : > { %v775_v26 = vpop.permute.xlu1 %774  ;;  %1277 = vmatprep.mubr.msk.bf16.mxu0 %vm872_vm6, %v845_v60 }
  0xc6   : > { %v851_v19 = vsel %vm843_vm13, %v842_v53, %v775_v26 }
  0xc7   : > { %1282 = vmatmul.mubr.msk.bf16.vlgmr.msra.gmra.mrb[0].mxu1 %vm872_vm6, %v851_v19  ;;  %v771_v4 = vpop.permute.xlu0 %770 }
  0xc8   : > { %v847_v5 = vsel %vm843_vm13, %v838_v46, %v771_v4 }
  0xc9   : > { %1278 = vmatmul.mubr.msk.bf16.vlgmr.msra.gmra.mrb[0].mxu0 %vm872_vm6, %v847_v5  ;;  %v1317_v39 = vpop.permute.xlu1 %1316 }
  0xca   : > { %v1318_v62 = vunpack.i.l.bf16 %v1317_v39  ;;  %v1319_v35 = vunpack.i.h.bf16 %v1317_v39 }
  0xcb   : > { %v1312_v52 = vpop.permute.xlu0 %1311 }
  0xcc   : > { %v1314_v30 = vunpack.i.h.bf16 %v1312_v52  ;;  %v1313_v14 = vunpack.i.l.bf16 %v1312_v52 }
  0xcd   : > { %v1327_v33 = vpop.permute.xlu1 %1326 }
  0xce   : > { %v1328_v58 = vunpack.i.l.bf16 %v1327_v33  ;;  %v1329_v8 = vunpack.i.h.bf16 %v1327_v33 }
  0xcf   : > { %v1322_v61 = vpop.permute.xlu0 %1321 }
  0xd0   : > { %v1323_v23 = vunpack.i.l.bf16 %v1322_v61  ;;  %v1324_v63 = vunpack.i.h.bf16 %v1322_v61 }
 0x19a   : > { %v1283_v3 = vpop.f32.mrb[0].mxu1 }
 0x19b   : > { %v1020_v11 = vsel %vm798_vm15, %v1283_v3, %v1328_v58  ;;  %v935_v17 = vpop.f32.mrb[1].mxu1 }
 0x19c   : > { %v1033_v31 = vmul.f32 %v1239_v59, %v1020_v11  ;;  %v1018_v34 = vsel %vm798_vm15, %v935_v17, %v1323_v23  ;;  %v1284_v47 = vpop.f32.mrb[2].mxu1  ;;  %v1279_v16 = vpop.f32.mrb[0].mxu0 }
 0x19d   : > { %v1031_v21 = vmul.f32 %v1239_v59, %v1018_v34  ;;  %v1021_v9 = vsel %vm798_vm15, %v1284_v47, %v1329_v8  ;;  %v938_v15 = vpop.f32.mrb[3].mxu1  ;;  %v1016_v22 = vsel %vm798_vm15, %v1279_v16, %v1318_v62  ;;  %v919_v42 = vpop.f32.mrb[1].mxu0 }
 0x19e   : > { %v1046_v41 = vadd.f32 %v1240_v25, %v1033_v31  ;;  %v1034_v1 = vmul.f32 %v1239_v59, %v1021_v9  ;;  %v1019_v2 = vsel %vm798_vm15, %v938_v15, %v1324_v63  ;;  %v1029_v51 = vmul.f32 %v1239_v59, %v1016_v22  ;;  %v1280_v6 = vpop.f32.mrb[2].mxu0 }
 0x19f   : > { %v1014_v13 = vsel %vm798_vm15, %v919_v42, %v1313_v14  ;;  %v1044_v57 = vadd.f32 %v1240_v25, %v1031_v21  ;;  %v1032_v44 = vmul.f32 %v1239_v59, %v1019_v2  ;;  %v1017_v56 = vsel %vm798_vm15, %v1280_v6, %v1319_v35  ;;  %v922_v29 = vpop.f32.mrb[3].mxu0 }
 0x1a0   : > { %v1054_v24 = vmax.f32 %v1046_v41, 0.0  ;;  %v1027_v0 = vmul.f32 %v1239_v59, %v1014_v13  ;;  %v1047_v18 = vadd.f32 %v1240_v25, %v1034_v1  ;;  %v1042_v43 = vadd.f32 %v1240_v25, %v1029_v51 }
 0x1a1   : > { %v1052_v48 = vmax.f32 %v1044_v57, 0.0  ;;  %v1030_v40 = vmul.f32 %v1239_v59, %v1017_v56  ;;  %v1015_v54 = vsel %vm798_vm15, %v922_v29, %v1314_v30  ;;  %v1045_v7 = vadd.f32 %v1240_v25, %v1032_v44 }
 0x1a2   : > { %v1262_v37 = vpack.c.bf16 %v1054_v24, %v1054_v24  ;;  %v1040_v20 = vadd.f32 %v1240_v25, %v1027_v0  ;;  %v1055_v27 = vmax.f32 %v1047_v18, 0.0  ;;  %v1028_v38 = vmul.f32 %v1239_v59, %v1015_v54 }
 0x1a3   : > { %v1050_v10 = vmax.f32 %v1042_v43, 0.0  ;;  %v1260_v55 = vpack.c.bf16 %v1052_v48, %v1052_v48  ;;  %v1043_v45 = vadd.f32 %v1240_v25, %v1030_v40  ;;  %v1053_v60 = vmax.f32 %v1045_v7, 0.0 }
 0x1a4   : > { %1095 = vst.msk [vmem:[%s1864_s10 + $0x18] sm:$0xf] %vm1088_vm3, %v1262_v37  ;;  %v1048_v12 = vmax.f32 %v1040_v20, 0.0  ;;  %v1263_v49 = vpack.c.bf16 %v1055_v27, %v1055_v27  ;;  %v1041_v28 = vadd.f32 %v1240_v25, %v1028_v38 }
 0x1a5   : > { %v1258_v50 = vpack.c.bf16 %v1050_v10, %v1050_v10  ;;  %1093 = vst.msk [vmem:[%s1864_s10 + $0x10] sm:$0xf] %vm1088_vm3, %v1260_v55  ;;  %v1051_v53 = vmax.f32 %v1043_v45, 0.0  ;;  %v1261_v32 = vpack.c.bf16 %v1053_v60, %v1053_v60 }
 0x1a6   : > { %v1256_v26 = vpack.c.bf16 %v1048_v12, %v1048_v12  ;;  %1096 = vst.msk [vmem:[%s1864_s10 + $0x1c] sm:$0xf] %vm1088_vm3, %v1263_v49  ;;  %v1049_v36 = vmax.f32 %v1041_v28, 0.0 }
 0x1a7   : > { %1091 = vst.msk [vmem:[%s1864_s10 + $0x8] sm:$0xf] %vm1088_vm3, %v1258_v50  ;;  %v1259_v19 = vpack.c.bf16 %v1051_v53, %v1051_v53  ;;  %1094 = vst.msk [vmem:[%s1864_s10 + $0x14] sm:$0xf] %vm1088_vm3, %v1261_v32 }
 0x1a8   : > { %1089 = vst.msk [vmem:[%s1864_s10] sm:$0xf] %vm1088_vm3, %v1256_v26  ;;  %v1257_v46 = vpack.c.bf16 %v1049_v36, %v1049_v36 }
 0x1a9   : > { %1092 = vst.msk [vmem:[%s1864_s10 + $0xc] sm:$0xf] %vm1088_vm3, %v1259_v19 }
 0x1aa   : > { %1090 = vst.msk [vmem:[%s1864_s10 + $0x4] sm:$0xf] %vm1088_vm3, %v1257_v46 }
 0x1ab PF: > { %s16_s21 = sadd.s32 1, %s1364_s21  }
 0x1ac   : > { %p13_p4 = scmp.ge.s32.totalorder %s16_s21, 4  }
 0x1ae   :  { %15 = sbr.rel (!%p13_p4) target bundleno = 1 (0x1), region = 83 }

// kernel: _lambda_.18
= control target key start
LH: loop header
LB: loop body
LE: loop exit
PB: predicated region body
PF: predicated region fallthrough
CT: control target
= control target key end

     0   :  { %s1246_s21 = smov 0   ;;  %s1548_s0 = inlined_call_operand.vmem [shape: bf16[2,16,64], index: 0, kind: input, shape index: {}]   ;;  %s1549_s1 = inlined_call_operand.vmem [shape: bf16[192,64], index: 1, kind: input, shape index: {}]   ;;  %s1550_s2 = inlined_call_operand.vmem [shape: bf16[192,64], index: 2, kind: input, shape index: {}]   ;;  %s1551_s3 = inlined_call_operand.vmem [shape: bf16[192,64], index: 3, kind: input, shape index: {}]   ;;  %s1552_s4 = inlined_call_operand.vmem [shape: bf16[192,64], index: 4, kind: input, shape index: {}]   ;;  %s1553_s5 = inlined_call_operand.vmem [shape: f32[6,64], index: 5, kind: input, shape index: {}]   ;;  %s1554_s6 = inlined_call_operand.vmem [shape: bf16[2,16,64], index: 6, kind: output, shape index: {}]  }
   0x1 LB: > { %s1063_s22 = sadd.s32 4294967295, %s1207_s21   ;;  %p1067_p0 = scmp.ge.s32.totalorder %s1207_s21, 1  ;;  %s1207_s21 = sphi %s1246_s21, %s16_s21  }
   0x2   : > { %p212_p1 = scmp.lt.s32.totalorder %s1207_s21, 3 }
   0x4   : > { %p213_p2 = pnand %p1067_p0, %p212_p1 }
   0x5   : > { %p242_p3 = scmp.lt.s32.totalorder (!%p213_p2), %s1063_s22, 1  ;;  %v1152_v0 = vld [vmem:[%s1549_s1] sm:$0xff] (!%p213_p2)   ;;  %v1209_v1 = vmov (!%p213_p2), 0   ;;  %v1153_v2 = vld [vmem:[%s1549_s1 + $0x8] sm:$0xff] (!%p213_p2)   ;;  %v1154_v4 = vld [vmem:[%s1549_s1 + $0x10] sm:$0xff] (!%p213_p2)   ;;  %vm301_vm0 = vcmask (!%p213_p2), 1045504   ;;  %v257_v20 = vlaneseq (!%p213_p2) }
   0x6   : > { %216 = sbr.rel (%p213_p2) target bundleno = 1368 (0x558), region = 44  ;;  %412 = vmatprep.subr.bf16.mxu0 (!%p213_p2), %v1209_v1  ;;  %603 = vmatprep.subr.bf16.mxu1 (!%p213_p2), %v1209_v1  ;;  %s1210_s9 = smov (!%p213_p2), 64   ;;  %vm306_vm1 = vcmask (!%p213_p2), 523264   ;;  %v1155_v6 = vld [vmem:[%s1549_s1 + $0x18] sm:$0xff] (!%p213_p2)   ;;  %v1156_v8 = vld [vmem:[%s1549_s1 + $0x20] sm:$0xff] (!%p213_p2)   ;;  %v1157_v9 = vld [vmem:[%s1549_s1 + $0x28] sm:$0xff] (!%p213_p2)  }
   0x7   : > { %413 = vmatpush1.bf16.msra.mxu0 (!%p213_p2), %v1152_v0  ;;  %v1158_v10 = vld [vmem:[%s1549_s1 + $0x30] sm:$0xff] (!%p213_p2)   ;;  %v1159_v11 = vld [vmem:[%s1549_s1 + $0x38] sm:$0xff] (!%p213_p2)   ;;  %v1160_v12 = vld [vmem:[%s1549_s1 + $0x40] sm:$0xff] (!%p213_p2)   ;;  %vm296_vm2 = vcmask (!%p213_p2), 1041408   ;;  %v258_v21 = vshrl.u32 (!%p213_p2), %v257_v20, 7  ;;  %vm484_vm11 = vcmask (!%p213_p2), 1047552  }
   0x8   : > { %414 = vmatprep.subr.bf16.mxu0 (!%p213_p2), %v1209_v1  ;;  %v1161_v13 = vld [vmem:[%s1549_s1 + $0x48] sm:$0xff] (!%p213_p2)   ;;  %v1162_v14 = vld [vmem:[%s1549_s1 + $0x50] sm:$0xff] (!%p213_p2)   ;;  %v1163_v15 = vld [vmem:[%s1549_s1 + $0x58] sm:$0xff] (!%p213_p2)   ;;  %vm485_vm12 = vsmask.f32 (!%p213_p2), 7424  ;;  %vm466_vm15 = vcmask (!%p213_p2), 1040384  }
   0x9   : > { %v259_v22 = vadd.s32 (!%p213_p2), 8, %v258_v21  ;;  %v264_v23 = vand.u32 (!%p213_p2), 3, %v258_v21  ;;  %v1164_v26 = vld [vmem:[%s1550_s2] sm:$0xff] (!%p213_p2)   ;;  %v1165_v29 = vld [vmem:[%s1550_s2 + $0x8] sm:$0xff] (!%p213_p2)   ;;  %v1166_v30 = vld [vmem:[%s1550_s2 + $0x10] sm:$0xff] (!%p213_p2)  }
   0xa   : > { %604 = vmatpush1.bf16.msra.mxu1 (!%p213_p2), %v1164_v26  ;;  %v1167_v31 = vld [vmem:[%s1550_s2 + $0x18] sm:$0xff] (!%p213_p2)   ;;  %v1168_v32 = vld [vmem:[%s1550_s2 + $0x20] sm:$0xff] (!%p213_p2)   ;;  %v1169_v33 = vld [vmem:[%s1550_s2 + $0x28] sm:$0xff] (!%p213_p2)  }
   0xb   : > { %415 = vmatpush1.bf16.msra.mxu0 (!%p213_p2), %v1153_v2  ;;  %v271_v24 = vand.u32 (!%p213_p2), 3, %v259_v22  ;;  %vm456_vm3 = vcmp.ge.s32.totalorder (!%p213_p2), %v264_v23, 1  ;;  %605 = vmatprep.subr.bf16.mxu1 (!%p213_p2), %v1209_v1  ;;  %v1170_v34 = vld [vmem:[%s1550_s2 + $0x30] sm:$0xff] (!%p213_p2)   ;;  %v1171_v35 = vld [vmem:[%s1550_s2 + $0x38] sm:$0xff] (!%p213_p2)   ;;  %v1172_v36 = vld [vmem:[%s1550_s2 + $0x40] sm:$0xff] (!%p213_p2)   ;;  %vm479_vm7 = vcmp.lt.s32.totalorder (!%p213_p2), %v264_v23, 3 }
   0xc   : > { %416 = vmatprep.subr.bf16.mxu0 (!%p213_p2), %v1209_v1  ;;  %vm470_vm5 = vmpackc.low (!%p213_p2), %vm456_vm3, %vm456_vm3  ;;  %v1173_v37 = vld [vmem:[%s1550_s2 + $0x48] sm:$0xff] (!%p213_p2)   ;;  %v1174_v38 = vld [vmem:[%s1550_s2 + $0x50] sm:$0xff] (!%p213_p2)   ;;  %vm467_vm3 = vsmask.f32 (!%p213_p2), 256 }
   0xd   : > { %s1564_s22 = smov (!%p242_p3, %s1063_s22), 1  ;;  %vm457_vm4 = vcmp.ge.s32.totalorder %v271_v24, 1  ;;  %v1323_v25 = vsel %vm470_vm5, 65537, %v1209_v1  ;;  %v1175_v39 = vld [vmem:[%s1550_s2 + $0x58] sm:$0xff]   ;;  %v1073_v40 = vld [vmem:[%s1553_s5] ss:$0 sm:$0xff]  ;;  %vm488_vm9 = vmpackc.low %vm479_vm7, %vm479_vm7 }
   0xe   : > { %s1137_s27 = sshll.u32 %s1564_s22, 3  ;;  %vm471_vm6 = vmpackc.low %vm457_vm4, %vm457_vm4  ;;  %606 = vmatpush1.bf16.msra.mxu1 %v1165_v29  ;;  %vm480_vm8 = vcmp.lt.s32.totalorder %v271_v24, 3  ;;  %v490_v49 = vsel %vm488_vm9, 65537, %v1209_v1  ;;  %v1103_v20 = vld [vmem:[%s1553_s5 + $0x2] ss:$0 sm:$0xff] }
   0xf   : > { %s246_s30 = scalar_lea.vmem %s1548_s0, %s1137_s27  ;;  %417 = vmatpush1.bf16.msra.mxu0 %v1154_v4  ;;  %v1329_v27 = vsel %vm471_vm6, 65537, %v1209_v1  ;;  %607 = vmatprep.subr.bf16.mxu1 %v1209_v1  ;;  %vm489_vm10 = vmpackc.low %vm480_vm8, %vm480_vm8  ;;  %v1131_v57 = vld [vmem:[%s1553_s5 + $0x4] ss:$0 sm:$0xff]  ;;  %v1132_v59 = vld [vmem:[%s1553_s5 + $0x5] ss:$0 sm:$0xff]  ;;  %s251_s13 = scalar_lea.vmem %s1554_s6, %s1137_s27 }
  0x10   : > { %v1271_v3 = vld [vmem:[%s246_s30] sm:$0xff]   ;;  %418 = vmatprep.subr.bf16.mxu0 %v1209_v1  ;;  %v1087_v28 = vcombine.low %v1323_v25, %v1329_v27  ;;  %v491_v50 = vsel %vm489_vm10, 65537, %v1209_v1  ;;  %vm1384_vm13 = vmand %vm484_vm11, %vm485_vm12 }
  0x11   : > { %304 = vrot.lane.b32.xlu0 %v1271_v3, %s1210_s9  ;;  %v300_v5 = vrot.slane %v1271_v3, 2  ;;  %v295_v16 = vrot.slane %v1271_v3, 6  ;;  %v1088_v54 = vcombine.low %v490_v49, %v491_v50  ;;  %vm1397_vm4 = vmand %vm466_vm15, %vm467_vm3  ;;  %v1199_v49 = vld [vmem:[%s1552_s4 + $0x58] sm:$0xff]   ;;  %v1104_v50 = vld [vmem:[%s1553_s5 + $0x3] ss:$0 sm:$0xff]  ;;  %v991_v63 = vunpack.c.l.bf16 %v1271_v3 }
  0x12   : > { %608 = vmatpush1.bf16.msra.mxu1 %v1166_v30  ;;  %vm1406_vm5 = vcmp.ne.s16.totalorder %v1087_v28, 0  ;;  %v992_v2 = vunpack.c.h.bf16 %v1271_v3 }
  0x13   : > { %v303_v7 = vsel %vm301_vm0, %v300_v5, 0  ;;  %419 = vmatpush1.bf16.msra.mxu0 %v1155_v6  ;;  %v299_v17 = vsel %vm296_vm2, 0, %v295_v16  ;;  %609 = vmatprep.subr.bf16.mxu1 %v1209_v1  ;;  %vm1388_vm14 = vcmp.ne.s16.totalorder %v1088_v54, 0  ;;  %v1185_v16 = vld [vmem:[%s1551_s3 + $0x48] sm:$0xff]  }
  0x14   : > { %1086 = vmatprep.mubr.msk.bf16.mxu0 %vm306_vm1, %v303_v7  ;;  %420 = vmatprep.subr.bf16.mxu0 %v1209_v1  ;;  %v1176_v7 = vld [vmem:[%s1551_s3] sm:$0xff]  }
  0x16   : > { %610 = vmatpush1.bf16.msra.mxu1 %v1167_v31 }
  0x17   : > { %421 = vmatpush1.bf16.msra.mxu0 %v1156_v8  ;;  %611 = vmatprep.subr.bf16.mxu1 %v1209_v1  ;;  %v1177_v8 = vld [vmem:[%s1551_s3 + $0x8] sm:$0xff]  }
  0x18   : > { %422 = vmatprep.subr.bf16.mxu0 %v1209_v1 }
  0x1a   : > { %612 = vmatpush1.bf16.msra.mxu1 %v1168_v32 }
  0x1b   : > { %423 = vmatpush1.bf16.msra.mxu0 %v1157_v9  ;;  %613 = vmatprep.subr.bf16.mxu1 %v1209_v1  ;;  %v1178_v9 = vld [vmem:[%s1551_s3 + $0x10] sm:$0xff]  }
  0x1c   : > { %424 = vmatprep.subr.bf16.mxu0 %v1209_v1 }
  0x1e   : > { %614 = vmatpush1.bf16.msra.mxu1 %v1169_v33 }
  0x1f   : > { %425 = vmatpush1.bf16.msra.mxu0 %v1158_v10  ;;  %615 = vmatprep.subr.bf16.mxu1 %v1209_v1  ;;  %v1179_v10 = vld [vmem:[%s1551_s3 + $0x18] sm:$0xff]  }
  0x20   : > { %426 = vmatprep.subr.bf16.mxu0 %v1209_v1 }
  0x22   : > { %616 = vmatpush1.bf16.msra.mxu1 %v1170_v34 }
  0x23   : > { %427 = vmatpush1.bf16.msra.mxu0 %v1159_v11  ;;  %617 = vmatprep.subr.bf16.mxu1 %v1209_v1  ;;  %v1180_v11 = vld [vmem:[%s1551_s3 + $0x20] sm:$0xff]  }
  0x24   : > { %428 = vmatprep.subr.bf16.mxu0 %v1209_v1 }
  0x26   : > { %618 = vmatpush1.bf16.msra.mxu1 %v1171_v35 }
  0x27   : > { %429 = vmatpush1.bf16.msra.mxu0 %v1160_v12  ;;  %619 = vmatprep.subr.bf16.mxu1 %v1209_v1  ;;  %v1181_v12 = vld [vmem:[%s1551_s3 + $0x28] sm:$0xff]  }
  0x28   : > { %430 = vmatprep.subr.bf16.mxu0 %v1209_v1 }
  0x2a   : > { %620 = vmatpush1.bf16.msra.mxu1 %v1172_v36 }
  0x2b   : > { %431 = vmatpush1.bf16.msra.mxu0 %v1161_v13  ;;  %621 = vmatprep.subr.bf16.mxu1 %v1209_v1  ;;  %v1182_v13 = vld [vmem:[%s1551_s3 + $0x30] sm:$0xff]  }
  0x2c   : > { %432 = vmatprep.subr.bf16.mxu0 %v1209_v1 }
  0x2e   : > { %622 = vmatpush1.bf16.msra.mxu1 %v1173_v37 }
  0x2f   : > { %433 = vmatpush1.bf16.msra.mxu0 %v1162_v14  ;;  %623 = vmatprep.subr.bf16.mxu1 %v1209_v1  ;;  %v1183_v14 = vld [vmem:[%s1551_s3 + $0x38] sm:$0xff]  }
  0x30   : > { %434 = vmatprep.subr.bf16.mxu0 %v1209_v1 }
  0x32   : > { %624 = vmatpush1.bf16.msra.mxu1 %v1174_v38  ;;  %v1188_v38 = vld [vmem:[%s1552_s4] sm:$0xff]  }
  0x33   : > { %435 = vmatpush1.bf16.msra.mxu0 %v1163_v15  ;;  %625 = vmatprep.subr.bf16.mxu1 %v1209_v1  ;;  %v1184_v15 = vld [vmem:[%s1551_s3 + $0x40] sm:$0xff]  }
  0x34   : > { %773 = vmatprep.subr.bf16.mxu0 %v1209_v1 }
  0x36   : > { %626 = vmatpush1.bf16.msra.mxu1 %v1175_v39  ;;  %v1189_v39 = vld [vmem:[%s1552_s4 + $0x8] sm:$0xff]  }
  0x37   : > { %938 = vmatprep.subr.bf16.mxu1 %v1209_v1 }
  0x83   : > { %v305_v18 = vpop.permute.xlu0 %304 }
  0x84   : > { %v308_v19 = vsel %vm306_vm1, %v299_v17, %v305_v18  ;;  %v1186_v17 = vld [vmem:[%s1551_s3 + $0x50] sm:$0xff]   ;;  %v1187_v18 = vld [vmem:[%s1551_s3 + $0x58] sm:$0xff]  }
  0x85   : > { %445 = vmatmul.mubr.bf16.vlgmr.msra.gmra.mrb[0].mxu0 %v308_v19  ;;  %v1102_v19 = vld [vmem:[%s1553_s5 + $0x1] ss:$0 sm:$0xff] }
  0x86   : > { %774 = vmatpush1.bf16.msra.mxu0 %v1176_v7 }
  0x87   : > { %775 = vmatprep.subr.bf16.mxu0 %v1209_v1 }
  0x8a   : > { %776 = vmatpush1.bf16.msra.mxu0 %v1177_v8 }
  0x8b   : > { %777 = vmatprep.subr.bf16.mxu0 %v1209_v1 }
  0x8e   : > { %778 = vmatpush1.bf16.msra.mxu0 %v1178_v9 }
  0x8f   : > { %779 = vmatprep.subr.bf16.mxu0 %v1209_v1 }
  0x92   : > { %780 = vmatpush1.bf16.msra.mxu0 %v1179_v10 }
  0x93   : > { %781 = vmatprep.subr.bf16.mxu0 %v1209_v1 }
  0x96   : > { %782 = vmatpush1.bf16.msra.mxu0 %v1180_v11 }
  0x97   : > { %783 = vmatprep.subr.bf16.mxu0 %v1209_v1 }
  0x9a   : > { %784 = vmatpush1.bf16.msra.mxu0 %v1181_v12 }
  0x9b   : > { %785 = vmatprep.subr.bf16.mxu0 %v1209_v1 }
  0x9e   : > { %786 = vmatpush1.bf16.msra.mxu0 %v1182_v13 }
  0x9f   : > { %787 = vmatprep.subr.bf16.mxu0 %v1209_v1 }
  0xa2   : > { %788 = vmatpush1.bf16.msra.mxu0 %v1183_v14 }
  0xa3   : > { %789 = vmatprep.subr.bf16.mxu0 %v1209_v1 }
  0xa6   : > { %790 = vmatpush1.bf16.msra.mxu0 %v1184_v15 }
  0xa7   : > { %791 = vmatprep.subr.bf16.mxu0 %v1209_v1 }
  0xaa   : > { %792 = vmatpush1.bf16.msra.mxu0 %v1185_v16 }
  0xab   : > { %793 = vmatprep.subr.bf16.mxu0 %v1209_v1 }
  0xae   : > { %794 = vmatpush1.bf16.msra.mxu0 %v1186_v17 }
  0xaf   : > { %795 = vmatprep.subr.bf16.mxu0 %v1209_v1 }
  0xb2   : > { %796 = vmatpush1.bf16.msra.mxu0 %v1187_v18 }
 0x158   : > { %v446_v41 = vpop.f32.mrb[0].mxu0 }
 0x159   : > { %v447_v42 = vadd.f32 %v1073_v40, %v446_v41  ;;  %v448_v43 = vpop.f32.mrb[1].mxu0  ;;  %v1191_v41 = vld [vmem:[%s1552_s4 + $0x18] sm:$0xff]  }
 0x15a   : > { %v449_v44 = vpop.f32.mrb[2].mxu0  ;;  %v1193_v43 = vld [vmem:[%s1552_s4 + $0x28] sm:$0xff]  }
 0x15b   : > { %v450_v45 = vadd.f32 %v1073_v40, %v449_v44  ;;  %v451_v46 = vpop.f32.mrb[3].mxu0  ;;  %v453_v47 = vmax.f32 %v447_v42, 0.0  ;;  %v1190_v40 = vld [vmem:[%s1552_s4 + $0x10] sm:$0xff]   ;;  %v1192_v42 = vld [vmem:[%s1552_s4 + $0x20] sm:$0xff]  }
 0x15c   : > { %v1194_v44 = vld [vmem:[%s1552_s4 + $0x30] sm:$0xff]   ;;  %v1196_v46 = vld [vmem:[%s1552_s4 + $0x40] sm:$0xff]  }
 0x15d   : > { %v454_v48 = vmax.f32 %v450_v45, 0.0  ;;  %v1195_v45 = vld [vmem:[%s1552_s4 + $0x38] sm:$0xff]  }
 0x15f   : > { %v455_v51 = vpack.c.bf16 %v454_v48, %v453_v47  ;;  %v1197_v47 = vld [vmem:[%s1552_s4 + $0x48] sm:$0xff]   ;;  %v1198_v48 = vld [vmem:[%s1552_s4 + $0x50] sm:$0xff]  }
 0x161   : > { %498 = vrot.lane.b32.xlu0 %v455_v51, %s1210_s9  ;;  %v459_v52 = vshrl.u32 %v455_v51, 16  ;;  %v462_v53 = vshll.u32 %v455_v51, 16 }
 0x163   : > { %v461_v55 = vrot.slane %v459_v52, 7  ;;  %v481_v56 = vrot.slane %v462_v53, 1 }
 0x165   : > { %v482_v58 = vor.u32 %v481_v56, %v459_v52  ;;  %v464_v60 = vor.u32 %v462_v53, %v461_v55 }
 0x167   : > { %v487_v61 = vsel %vm1384_vm13, %v482_v58, 0  ;;  %v469_v0 = vsel %vm1397_vm4, 0, %v464_v60 }
 0x168   : > { %v496_v62 = vsel %vm1388_vm14, %v487_v61, 0  ;;  %v478_v5 = vsel %vm1406_vm5, %v469_v0, 0 }
 0x169   : > { %1101 = vmatprep.mubr.msk.bf16.mxu1 %vm306_vm1, %v496_v62 }
 0x1d3   : > { %v499_v4 = vpop.permute.xlu0 %498 }
 0x1d4   : > { %v502_v6 = vsel %vm306_vm1, %v478_v5, %v499_v4 }
 0x1d5   : > { %636 = vmatmul.mubr.bf16.vlgmr.msra.gmra.mrb[0].mxu1 %v502_v6 }
 0x1d6   : > { %939 = vmatpush1.bf16.msra.mxu1 %v1188_v38 }
 0x1d7   : > { %940 = vmatprep.subr.bf16.mxu1 %v1209_v1 }
 0x1da   : > { %941 = vmatpush1.bf16.msra.mxu1 %v1189_v39 }
 0x1db   : > { %942 = vmatprep.subr.bf16.mxu1 %v1209_v1 }
 0x1de   : > { %943 = vmatpush1.bf16.msra.mxu1 %v1190_v40 }
 0x1df   : > { %944 = vmatprep.subr.bf16.mxu1 %v1209_v1 }
 0x1e2   : > { %945 = vmatpush1.bf16.msra.mxu1 %v1191_v41 }
 0x1e3   : > { %946 = vmatprep.subr.bf16.mxu1 %v1209_v1 }
 0x1e6   : > { %947 = vmatpush1.bf16.msra.mxu1 %v1192_v42 }
 0x1e7   : > { %948 = vmatprep.subr.bf16.mxu1 %v1209_v1 }
 0x1ea   : > { %949 = vmatpush1.bf16.msra.mxu1 %v1193_v43 }
 0x1eb   : > { %950 = vmatprep.subr.bf16.mxu1 %v1209_v1 }
 0x1ee   : > { %951 = vmatpush1.bf16.msra.mxu1 %v1194_v44 }
 0x1ef   : > { %952 = vmatprep.subr.bf16.mxu1 %v1209_v1 }
 0x1f2   : > { %953 = vmatpush1.bf16.msra.mxu1 %v1195_v45 }
 0x1f3   : > { %954 = vmatprep.subr.bf16.mxu1 %v1209_v1 }
 0x1f6   : > { %955 = vmatpush1.bf16.msra.mxu1 %v1196_v46 }
 0x1f7   : > { %956 = vmatprep.subr.bf16.mxu1 %v1209_v1 }
 0x1fa   : > { %957 = vmatpush1.bf16.msra.mxu1 %v1197_v47 }
 0x1fb   : > { %958 = vmatprep.subr.bf16.mxu1 %v1209_v1 }
 0x1fe   : > { %959 = vmatpush1.bf16.msra.mxu1 %v1198_v48 }
 0x1ff   : > { %960 = vmatprep.subr.bf16.mxu1 %v1209_v1 }
 0x202   : > { %961 = vmatpush1.bf16.msra.mxu1 %v1199_v49 }
 0x2a8   : > { %v637_v21 = vpop.f32.mrb[0].mxu1 }
 0x2a9   : > { %v648_v22 = vmul.f32 %v1102_v19, %v637_v21  ;;  %v639_v23 = vpop.f32.mrb[1].mxu1 }
 0x2aa   : > { %v640_v24 = vpop.f32.mrb[2].mxu1 }
 0x2ab   : > { %v654_v25 = vadd.f32 %v1103_v20, %v648_v22  ;;  %v649_v26 = vmul.f32 %v1102_v19, %v640_v24  ;;  %v642_v27 = vpop.f32.mrb[3].mxu1 }
 0x2ad   : > { %v655_v28 = vadd.f32 %v1103_v20, %v649_v26  ;;  %v656_v29 = vmax.f32 %v654_v25, 0.0 }
 0x2af   : > { %v657_v30 = vmax.f32 %v655_v28, 0.0 }
 0x2b1   : > { %v658_v31 = vpack.c.bf16 %v657_v30, %v656_v29 }
 0x2b3   : > { %666 = vrot.lane.b32.xlu1 %v658_v31, %s1210_s9  ;;  %v663_v32 = vrot.slane %v658_v31, 2  ;;  %v660_v34 = vrot.slane %v658_v31, 6 }
 0x2b5   : > { %v665_v33 = vsel %vm301_vm0, %v663_v32, 0  ;;  %v662_v36 = vsel %vm296_vm2, 0, %v660_v34  ;;  %vm1005_vm0 = vcmask 519168  }
 0x2b6   : > { %1117 = vmatprep.mubr.msk.bf16.mxu0 %vm306_vm1, %v665_v33 }
 0x325   : > { %v667_v35 = vpop.permute.xlu1 %666 }
 0x326   : > { %v669_v37 = vsel %vm306_vm1, %v662_v36, %v667_v35 }
 0x327   : > { %806 = vmatmul.mubr.bf16.vlgmr.msra.gmra.mrb[4].mxu0 %v669_v37 }
 0x3fa   : > { %v807_v51 = vpop.f32.mrb[4].mxu0 }
 0x3fb   : > { %v808_v52 = vadd.f32 %v1104_v50, %v807_v51  ;;  %v809_v53 = vpop.f32.mrb[5].mxu0 }
 0x3fc   : > { %v810_v54 = vpop.f32.mrb[6].mxu0 }
 0x3fd   : > { %v811_v55 = vadd.f32 %v1104_v50, %v810_v54  ;;  %v812_v56 = vpop.f32.mrb[7].mxu0  ;;  %v814_v58 = vmax.f32 %v808_v52, 0.0 }
 0x3ff   : > { %v815_v60 = vmax.f32 %v811_v55, 0.0 }
 0x401   : > { %v816_v61 = vpack.c.bf16 %v815_v60, %v814_v58 }
 0x403   : > { %v818_v62 = vshrl.u32 %v816_v61, 16  ;;  %v821_v0 = vshll.u32 %v816_v61, 16  ;;  %833 = vrot.lane.b32.xlu1 %v816_v61, %s1210_s9 }
 0x405   : > { %v827_v4 = vrot.slane %v821_v0, 1  ;;  %v820_v1 = vrot.slane %v818_v62, 7 }
 0x407   : > { %v828_v5 = vor.u32 %v827_v4, %v818_v62  ;;  %v823_v6 = vor.u32 %v821_v0, %v820_v1 }
 0x409   : > { %v830_v7 = vsel %vm1384_vm13, %v828_v5, 0  ;;  %v825_v9 = vsel %vm1397_vm4, 0, %v823_v6 }
 0x40a   : > { %v831_v8 = vsel %vm1388_vm14, %v830_v7, 0  ;;  %v826_v11 = vsel %vm1406_vm5, %v825_v9, 0 }
 0x40b   : > { %1130 = vmatprep.mubr.msk.bf16.mxu1 %vm306_vm1, %v831_v8 }
 0x475   : > { %v834_v10 = vpop.permute.xlu1 %833 }
 0x476   : > { %v837_v12 = vsel %vm306_vm1, %v826_v11, %v834_v10 }
 0x477   : > { %971 = vmatmul.mubr.bf16.vlgmr.msra.gmra.mrb[4].mxu1 %v837_v12 }
 0x54a   : > { %v972_v13 = vpop.f32.mrb[4].mxu1 }
 0x54b   : > { %v983_v14 = vmul.f32 %v1131_v57, %v972_v13  ;;  %v974_v15 = vpop.f32.mrb[5].mxu1 }
 0x54c   : > { %v975_v16 = vpop.f32.mrb[6].mxu1 }
 0x54d   : > { %v989_v17 = vadd.f32 %v1132_v59, %v983_v14  ;;  %v984_v18 = vmul.f32 %v1131_v57, %v975_v16  ;;  %v977_v19 = vpop.f32.mrb[7].mxu1 }
 0x54f   : > { %v993_v20 = vadd.f32 %v991_v63, %v989_v17  ;;  %v990_v21 = vadd.f32 %v1132_v59, %v984_v18 }
 0x551   : > { %v995_v22 = vmax.f32 %v993_v20, 0.0  ;;  %v994_v23 = vadd.f32 %v992_v2, %v990_v21 }
 0x553   : > { %v1139_v24 = vpack.c.bf16 %v995_v22, %v995_v22  ;;  %v996_v25 = vmax.f32 %v994_v23, 0.0 }
 0x555   : > { %1006 = vst.msk [vmem:[%s251_s13] sm:$0xf] %vm1005_vm0, %v1139_v24  ;;  %v1140_v26 = vpack.c.bf16 %v996_v25, %v996_v25 }
 0x557   : > { %1007 = vst.msk [vmem:[%s251_s13 + $0x4] sm:$0xf] %vm1005_vm0, %v1140_v26 }
 0x558 PF: > { %s16_s21 = sadd.s32 1, %s1207_s21  }
 0x559   : > { %p13_p4 = scmp.ge.s32.totalorder %s16_s21, 4  }
 0x55b   :  { %15 = sbr.rel (!%p13_p4) target bundleno = 1 (0x1), region = 74 }

// kernel: _lambda_.23
= control target key start
LH: loop header
LB: loop body
LE: loop exit
PB: predicated region body
PF: predicated region fallthrough
CT: control target
= control target key end

     0   :  { %s1138_s21 = smov 0   ;;  %s1334_s0 = inlined_call_operand.vmem [shape: bf16[2,4,64], index: 0, kind: input, shape index: {}]   ;;  %s1335_s1 = inlined_call_operand.vmem [shape: bf16[2,4,64], index: 1, kind: input, shape index: {}]   ;;  %s1336_s2 = inlined_call_operand.vmem [shape: bf16[2,4,64], index: 2, kind: input, shape index: {}]   ;;  %s1337_s3 = inlined_call_operand.vmem [shape: bf16[2,4,64], index: 3, kind: input, shape index: {}]   ;;  %s1338_s4 = inlined_call_operand.vmem [shape: bf16[576,64], index: 4, kind: input, shape index: {}]   ;;  %s1339_s5 = inlined_call_operand.vmem [shape: f32[2,128], index: 5, kind: input, shape index: {}]   ;;  %s1340_s6 = inlined_call_operand.vmem [shape: bf16[2,4,128], index: 6, kind: output, shape index: {}]  }
   0x1 LB: > { %s931_s22 = sadd.s32 4294967295, %s1097_s21   ;;  %p935_p0 = scmp.ge.s32.totalorder %s1097_s21, 1  ;;  %s1097_s21 = sphi %s1138_s21, %s16_s21  }
   0x2   : > { %p238_p1 = scmp.lt.s32.totalorder %s1097_s21, 3 }
   0x4   : > { %p239_p2 = pnand %p935_p0, %p238_p1 }
   0x5   : > { %p278_p3 = scmp.lt.s32.totalorder (!%p239_p2), %s931_s22, 1  ;;  %v303_v0 = vlaneseq (!%p239_p2)  ;;  %v1055_v1 = vld [vmem:[%s1338_s4 + $0x40] sm:$0xff] (!%p239_p2)   ;;  %v1099_v2 = vmov (!%p239_p2), 1983009808   ;;  %vm370_vm0 = vsmask.f32 (!%p239_p2), 256 }
   0x6   : > { %242 = sbr.rel (%p239_p2) target bundleno = 389 (0x185), region = 44  ;;  %v320_v3 = vunpack.c.l.s4 (!%p239_p2), %v1099_v2  ;;  %982 = vmatprep.subr.bf16.mxu0 (!%p239_p2), %v1055_v1  ;;  %vm346_vm1 = vcmask (!%p239_p2), 1040384   ;;  %v1056_v6 = vld [vmem:[%s1338_s4] sm:$0xff] (!%p239_p2)   ;;  %v1059_v13 = vld [vmem:[%s1338_s4 + $0x48] sm:$0xff] (!%p239_p2)   ;;  %v1063_v25 = vld [vmem:[%s1338_s4 + $0x50] sm:$0xff] (!%p239_p2)   ;;  %vm331_vm5 = vcmask (!%p239_p2), 1041408  }
   0x7   : > { %v304_v4 = vshrl.u32 (!%p239_p2), %v303_v0, 7  ;;  %v1057_v8 = vld [vmem:[%s1338_s4 + $0xc0] sm:$0xff] (!%p239_p2)   ;;  %983 = vmatpush3.bf16.msra.mxu0 (!%p239_p2), %v1056_v6  ;;  %vm1176_vm3 = vmand (!%p239_p2), %vm346_vm1, %vm370_vm0  ;;  %v1060_v19 = vld [vmem:[%s1338_s4 + $0x8] sm:$0xff] (!%p239_p2)   ;;  %vm332_vm6 = vsmask.f32 (!%p239_p2), 1280  ;;  %v1101_v1 = vmov (!%p239_p2), 0.0  }
   0x8   : > { %v321_v5 = vunpack.c.0.s8 (!%p239_p2), %v320_v3  ;;  %v1058_v9 = vld [vmem:[%s1338_s4 + $0x80] sm:$0xff] (!%p239_p2)   ;;  %1004 = vmatprep.subr.bf16.mxu1 (!%p239_p2), %v1057_v8  ;;  %984 = vmatprep.subr.bf16.mxu0 (!%p239_p2), %v1059_v13  ;;  %v1061_v21 = vld [vmem:[%s1338_s4 + $0xc8] sm:$0xff] (!%p239_p2)   ;;  %v1064_v27 = vld [vmem:[%s1338_s4 + $0x10] sm:$0xff] (!%p239_p2)   ;;  %vm391_vm8 = vcmask (!%p239_p2), 523264   ;;  %vm1102_vm9 = vmmov (!%p239_p2), 0  }
   0x9   : > { %v309_v7 = vand.u32 (!%p239_p2), 1, %v304_v4  ;;  %1005 = vmatpush3.bf16.msra.mxu1 (!%p239_p2), %v1058_v9  ;;  %v1062_v24 = vld [vmem:[%s1338_s4 + $0x88] sm:$0xff] (!%p239_p2)   ;;  %v1065_v30 = vld [vmem:[%s1338_s4 + $0xd0] sm:$0xff] (!%p239_p2)   ;;  %v1067_v34 = vld [vmem:[%s1338_s4 + $0x58] sm:$0xff] (!%p239_p2)  }
   0xa   : > { %v324_v10 = vsub.s32 (!%p239_p2), %v321_v5, %v304_v4  ;;  %1006 = vmatprep.subr.bf16.mxu1 (!%p239_p2), %v1061_v21  ;;  %v1066_v32 = vld [vmem:[%s1338_s4 + $0x90] sm:$0xff] (!%p239_p2)   ;;  %v1068_v37 = vld [vmem:[%s1338_s4 + $0x18] sm:$0xff] (!%p239_p2)   ;;  %v1071_v42 = vld [vmem:[%s1338_s4 + $0x60] sm:$0xff] (!%p239_p2)  }
   0xb   : > { %vm317_vm2 = vcmp.ge.s32.totalorder (!%p239_p2), %v309_v7, 1  ;;  %985 = vmatpush3.bf16.msra.mxu0 (!%p239_p2), %v1060_v19  ;;  %v1069_v39 = vld [vmem:[%s1338_s4 + $0xd8] sm:$0xff] (!%p239_p2)   ;;  %v1072_v44 = vld [vmem:[%s1338_s4 + $0x20] sm:$0xff] (!%p239_p2)   ;;  %v1075_v48 = vld [vmem:[%s1338_s4 + $0x68] sm:$0xff] (!%p239_p2)  }
   0xc   : > { %vm1188_vm4 = vmpackc.low (!%p239_p2), %vm317_vm2, %vm317_vm2  ;;  %986 = vmatprep.subr.bf16.mxu0 (!%p239_p2), %v1063_v25  ;;  %v1070_v40 = vld [vmem:[%s1338_s4 + $0x98] sm:$0xff] (!%p239_p2)   ;;  %v1073_v45 = vld [vmem:[%s1338_s4 + $0xe0] sm:$0xff] (!%p239_p2)  }
   0xd   : > { %s1346_s22 = smov (!%p278_p3, %s931_s22), 1  ;;  %1007 = vmatpush3.bf16.msra.mxu1 %v1062_v24  ;;  %v1074_v47 = vld [vmem:[%s1338_s4 + $0xa0] sm:$0xff]   ;;  %v1076_v50 = vld [vmem:[%s1338_s4 + $0x28] sm:$0xff]   ;;  %v1079_v55 = vld [vmem:[%s1338_s4 + $0x70] sm:$0xff]  }
   0xe   : > { %s1152_s27 = sshll.u32 %s1346_s22, 1  ;;  %s1100_s22 = smov 64   ;;  %1008 = vmatprep.subr.bf16.mxu1 %v1065_v30  ;;  %v1077_v51 = vld [vmem:[%s1338_s4 + $0xe8] sm:$0xff]   ;;  %v1080_v56 = vld [vmem:[%s1338_s4 + $0x30] sm:$0xff]   ;;  %v1083_v59 = vld [vmem:[%s1338_s4 + $0x78] sm:$0xff]  }
   0xf   : > { %s289_s10 = scalar_lea.vmem %s1336_s2, %s1152_s27  ;;  %s293_s13 = scalar_lea.vmem %s1337_s3, %s1152_s27  ;;  %987 = vmatpush3.bf16.msra.mxu0 %v1064_v27  ;;  %v1078_v53 = vld [vmem:[%s1338_s4 + $0xa8] sm:$0xff]   ;;  %v1081_v57 = vld [vmem:[%s1338_s4 + $0xf0] sm:$0xff]   ;;  %v1084_v61 = vld [vmem:[%s1338_s4 + $0x38] sm:$0xff]  }
  0x10   : > { %v1168_v11 = vld [vmem:[%s289_s10] sm:$0x3]  ;;  %s285_s16 = scalar_lea.vmem %s1335_s1, %s1152_s27  ;;  %988 = vmatprep.subr.bf16.mxu0 %v1067_v34  ;;  %v1082_v58 = vld [vmem:[%s1338_s4 + $0xb0] sm:$0xff]   ;;  %s281_s8 = scalar_lea.vmem %s1334_s0, %s1152_s27  ;;  %v1085_v62 = vld [vmem:[%s1338_s4 + $0xf8] sm:$0xff]  }
  0x11   : > { %v1183_v14 = vld [vmem:[%s293_s13] sm:$0x3]  ;;  %v344_v15 = vrot.slane %v1168_v11, %v324_v10  ;;  %1009 = vmatpush3.bf16.msra.mxu1 %v1066_v32  ;;  %v1086_v0 = vld [vmem:[%s1338_s4 + $0xb8] sm:$0xff]   ;;  %vm333_vm7 = vmand %vm331_vm5, %vm332_vm6  ;;  %s297_s29 = scalar_lea.vmem %s1340_s6, %s1152_s27 }
  0x12   : > { %v1186_v16 = vld [vmem:[%s285_s16] sm:$0x3]  ;;  %v325_v28 = vrot.slane %v1183_v14, %v324_v10  ;;  %1010 = vmatprep.subr.bf16.mxu1 %v1069_v39  ;;  %v819_v63 = vmax.bf16 %v1183_v14, %v1168_v11  ;;  %v1089_v19 = vld [vmem:[%s1338_s4 + $0x110] sm:$0xff]  }
  0x13   : > { %v360_v18 = vrot.slane %v1186_v16, %v324_v10  ;;  %389 = vrot.lane.b32.xlu1 %v344_v15, %s1100_s22  ;;  %v345_v20 = vrot.slane %v344_v15, 7  ;;  %989 = vmatpush3.bf16.msra.mxu0 %v1068_v37  ;;  %v299_v2 = vld [vmem:[%s281_s8] sm:$0x3] }
  0x14   : > { %v350_v33 = vrot.slane %v325_v28, 7  ;;  %v327_v35 = vshll.u32 %v325_v28, 16  ;;  %v374_v43 = vshrl.u32 %v325_v28, 16  ;;  %990 = vmatprep.subr.bf16.mxu0 %v1071_v42  ;;  %v818_v4 = vmax.bf16 %v1186_v16, %v299_v2  ;;  %v1087_v15 = vld [vmem:[%s1338_s4 + $0x100] sm:$0xff]  }
  0x15   : > { %v362_v22 = vshrl.u32 %v360_v18, 16  ;;  %v365_v23 = vshll.u32 %v360_v18, 16  ;;  %v349_v26 = vsel %vm346_vm1, 0, %v345_v20  ;;  %1011 = vmatpush3.bf16.msra.mxu1 %v1070_v40  ;;  %v1090_v20 = vld [vmem:[%s1338_s4 + $0x118] sm:$0xff]   ;;  %v979_v37 = vld [vmem:[%s1339_s5 + $0x1] ss:$0 sm:$0xff] }
  0x16   : > { %v1236_v41 = vsel %vm346_vm1, 0, %v350_v33  ;;  %v376_v46 = vrot.slane %v374_v43, 7  ;;  %1012 = vmatprep.subr.bf16.mxu1 %v1073_v45  ;;  %v329_v60 = vrot.slane %v327_v35, 7  ;;  %v820_v6 = vmax.bf16 %v819_v63, %v818_v4 }
  0x17   : > { %v364_v29 = vrot.slane %v362_v22, 7  ;;  %387 = vrot.lane.b32.xlu1 %v360_v18, %s1100_s22  ;;  %991 = vmatpush3.bf16.msra.mxu0 %v1072_v44  ;;  %v1088_v18 = vld [vmem:[%s1338_s4 + $0x108] sm:$0xff]  }
  0x18   : > { %v377_v49 = vor.u32 %v376_v46, %v327_v35  ;;  %992 = vmatprep.subr.bf16.mxu0 %v1075_v48  ;;  %v334_v3 = vsel %vm333_vm7, 0, %v329_v60  ;;  %v821_v7 = vunpack.c.l.bf16 %v820_v6 }
  0x19   : > { %v367_v31 = vor.u32 %v365_v23, %v364_v29  ;;  %1013 = vmatpush3.bf16.msra.mxu1 %v1074_v47  ;;  %v336_v5 = vsel %vm1188_vm4, %v334_v3, 0 }
  0x1a   : > { %v379_v52 = vsel %vm1176_vm3, 0, %v377_v49  ;;  %1014 = vmatprep.subr.bf16.mxu1 %v1077_v51 }
  0x1b   : > { %v372_v36 = vsel %vm1176_vm3, 0, %v367_v31  ;;  %993 = vmatpush3.bf16.msra.mxu0 %v1076_v50  ;;  %v380_v54 = vsel %vm1188_vm4, %v379_v52, 0 }
  0x1c   : > { %v373_v38 = vsel %vm1188_vm4, %v372_v36, 0  ;;  %994 = vmatprep.subr.bf16.mxu0 %v1079_v55 }
  0x1d   : > { %385 = vrot.lane.b32.xlu0 %v373_v38, %s1100_s22  ;;  %1015 = vmatpush3.bf16.msra.mxu1 %v1078_v53 }
  0x1e   : > { %1016 = vmatprep.subr.bf16.mxu1 %v1081_v57 }
  0x1f   : > { %995 = vmatpush3.bf16.msra.mxu0 %v1080_v56 }
  0x20   : > { %996 = vmatprep.subr.bf16.mxu0 %v1083_v59 }
  0x21   : > { %382 = vrot.lane.b32.xlu0 %v349_v26, %s1100_s22  ;;  %1017 = vmatpush3.bf16.msra.mxu1 %v1082_v58 }
  0x22   : > { %1018 = vmatprep.subr.bf16.mxu1 %v1085_v62 }
  0x23   : > { %997 = vmatpush3.bf16.msra.mxu0 %v1084_v61 }
  0x24   : > { %1031 = vmatprep.subr.bf16.mxu0 %v1101_v1 }
  0x25   : > { %1019 = vmatpush3.bf16.msra.mxu1 %v1086_v0  ;;  %823 = vrot.lane.b32.xlu0 %v821_v7, %s1100_s22 }
  0x85   : > { %v390_v8 = vpop.permute.xlu1 %389 }
  0x86   : > { %v405_v9 = vsel %vm391_vm8, %v380_v54, %v390_v8 }
  0x87   : > { %770 = vmatprep.mubr.bf16.mxu1 %v405_v9 }
  0x89   : > { %v388_v10 = vpop.permute.xlu1 %387 }
  0x8a   : > { %v401_v11 = vsel %vm391_vm8, %v299_v2, %v388_v10 }
  0x8b   : > { %771 = vmatmul.mubr.bf16.vlgmr.msra.gmra.mrb[0].mxu1 %v401_v11 }
  0x8f   : > { %v386_v12 = vpop.permute.xlu0 %385 }
  0x90   : > { %v397_v13 = vsel %vm391_vm8, %v1236_v41, %v386_v12 }
  0x91   : > { %730 = vmatprep.mubr.bf16.mxu0 %v397_v13 }
  0x93   : > { %v383_v16 = vpop.permute.xlu0 %382 }
  0x94   : > { %v394_v17 = vsel %vm391_vm8, %v336_v5, %v383_v16 }
  0x95   : > { %731 = vmatmul.mubr.bf16.vlgmr.msra.gmra.mrb[0].mxu0 %v394_v17 }
  0x96   : > { %1032 = vmatpush3.bf16.msra.mxu0 %v1087_v15  ;;  %1039 = vmatprep.mubr.msk.bf16.mxu0 %vm1102_vm9, %v1101_v1 }
  0x97   : > { %1033 = vmatprep.subr.bf16.mxu0 %v1101_v1  ;;  %v824_v33 = vpop.permute.xlu0 %823 }
  0x9a   : > { %1034 = vmatpush3.bf16.msra.mxu0 %v1088_v18 }
  0x9b   : > { %1035 = vmatprep.subr.bf16.mxu0 %v1101_v1 }
  0x9e   : > { %1036 = vmatpush3.bf16.msra.mxu0 %v1089_v19 }
  0x9f   : > { %1037 = vmatprep.subr.bf16.mxu0 %v1101_v1 }
  0xa2   : > { %1038 = vmatpush3.bf16.msra.mxu0 %v1090_v20 }
  0xa5   : > { %1040 = vmatmul.mubr.msk.bf16.vlgmr.msra.gmra.mrb[4].mxu0 %vm391_vm8, %v1183_v14  ;;  %v978_v14 = vld [vmem:[%s1339_s5] ss:$0 sm:$0xff] }
 0x15e   : > { %v1020_v21 = vpop.f32.mrb[0].mxu1 }
 0x15f   : > { %v1021_v22 = vpop.f32.mrb[1].mxu1 }
 0x160   : > { %v1022_v23 = vadd.f32 %v1021_v22, %v1020_v21  ;;  %v1023_v24 = vpop.f32.mrb[2].mxu1 }
 0x161   : > { %v1024_v25 = vpop.f32.mrb[3].mxu1 }
 0x168   : > { %v998_v26 = vpop.f32.mrb[0].mxu0 }
 0x169   : > { %v999_v27 = vpop.f32.mrb[1].mxu0 }
 0x16a   : > { %v1000_v28 = vadd.f32 %v999_v27, %v998_v26  ;;  %v1001_v29 = vpop.f32.mrb[2].mxu0 }
 0x16b   : > { %v1002_v30 = vpop.f32.mrb[3].mxu0 }
 0x16c   : > { %v773_v31 = vadd.f32 %v1022_v23, %v1000_v28 }
 0x178   : > { %v812_v32 = vpop.f32.mrb[4].mxu0 }
 0x179   : > { %v813_v34 = vadd.f32 %v812_v32, %v773_v31  ;;  %v1041_v35 = vpop.f32.mrb[5].mxu0 }
 0x17a   : > { %v815_v36 = vpop.f32.mrb[6].mxu0 }
 0x17b   : > { %v826_v38 = vsel %vm391_vm8, %v813_v34, %v824_v33  ;;  %v1042_v39 = vpop.f32.mrb[7].mxu0 }
 0x17c   : > { %v832_v40 = vmul.f32 %v978_v14, %v826_v38 }
 0x17e   : > { %v838_v41 = vadd.f32 %v979_v37, %v832_v40 }
 0x180   : > { %v839_v42 = vmax.f32 %v838_v41, 0.0 }
 0x182   : > { %v840_v43 = vpack.c.bf16 %v839_v42, %v839_v42 }
 0x184   : > { %841 = vst [vmem:[%s297_s29] sm:$0x3] %v840_v43 }
 0x185 PF: > { %s16_s21 = sadd.s32 1, %s1097_s21  }
 0x186   : > { %p13_p4 = scmp.ge.s32.totalorder %s16_s21, 4  }
 0x188   :  { %15 = sbr.rel (!%p13_p4) target bundleno = 1 (0x1), region = 83 }

// kernel: _lambda_.24
= control target key start
LH: loop header
LB: loop body
LE: loop exit
PB: predicated region body
PF: predicated region fallthrough
CT: control target
= control target key end

     0   :  { %s1965_s21 = smov 0   ;;  %s2362_s0 = inlined_call_operand.vmem [shape: bf16[2,4,128], index: 0, kind: input, shape index: {}]   ;;  %s2363_s1 = inlined_call_operand.vmem [shape: bf16[384,128], index: 1, kind: input, shape index: {}]   ;;  %s2364_s2 = inlined_call_operand.vmem [shape: bf16[384,128], index: 2, kind: input, shape index: {}]   ;;  %s2365_s3 = inlined_call_operand.vmem [shape: bf16[384,128], index: 3, kind: input, shape index: {}]   ;;  %s2366_s4 = inlined_call_operand.vmem [shape: bf16[384,128], index: 4, kind: input, shape index: {}]   ;;  %s2367_s5 = inlined_call_operand.vmem [shape: f32[6,128], index: 5, kind: input, shape index: {}]   ;;  %s2368_s6 = inlined_call_operand.vmem [shape: bf16[2,4,128], index: 6, kind: output, shape index: {}]  }
   0x1 LB: > { %s1492_s22 = sadd.s32 4294967295, %s1924_s21   ;;  %p1496_p0 = scmp.ge.s32.totalorder %s1924_s21, 1  ;;  %s1924_s21 = sphi %s1965_s21, %s16_s21  }
   0x2   : > { %p211_p1 = scmp.lt.s32.totalorder %s1924_s21, 3 }
   0x4   : > { %p212_p2 = pnand %p1496_p0, %p211_p1 }
   0x5   : > { %v1822_v0 = vld [vmem:[%s2363_s1 + $0x40] sm:$0xff] (!%p212_p2)   ;;  %v1926_v2 = vmov (!%p212_p2), 0.0   ;;  %v1825_v4 = vld [vmem:[%s2363_s1 + $0x48] sm:$0xff] (!%p212_p2)   ;;  %v1828_v7 = vld [vmem:[%s2363_s1 + $0x50] sm:$0xff] (!%p212_p2)   ;;  %vm1927_vm0 = vmmov (!%p212_p2), 0   ;;  %p239_p3 = scmp.lt.s32.totalorder (!%p212_p2), %s1492_s22, 1  ;;  %v249_v18 = vlaneseq (!%p212_p2) }
   0x6   : > { %215 = sbr.rel (%p212_p2) target bundleno = 947 (0x3b3), region = 44  ;;  %v1823_v1 = vld [vmem:[%s2363_s1] sm:$0xff] (!%p212_p2)   ;;  %1730 = vmatprep.subr.bf16.mxu1 (!%p212_p2), %v1926_v2  ;;  %1606 = vmatprep.subr.bf16.mxu0 (!%p212_p2), %v1822_v0  ;;  %v1826_v5 = vld [vmem:[%s2363_s1 + $0x8] sm:$0xff] (!%p212_p2)   ;;  %v1829_v8 = vld [vmem:[%s2363_s1 + $0x10] sm:$0xff] (!%p212_p2)   ;;  %v1928_v26 = vmov (!%p212_p2), 1983009808  }
   0x7   : > { %v1824_v3 = vld [vmem:[%s2363_s1 + $0x80] sm:$0xff] (!%p212_p2)   ;;  %1607 = vmatpush3.bf16.msra.mxu0 (!%p212_p2), %v1823_v1  ;;  %v1827_v6 = vld [vmem:[%s2363_s1 + $0x88] sm:$0xff] (!%p212_p2)   ;;  %1746 = vmatprep.mubr.msk.bf16.mxu1 (!%p212_p2), %vm1927_vm0, %v1926_v2  ;;  %v1830_v9 = vld [vmem:[%s2363_s1 + $0x90] sm:$0xff] (!%p212_p2)   ;;  %v2053_v22 = vshrl.u32 (!%p212_p2), %v249_v18, 7  ;;  %v271_v27 = vunpack.c.l.s4 (!%p212_p2), %v1928_v26  ;;  %vm278_vm1 = vcmask (!%p212_p2), 1040384   ;;  %vm584_vm5 = vcmask (!%p212_p2), 1041408  }
   0x8   : > { %1731 = vmatpush3.bf16.msra.mxu1 (!%p212_p2), %v1824_v3  ;;  %1608 = vmatprep.subr.bf16.mxu0 (!%p212_p2), %v1825_v4  ;;  %v1831_v10 = vld [vmem:[%s2363_s1 + $0x58] sm:$0xff] (!%p212_p2)   ;;  %v1834_v13 = vld [vmem:[%s2363_s1 + $0x60] sm:$0xff] (!%p212_p2)   ;;  %v1837_v16 = vld [vmem:[%s2363_s1 + $0x68] sm:$0xff] (!%p212_p2)   ;;  %vm575_vm3 = vsmask.f32 (!%p212_p2), 256 }
   0x9   : > { %1732 = vmatprep.subr.bf16.mxu1 (!%p212_p2), %v1926_v2  ;;  %v1832_v11 = vld [vmem:[%s2363_s1 + $0x18] sm:$0xff] (!%p212_p2)   ;;  %v1835_v14 = vld [vmem:[%s2363_s1 + $0x20] sm:$0xff] (!%p212_p2)   ;;  %v1838_v17 = vld [vmem:[%s2363_s1 + $0x28] sm:$0xff] (!%p212_p2)   ;;  %v272_v29 = vunpack.c.0.s8 (!%p212_p2), %v271_v27  ;;  %vm585_vm6 = vsmask.f32 (!%p212_p2), 1280 }
   0xa   : > { %v1833_v12 = vld [vmem:[%s2363_s1 + $0x98] sm:$0xff] (!%p212_p2)   ;;  %v1836_v15 = vld [vmem:[%s2363_s1 + $0xa0] sm:$0xff] (!%p212_p2)   ;;  %v1839_v19 = vld [vmem:[%s2363_s1 + $0xa8] sm:$0xff] (!%p212_p2)  }
   0xb   : > { %1609 = vmatpush3.bf16.msra.mxu0 (!%p212_p2), %v1826_v5  ;;  %v1840_v20 = vld [vmem:[%s2363_s1 + $0x70] sm:$0xff] (!%p212_p2)   ;;  %v1843_v24 = vld [vmem:[%s2363_s1 + $0x78] sm:$0xff] (!%p212_p2)   ;;  %v275_v31 = vsub.s32 (!%p212_p2), %v272_v29, %v2053_v22  ;;  %v1846_v32 = vld [vmem:[%s2364_s2 + $0x40] sm:$0xff] (!%p212_p2)  }
   0xc   : > { %1733 = vmatpush3.bf16.msra.mxu1 (!%p212_p2), %v1827_v6  ;;  %1610 = vmatprep.subr.bf16.mxu0 (!%p212_p2), %v1828_v7  ;;  %v1841_v21 = vld [vmem:[%s2363_s1 + $0x30] sm:$0xff] (!%p212_p2)   ;;  %v1844_v28 = vld [vmem:[%s2363_s1 + $0x38] sm:$0xff] (!%p212_p2)   ;;  %vm1524_vm2 = vmneg (!%p212_p2), %vm278_vm1 }
   0xd   : > { %1734 = vmatprep.subr.bf16.mxu1 %v1926_v2  ;;  %s2372_s22 = smov (!%p239_p3, %s1492_s22), 1  ;;  %v1842_v23 = vld [vmem:[%s2363_s1 + $0xb0] sm:$0xff]   ;;  %v1845_v30 = vld [vmem:[%s2363_s1 + $0xb8] sm:$0xff]   ;;  %v1847_v34 = vld [vmem:[%s2364_s2] sm:$0xff]  }
   0xe   : > { %s1497_s11 = sshll.u32 %s2372_s22, 1  ;;  %v1848_v37 = vld [vmem:[%s2364_s2 + $0x80] sm:$0xff]   ;;  %v1849_v38 = vld [vmem:[%s2364_s2 + $0x48] sm:$0xff]   ;;  %v1852_v41 = vld [vmem:[%s2364_s2 + $0x50] sm:$0xff]  }
   0xf   : > { %1611 = vmatpush3.bf16.msra.mxu0 %v1829_v8  ;;  %s242_s18 = scalar_lea.vmem %s2362_s0, %s1497_s11  ;;  %v1850_v39 = vld [vmem:[%s2364_s2 + $0x8] sm:$0xff]   ;;  %v1853_v42 = vld [vmem:[%s2364_s2 + $0x10] sm:$0xff]   ;;  %v1855_v44 = vld [vmem:[%s2364_s2 + $0x58] sm:$0xff]   ;;  %s246_s19 = scalar_lea.vmem %s2368_s6, %s1497_s11 }
  0x10   : > { %1735 = vmatpush3.bf16.msra.mxu1 %v1830_v9  ;;  %1612 = vmatprep.subr.bf16.mxu0 %v1831_v10  ;;  %v2061_v25 = vld [vmem:[%s242_s18] sm:$0x3]  ;;  %v1851_v40 = vld [vmem:[%s2364_s2 + $0x88] sm:$0xff]   ;;  %v1854_v43 = vld [vmem:[%s2364_s2 + $0x90] sm:$0xff]   ;;  %v255_v9 = vand.u32 1, %v2053_v22 }
  0x11   : > { %1736 = vmatprep.subr.bf16.mxu1 %v1926_v2  ;;  %515 = vmatprep.mubr.bf16.mxu0 %v2061_v25  ;;  %v276_v33 = vrot.slane %v2061_v25, %v275_v31  ;;  %v1856_v45 = vld [vmem:[%s2364_s2 + $0x18] sm:$0xff]   ;;  %v1858_v47 = vld [vmem:[%s2364_s2 + $0x60] sm:$0xff]   ;;  %v1861_v50 = vld [vmem:[%s2364_s2 + $0x68] sm:$0xff]  }
  0x12   : > { %v1857_v46 = vld [vmem:[%s2364_s2 + $0x98] sm:$0xff]   ;;  %v1859_v48 = vld [vmem:[%s2364_s2 + $0x20] sm:$0xff]   ;;  %v1862_v51 = vld [vmem:[%s2364_s2 + $0x28] sm:$0xff]   ;;  %vm2166_vm4 = vcmp.ge.s32.totalorder %v255_v9, 1  ;;  %vm580_vm8 = vcmp.lt.s32.totalorder %v255_v9, 1 }
  0x13   : > { %1613 = vmatpush3.bf16.msra.mxu0 %v1832_v11  ;;  %v277_v35 = vrot.slane %v276_v33, 7  ;;  %v283_v36 = vrot.slane %v276_v33, 1  ;;  %v1860_v49 = vld [vmem:[%s2364_s2 + $0xa0] sm:$0xff]   ;;  %v1863_v52 = vld [vmem:[%s2364_s2 + $0xa8] sm:$0xff]   ;;  %v1864_v53 = vld [vmem:[%s2364_s2 + $0x70] sm:$0xff]  }
  0x14   : > { %1737 = vmatpush3.bf16.msra.mxu1 %v1833_v12  ;;  %1614 = vmatprep.subr.bf16.mxu0 %v1834_v13  ;;  %v1865_v54 = vld [vmem:[%s2364_s2 + $0x30] sm:$0xff]   ;;  %v1867_v56 = vld [vmem:[%s2364_s2 + $0x78] sm:$0xff]   ;;  %v1870_v59 = vld [vmem:[%s2365_s3 + $0x40] sm:$0xff]  }
  0x15   : > { %1738 = vmatprep.subr.bf16.mxu1 %v1926_v2  ;;  %v1866_v55 = vld [vmem:[%s2364_s2 + $0xb0] sm:$0xff]   ;;  %v1868_v57 = vld [vmem:[%s2364_s2 + $0x38] sm:$0xff]   ;;  %v1499_v62 = vld [vmem:[%s2367_s5] ss:$0 sm:$0xff] }
  0x16   : > { %v1869_v58 = vld [vmem:[%s2364_s2 + $0xb8] sm:$0xff]   ;;  %vm576_vm7 = vmand %vm278_vm1, %vm575_vm3  ;;  %v1874_v27 = vld [vmem:[%s2365_s3 + $0x8] sm:$0xff]  }
  0x17   : > { %1615 = vmatpush3.bf16.msra.mxu0 %v1835_v14  ;;  %vm578_vm9 = vmpackc.low %vm2166_vm4, %vm2166_vm4  ;;  %v1876_v29 = vld [vmem:[%s2365_s3 + $0x50] sm:$0xff]   ;;  %v1880_v33 = vld [vmem:[%s2365_s3 + $0x18] sm:$0xff]  }
  0x18   : > { %1739 = vmatpush3.bf16.msra.mxu1 %v1836_v15  ;;  %1616 = vmatprep.subr.bf16.mxu0 %v1837_v16  ;;  %vm586_vm10 = vmand %vm584_vm5, %vm585_vm6  ;;  %v1878_v31 = vld [vmem:[%s2365_s3 + $0x90] sm:$0xff]   ;;  %v1898_v9 = vld [vmem:[%s2366_s4 + $0x8] sm:$0xff]  }
  0x19   : > { %1740 = vmatprep.subr.bf16.mxu1 %v1926_v2  ;;  %vm588_vm11 = vmpackc.low %vm580_vm8, %vm580_vm8  ;;  %v1903_v12 = vld [vmem:[%s2366_s4 + $0x58] sm:$0xff]  }
  0x1b   : > { %1617 = vmatpush3.bf16.msra.mxu0 %v1838_v17 }
  0x1c   : > { %1741 = vmatpush3.bf16.msra.mxu1 %v1839_v19  ;;  %1618 = vmatprep.subr.bf16.mxu0 %v1840_v20  ;;  %v1871_v19 = vld [vmem:[%s2365_s3] sm:$0xff]  }
  0x1d   : > { %1742 = vmatprep.subr.bf16.mxu1 %v1926_v2  ;;  %v1872_v20 = vld [vmem:[%s2365_s3 + $0x80] sm:$0xff]  }
  0x1f   : > { %1619 = vmatpush3.bf16.msra.mxu0 %v1841_v21 }
  0x20   : > { %1743 = vmatpush3.bf16.msra.mxu1 %v1842_v23  ;;  %1620 = vmatprep.subr.bf16.mxu0 %v1843_v24  ;;  %v1873_v23 = vld [vmem:[%s2365_s3 + $0x48] sm:$0xff]  }
  0x21   : > { %1744 = vmatprep.subr.bf16.mxu1 %v1926_v2 }
  0x23   : > { %1621 = vmatpush3.bf16.msra.mxu0 %v1844_v28  ;;  %v1875_v28 = vld [vmem:[%s2365_s3 + $0x88] sm:$0xff]  }
  0x24   : > { %1745 = vmatpush3.bf16.msra.mxu1 %v1845_v30  ;;  %1637 = vmatprep.subr.bf16.mxu0 %v1846_v32  ;;  %v1877_v30 = vld [vmem:[%s2365_s3 + $0x10] sm:$0xff]   ;;  %v1879_v32 = vld [vmem:[%s2365_s3 + $0x58] sm:$0xff]  }
  0x25   : > { %1750 = vmatprep.subr.bf16.mxu1 %v1926_v2 }
  0x26   : > { %1525 = vmatmul.mubr.msk.bf16.vlgmr.msra.gmra.mrb[0].mxu0 %vm1524_vm2, %v277_v35  ;;  %v1882_v35 = vld [vmem:[%s2365_s3 + $0x60] sm:$0xff]  }
  0x27   : > { %1747 = vmatmul.mubr.msk.bf16.vlgmr.msra.gmra.mrb[0].mxu1 %vm278_vm1, %v283_v36  ;;  %1638 = vmatpush3.bf16.msra.mxu0 %v1847_v34  ;;  %v1881_v34 = vld [vmem:[%s2365_s3 + $0x98] sm:$0xff]   ;;  %v1883_v36 = vld [vmem:[%s2365_s3 + $0x20] sm:$0xff]  }
  0x28   : > { %1751 = vmatpush3.bf16.msra.mxu1 %v1848_v37  ;;  %1639 = vmatprep.subr.bf16.mxu0 %v1849_v38  ;;  %v1884_v37 = vld [vmem:[%s2365_s3 + $0xa0] sm:$0xff]   ;;  %v1885_v38 = vld [vmem:[%s2365_s3 + $0x68] sm:$0xff]  }
  0x29   : > { %1752 = vmatprep.subr.bf16.mxu1 %v1926_v2  ;;  %1766 = vmatprep.mubr.msk.bf16.mxu1 %vm1927_vm0, %v1926_v2 }
  0x2b   : > { %1640 = vmatpush3.bf16.msra.mxu0 %v1850_v39  ;;  %v1886_v39 = vld [vmem:[%s2365_s3 + $0x28] sm:$0xff]  }
  0x2c   : > { %1753 = vmatpush3.bf16.msra.mxu1 %v1851_v40  ;;  %1641 = vmatprep.subr.bf16.mxu0 %v1852_v41  ;;  %v1887_v40 = vld [vmem:[%s2365_s3 + $0xa8] sm:$0xff]   ;;  %v1888_v41 = vld [vmem:[%s2365_s3 + $0x70] sm:$0xff]  }
  0x2d   : > { %1754 = vmatprep.subr.bf16.mxu1 %v1926_v2 }
  0x2f   : > { %1642 = vmatpush3.bf16.msra.mxu0 %v1853_v42  ;;  %v1889_v42 = vld [vmem:[%s2365_s3 + $0x30] sm:$0xff]  }
  0x30   : > { %1755 = vmatpush3.bf16.msra.mxu1 %v1854_v43  ;;  %1643 = vmatprep.subr.bf16.mxu0 %v1855_v44  ;;  %v1890_v43 = vld [vmem:[%s2365_s3 + $0xb0] sm:$0xff]   ;;  %v1891_v44 = vld [vmem:[%s2365_s3 + $0x78] sm:$0xff]  }
  0x31   : > { %1756 = vmatprep.subr.bf16.mxu1 %v1926_v2 }
  0x33   : > { %1644 = vmatpush3.bf16.msra.mxu0 %v1856_v45  ;;  %v1892_v45 = vld [vmem:[%s2365_s3 + $0x38] sm:$0xff]  }
  0x34   : > { %1757 = vmatpush3.bf16.msra.mxu1 %v1857_v46  ;;  %1645 = vmatprep.subr.bf16.mxu0 %v1858_v47  ;;  %v1893_v46 = vld [vmem:[%s2365_s3 + $0xb8] sm:$0xff]   ;;  %v1894_v47 = vld [vmem:[%s2366_s4 + $0x40] sm:$0xff]  }
  0x35   : > { %1758 = vmatprep.subr.bf16.mxu1 %v1926_v2 }
  0x37   : > { %1646 = vmatpush3.bf16.msra.mxu0 %v1859_v48  ;;  %v1896_v48 = vld [vmem:[%s2366_s4 + $0x80] sm:$0xff]  }
  0x38   : > { %1759 = vmatpush3.bf16.msra.mxu1 %v1860_v49  ;;  %1647 = vmatprep.subr.bf16.mxu0 %v1861_v50  ;;  %v1929_v49 = vmov 0   ;;  %v1899_v50 = vld [vmem:[%s2366_s4 + $0x88] sm:$0xff]  }
  0x39   : > { %1760 = vmatprep.subr.bf16.mxu1 %v1926_v2 }
  0x3b   : > { %1648 = vmatpush3.bf16.msra.mxu0 %v1862_v51  ;;  %v1902_v51 = vld [vmem:[%s2366_s4 + $0x90] sm:$0xff]  }
  0x3c   : > { %1761 = vmatpush3.bf16.msra.mxu1 %v1863_v52  ;;  %1649 = vmatprep.subr.bf16.mxu0 %v1864_v53  ;;  %v1905_v52 = vld [vmem:[%s2366_s4 + $0x98] sm:$0xff]   ;;  %v1908_v53 = vld [vmem:[%s2366_s4 + $0xa0] sm:$0xff]  }
  0x3d   : > { %1762 = vmatprep.subr.bf16.mxu1 %v1926_v2 }
  0x3f   : > { %1650 = vmatpush3.bf16.msra.mxu0 %v1865_v54 }
  0x40   : > { %1763 = vmatpush3.bf16.msra.mxu1 %v1866_v55  ;;  %1651 = vmatprep.subr.bf16.mxu0 %v1867_v56 }
  0x41   : > { %1764 = vmatprep.subr.bf16.mxu1 %v1926_v2 }
  0x43   : > { %1652 = vmatpush3.bf16.msra.mxu0 %v1868_v57 }
  0x44   : > { %1765 = vmatpush3.bf16.msra.mxu1 %v1869_v58  ;;  %1668 = vmatprep.subr.bf16.mxu0 %v1870_v59 }
  0x45   : > { %1770 = vmatprep.subr.bf16.mxu1 %v1926_v2 }
  0xf9   : > { %v1622_v60 = vpop.f32.mrb[0].mxu0 }
  0xfa   : > { %v1623_v61 = vpop.f32.mrb[1].mxu0  ;;  %v557_v63 = vpop.f32.mrb[0].mxu1 }
  0xfb   : > { %v1624_v0 = vadd.f32 %v1623_v61, %v1622_v60  ;;  %v1625_v1 = vpop.f32.mrb[2].mxu0  ;;  %v1748_v3 = vpop.f32.mrb[1].mxu1  ;;  %v1551_v61 = vld [vmem:[%s2367_s5 + $0x1] ss:$0 sm:$0xff] }
  0xfc   : > { %v1626_v4 = vpop.f32.mrb[3].mxu0  ;;  %v560_v5 = vpop.f32.mrb[2].mxu1  ;;  %v1552_v1 = vld [vmem:[%s2367_s5 + $0x2] ss:$0 sm:$0xff] }
  0xfd   : > { %v518_v6 = vadd.f32 %v1624_v0, %v1499_v62  ;;  %v1749_v7 = vpop.f32.mrb[3].mxu1 }
  0xfe   : > { %v1895_v7 = vld [vmem:[%s2366_s4] sm:$0xff]  }
  0xff   : > { %v558_v8 = vadd.f32 %v557_v63, %v518_v6 }
 0x101   : > { %v563_v10 = vmax.f32 %v558_v8, 0.0  ;;  %v1897_v8 = vld [vmem:[%s2366_s4 + $0x48] sm:$0xff]  }
 0x103   : > { %v564_v11 = vpack.c.bf16 %v563_v10, %v563_v10  ;;  %v1900_v10 = vld [vmem:[%s2366_s4 + $0x50] sm:$0xff]  }
 0x105   : > { %v567_v13 = vshrl.u32 %v564_v11, 16  ;;  %v570_v14 = vshll.u32 %v564_v11, 16  ;;  %814 = vmatprep.mubr.bf16.mxu0 %v564_v11  ;;  %v1901_v11 = vld [vmem:[%s2366_s4 + $0x10] sm:$0xff]  }
 0x107   : > { %v569_v15 = vrot.slane %v567_v13, 7  ;;  %v581_v16 = vrot.slane %v570_v14, 1 }
 0x109   : > { %v572_v17 = vor.u32 %v570_v14, %v569_v15  ;;  %v582_v18 = vor.u32 %v581_v16, %v567_v13  ;;  %v1904_v13 = vld [vmem:[%s2366_s4 + $0x18] sm:$0xff]   ;;  %v1906_v14 = vld [vmem:[%s2366_s4 + $0x60] sm:$0xff]   ;;  %v1909_v16 = vld [vmem:[%s2366_s4 + $0x68] sm:$0xff]  }
 0x10a   : > { %v1907_v15 = vld [vmem:[%s2366_s4 + $0x20] sm:$0xff]  }
 0x10b   : > { %v577_v21 = vsel %vm576_vm7, 0, %v572_v17  ;;  %v587_v22 = vsel %vm586_vm10, %v582_v18, 0  ;;  %v1910_v17 = vld [vmem:[%s2366_s4 + $0x28] sm:$0xff]  }
 0x10c   : > { %v579_v24 = vsel %vm578_vm9, %v577_v21, 0  ;;  %v589_v26 = vsel %vm588_vm11, %v587_v22, 0  ;;  %v1911_v18 = vld [vmem:[%s2366_s4 + $0xa8] sm:$0xff]   ;;  %v1912_v21 = vld [vmem:[%s2366_s4 + $0x70] sm:$0xff]  }
 0x10d   : > { %815 = vmatmul.mubr.bf16.vlgmr.msra.gmra.mrb[4].mxu0 %v579_v24  ;;  %1767 = vmatmul.mubr.bf16.vlgmr.msra.gmra.mrb[4].mxu1 %v589_v26  ;;  %v1914_v24 = vld [vmem:[%s2366_s4 + $0xb0] sm:$0xff]  }
 0x10e   : > { %1669 = vmatpush3.bf16.msra.mxu0 %v1871_v19  ;;  %1771 = vmatpush3.bf16.msra.mxu1 %v1872_v20 }
 0x10f   : > { %1670 = vmatprep.subr.bf16.mxu0 %v1873_v23  ;;  %1772 = vmatprep.subr.bf16.mxu1 %v1926_v2  ;;  %v1913_v23 = vld [vmem:[%s2366_s4 + $0x30] sm:$0xff]  }
 0x110   : > { %1786 = vmatprep.mubr.msk.bf16.mxu1 %vm1927_vm0, %v1926_v2 }
 0x112   : > { %1671 = vmatpush3.bf16.msra.mxu0 %v1874_v27  ;;  %1773 = vmatpush3.bf16.msra.mxu1 %v1875_v28  ;;  %v1915_v27 = vld [vmem:[%s2366_s4 + $0x78] sm:$0xff]  }
 0x113   : > { %1672 = vmatprep.subr.bf16.mxu0 %v1876_v29  ;;  %1774 = vmatprep.subr.bf16.mxu1 %v1926_v2  ;;  %v1916_v28 = vld [vmem:[%s2366_s4 + $0x38] sm:$0xff]  }
 0x114   : > { %v1917_v29 = vld [vmem:[%s2366_s4 + $0xb8] sm:$0xff]  }
 0x116   : > { %1673 = vmatpush3.bf16.msra.mxu0 %v1877_v30  ;;  %1775 = vmatpush3.bf16.msra.mxu1 %v1878_v31 }
 0x117   : > { %1674 = vmatprep.subr.bf16.mxu0 %v1879_v32  ;;  %1776 = vmatprep.subr.bf16.mxu1 %v1926_v2  ;;  %v1553_v32 = vld [vmem:[%s2367_s5 + $0x3] ss:$0 sm:$0xff] }
 0x11a   : > { %1675 = vmatpush3.bf16.msra.mxu0 %v1880_v33  ;;  %1777 = vmatpush3.bf16.msra.mxu1 %v1881_v34 }
 0x11b   : > { %1676 = vmatprep.subr.bf16.mxu0 %v1882_v35  ;;  %1778 = vmatprep.subr.bf16.mxu1 %v1926_v2 }
 0x11e   : > { %1677 = vmatpush3.bf16.msra.mxu0 %v1883_v36  ;;  %1779 = vmatpush3.bf16.msra.mxu1 %v1884_v37 }
 0x11f   : > { %1678 = vmatprep.subr.bf16.mxu0 %v1885_v38  ;;  %1780 = vmatprep.subr.bf16.mxu1 %v1926_v2 }
 0x122   : > { %1679 = vmatpush3.bf16.msra.mxu0 %v1886_v39  ;;  %1781 = vmatpush3.bf16.msra.mxu1 %v1887_v40 }
 0x123   : > { %1680 = vmatprep.subr.bf16.mxu0 %v1888_v41  ;;  %1782 = vmatprep.subr.bf16.mxu1 %v1926_v2 }
 0x126   : > { %1681 = vmatpush3.bf16.msra.mxu0 %v1889_v42  ;;  %1783 = vmatpush3.bf16.msra.mxu1 %v1890_v43 }
 0x127   : > { %1682 = vmatprep.subr.bf16.mxu0 %v1891_v44  ;;  %1784 = vmatprep.subr.bf16.mxu1 %v1926_v2 }
 0x12a   : > { %1683 = vmatpush3.bf16.msra.mxu0 %v1892_v45  ;;  %1785 = vmatpush3.bf16.msra.mxu1 %v1893_v46 }
 0x12b   : > { %1790 = vmatprep.subr.bf16.mxu1 %v1926_v2  ;;  %1699 = vmatprep.subr.bf16.mxu0 %v1894_v47  ;;  %v1602_v47 = vld [vmem:[%s2367_s5 + $0x4] ss:$0 sm:$0xff] }
 0x12d   : > { %1787 = vmatmul.mubr.bf16.vlgmr.msra.gmra.mrb[8].mxu1 %v1929_v49 }
 0x12e   : > { %1791 = vmatpush3.bf16.msra.mxu1 %v1896_v48  ;;  %1806 = vmatprep.mubr.msk.bf16.mxu1 %vm1927_vm0, %v1926_v2 }
 0x12f   : > { %1792 = vmatprep.subr.bf16.mxu1 %v1926_v2 }
 0x132   : > { %1793 = vmatpush3.bf16.msra.mxu1 %v1899_v50 }
 0x133   : > { %1794 = vmatprep.subr.bf16.mxu1 %v1926_v2 }
 0x136   : > { %1795 = vmatpush3.bf16.msra.mxu1 %v1902_v51  ;;  %v1603_v51 = vld [vmem:[%s2367_s5 + $0x5] ss:$0 sm:$0xff] }
 0x137   : > { %1796 = vmatprep.subr.bf16.mxu1 %v1926_v2 }
 0x13a   : > { %1797 = vmatpush3.bf16.msra.mxu1 %v1905_v52 }
 0x13b   : > { %1798 = vmatprep.subr.bf16.mxu1 %v1926_v2 }
 0x13e   : > { %1799 = vmatpush3.bf16.msra.mxu1 %v1908_v53 }
 0x13f   : > { %1800 = vmatprep.subr.bf16.mxu1 %v1926_v2 }
 0x142   : > { %1801 = vmatpush3.bf16.msra.mxu1 %v1911_v18 }
 0x143   : > { %1802 = vmatprep.subr.bf16.mxu1 %v1926_v2 }
 0x146   : > { %1803 = vmatpush3.bf16.msra.mxu1 %v1914_v24 }
 0x147   : > { %1804 = vmatprep.subr.bf16.mxu1 %v1926_v2 }
 0x14a   : > { %1805 = vmatpush3.bf16.msra.mxu1 %v1917_v29 }
 0x14d   : > { %1807 = vmatmul.mubr.bf16.vlgmr.msra.gmra.mrb[12].mxu1 %v1929_v49 }
 0x1e0   : > { %v1653_v54 = vpop.f32.mrb[4].mxu0  ;;  %v856_v55 = vpop.f32.mrb[4].mxu1 }
 0x1e1   : > { %v1654_v56 = vpop.f32.mrb[5].mxu0  ;;  %v1768_v57 = vpop.f32.mrb[5].mxu1 }
 0x1e2   : > { %v1655_v58 = vadd.f32 %v1654_v56, %v1653_v54  ;;  %v1656_v59 = vpop.f32.mrb[6].mxu0  ;;  %v859_v60 = vpop.f32.mrb[6].mxu1 }
 0x1e3   : > { %v1657_v62 = vpop.f32.mrb[7].mxu0  ;;  %v1769_v63 = vpop.f32.mrb[7].mxu1 }
 0x1e4   : > { %v857_v0 = vadd.f32 %v1655_v58, %v856_v55 }
 0x1e6   : > { %v866_v3 = vmul.f32 %v1551_v61, %v857_v0 }
 0x1e8   : > { %v871_v4 = vadd.f32 %v1552_v1, %v866_v3 }
 0x1ea   : > { %v872_v5 = vmax.f32 %v871_v4, 0.0 }
 0x1ec   : > { %v873_v6 = vpack.c.bf16 %v872_v5, %v872_v5 }
 0x1ee   : > { %1102 = vmatprep.mubr.bf16.mxu0 %v873_v6 }
 0x1ef   : > { %1103 = vmatmul.mubr.bf16.vlgmr.msra.gmra.mrb[8].mxu0 %v1929_v49 }
 0x1f0   : > { %1700 = vmatpush3.bf16.msra.mxu0 %v1895_v7 }
 0x1f1   : > { %1701 = vmatprep.subr.bf16.mxu0 %v1897_v8 }
 0x1f4   : > { %1702 = vmatpush3.bf16.msra.mxu0 %v1898_v9 }
 0x1f5   : > { %1703 = vmatprep.subr.bf16.mxu0 %v1900_v10 }
 0x1f8   : > { %1704 = vmatpush3.bf16.msra.mxu0 %v1901_v11 }
 0x1f9   : > { %1705 = vmatprep.subr.bf16.mxu0 %v1903_v12 }
 0x1fc   : > { %1706 = vmatpush3.bf16.msra.mxu0 %v1904_v13 }
 0x1fd   : > { %1707 = vmatprep.subr.bf16.mxu0 %v1906_v14 }
 0x200   : > { %1708 = vmatpush3.bf16.msra.mxu0 %v1907_v15  ;;  %v1144_v19 = vpop.f32.mrb[8].mxu1 }
 0x201   : > { %1709 = vmatprep.subr.bf16.mxu0 %v1909_v16  ;;  %v1788_v20 = vpop.f32.mrb[9].mxu1 }
 0x202   : > { %v1147_v22 = vpop.f32.mrb[10].mxu1 }
 0x203   : > { %v1789_v26 = vpop.f32.mrb[11].mxu1 }
 0x204   : > { %1710 = vmatpush3.bf16.msra.mxu0 %v1910_v17 }
 0x205   : > { %1711 = vmatprep.subr.bf16.mxu0 %v1912_v21 }
 0x208   : > { %1712 = vmatpush3.bf16.msra.mxu0 %v1913_v23 }
 0x209   : > { %1713 = vmatprep.subr.bf16.mxu0 %v1915_v27 }
 0x20c   : > { %1714 = vmatpush3.bf16.msra.mxu0 %v1916_v28 }
 0x220   : > { %v1418_v39 = vpop.f32.mrb[12].mxu1 }
 0x221   : > { %v1808_v40 = vpop.f32.mrb[13].mxu1 }
 0x222   : > { %v1421_v41 = vpop.f32.mrb[14].mxu1 }
 0x223   : > { %v1809_v42 = vpop.f32.mrb[15].mxu1 }
 0x2c2   : > { %v1684_v30 = vpop.f32.mrb[8].mxu0 }
 0x2c3   : > { %v1685_v31 = vpop.f32.mrb[9].mxu0 }
 0x2c4   : > { %v1686_v2 = vadd.f32 %v1685_v31, %v1684_v30  ;;  %v1687_v33 = vpop.f32.mrb[10].mxu0 }
 0x2c5   : > { %v1688_v34 = vpop.f32.mrb[11].mxu0 }
 0x2c6   : > { %v1105_v35 = vadd.f32 %v1686_v2, %v1553_v32 }
 0x2c8   : > { %v1145_v36 = vadd.f32 %v1144_v19, %v1105_v35 }
 0x2ca   : > { %v1150_v37 = vmax.f32 %v1145_v36, 0.0 }
 0x2cc   : > { %v1151_v38 = vpack.c.bf16 %v1150_v37, %v1150_v37 }
 0x2ce   : > { %1376 = vmatprep.mubr.bf16.mxu0 %v1151_v38 }
 0x2cf   : > { %1377 = vmatmul.mubr.bf16.vlgmr.msra.gmra.mrb[12].mxu0 %v1929_v49  ;;  %v1434_v49 = vunpack.c.l.bf16 %v2061_v25 }
 0x3a2   : > { %v1715_v43 = vpop.f32.mrb[12].mxu0 }
 0x3a3   : > { %v1716_v44 = vpop.f32.mrb[13].mxu0 }
 0x3a4   : > { %v1717_v45 = vadd.f32 %v1716_v44, %v1715_v43  ;;  %v1718_v46 = vpop.f32.mrb[14].mxu0 }
 0x3a5   : > { %v1719_v48 = vpop.f32.mrb[15].mxu0 }
 0x3a6   : > { %v1419_v50 = vadd.f32 %v1717_v45, %v1418_v39 }
 0x3a8   : > { %v1428_v52 = vmul.f32 %v1602_v47, %v1419_v50 }
 0x3aa   : > { %v1433_v53 = vadd.f32 %v1603_v51, %v1428_v52 }
 0x3ac   : > { %v1435_v54 = vadd.f32 %v1434_v49, %v1433_v53 }
 0x3ae   : > { %v1436_v55 = vmax.f32 %v1435_v54, 0.0 }
 0x3b0   : > { %v1437_v56 = vpack.c.bf16 %v1436_v55, %v1436_v55 }
 0x3b2   : > { %1438 = vst [vmem:[%s246_s19] sm:$0x3] %v1437_v56 }
 0x3b3 PF: > { %s16_s21 = sadd.s32 1, %s1924_s21  }
 0x3b4   : > { %p13_p4 = scmp.ge.s32.totalorder %s16_s21, 4  }
 0x3b6   :  { %15 = sbr.rel (!%p13_p4) target bundleno = 1 (0x1), region = 74 }

</bundles_post_ra>
